<compile_context>
chip_gen: v7x
topology: tpu7x:2x2x1
jax: 0.10.0
libtpu: 0.0.40
codegen_flags: <defaults>
</compile_context>

<pallas_src>
import jax
import jax.numpy as jnp
from jax import lax
from jax.experimental import pallas as pl
from jax.experimental.pallas import tpu as pltpu


def _pick_tile(n, target, minimum=1):
    """Largest power-of-two tile <= target (and >= minimum) dividing n, else n.

    NOTE: the fallback (tile == n) is only sensible for small n; pad N in the
    caller for large, non-power-of-two point counts.
    """
    for t in (1024, 512, 256, 128, 64, 32, 16, 8):
        if t <= target and t <= n and n % t == 0 and t >= minimum:
            return t
    return n


# --------------------- Kernel 1: fused distances + top-k ----------------------

def _knn_topk_kernel(xm2_ref, xc_ref, rsq_ref, csq_ref, idx_ref, bd_ref, bi_ref):
    j = pl.program_id(2)                    # column-tile (reduction) axis
    kp1 = bd_ref.shape[1]                   # k + 1 (self included, dropped in wrapper)
    tn = xc_ref.shape[1]

    xm2 = xm2_ref[0]                        # (tm, Fin) query rows, pre-scaled by -2
    xc = xc_ref[0]                          # (tn, Fin) candidate cols of this tile

    # Gram tile without materializing x^T: contract last dim of both operands.
    gram = lax.dot_general(xm2, xc, (((1,), (1,)), ((), ())),
                           preferred_element_type=jnp.float32)      # (tm, tn)
    # Hoisted norms: rsq (tm, 1), csq (1, tn) come in precomputed from HBM.
    d = gram + rsq_ref[0] + csq_ref[0]                              # (tm, tn)

    # Global column indices (f32: exact for N < 2^24).
    cidx = (lax.broadcasted_iota(jnp.int32, d.shape, 1) + j * tn
            ).astype(jnp.float32)
    big = jnp.float32(1e9)

    # --- Lane-aligned tile-local top-(k+1) over the full tn-wide tile ---------
    td, ti = [], []
    for _ in range(kp1):                    # kp1 is small & static -> unrolled
        m = jnp.min(d, axis=1, keepdims=True)                       # (tm, 1)
        sel = jnp.min(jnp.where(d == m, cidx, big), axis=1, keepdims=True)
        d = jnp.where(cidx == sel, jnp.inf, d)                      # invalidate
        td.append(m)
        ti.append(sel)
    tile_d = jnp.concatenate(td, axis=1)                            # (tm, kp1)
    tile_i = jnp.concatenate(ti, axis=1)                            # (tm, kp1)

    # --- Merge with the running best: only 2*(k+1) lanes wide -----------------
    @pl.when(j == 0)
    def _init():
        bd_ref[...] = tile_d
        bi_ref[...] = tile_i

    @pl.when(j > 0)
    def _merge():
        vals = jnp.concatenate([bd_ref[...], tile_d], axis=1)       # (tm, 2*kp1)
        idxs = jnp.concatenate([bi_ref[...], tile_i], axis=1)
        nd, ni = [], []
        for _ in range(kp1):
            m = jnp.min(vals, axis=1, keepdims=True)
            sel = jnp.min(jnp.where(vals == m, idxs, big), axis=1, keepdims=True)
            vals = jnp.where(idxs == sel, jnp.inf, vals)
            nd.append(m)
            ni.append(sel)
        bd_ref[...] = jnp.concatenate(nd, axis=1)
        bi_ref[...] = jnp.concatenate(ni, axis=1)

    # Lane-dense emit: full (tm, k+1) int32 buffer; slice [:, 1:] in the wrapper.
    @pl.when(j == pl.num_programs(2) - 1)
    def _emit():
        idx_ref[0] = bi_ref[...].astype(jnp.int32)


def knn_indices(x, k, *, tile_m=512, tile_n=1024):
    """x: [B, N, Fin] -> [B, N, k] int32 neighbor indices (self excluded)."""
    B, N, Fin = x.shape
    assert N > k, "need more than k points per cloud"
    tm = _pick_tile(N, tile_m)
    tn = _pick_tile(N, tile_n, minimum=k + 1)
    assert tn >= k + 1, "column tile must hold at least k+1 candidates"

    x = x.astype(jnp.float32)
    xm2 = x * (-2.0)                         # fold -2 into the matmul LHS (once)
    sq = jnp.sum(x * x, axis=-1)             # per-point squared norms (once)
    rsq = sq[:, :, None]                     # (B, N, 1) row-norm view
    csq = sq[:, None, :]                     # (B, 1, N) col-norm view

    kp1 = k + 1
    idx_full = pl.pallas_call(
        _knn_topk_kernel,
        out_shape=jax.ShapeDtypeStruct((B, N, kp1), jnp.int32),
        grid=(B, N // tm, N // tn),
        in_specs=[
            pl.BlockSpec((1, tm, Fin), lambda b, i, j: (b, i, 0)),   # -2*x rows
            pl.BlockSpec((1, tn, Fin), lambda b, i, j: (b, j, 0)),   # candidate cols
            pl.BlockSpec((1, tm, 1), lambda b, i, j: (b, i, 0)),     # row norms
            pl.BlockSpec((1, 1, tn), lambda b, i, j: (b, 0, j)),     # col norms
        ],
        out_specs=pl.BlockSpec((1, tm, kp1), lambda b, i, j: (b, i, 0)),
        scratch_shapes=[
            pltpu.VMEM((tm, kp1), jnp.float32),      # running best distances
            pltpu.VMEM((tm, kp1), jnp.float32),      # running best indices (f32)
        ],
        compiler_params=pltpu.CompilerParams(
            dimension_semantics=("parallel", "parallel", "arbitrary"),
            vmem_limit_bytes=48 * 1024 * 1024),
    )(xm2, x, rsq, csq)
    return idx_full[:, :, 1:]                # drop slot 0 (self) in the wrapper


# ------------- Kernel 2: in-kernel gather + edge conv + max over k ------------

def _edgeconv_kernel(xw2_ref, xc_ref, idx_ref, w12_ref, b_ref, o_ref):
    xw2 = xw2_ref[0]                        # (N, Fp)  hoisted x @ W2, batch-resident
    central = xc_ref[0]                     # (tm, Fin) central points of this tile
    idx = idx_ref[0]                        # (tm, k)   int32 neighbor indices
    n = xw2.shape[0]
    tm = central.shape[0]
    k = idx.shape[1]

    # Term constant over neighbors; bias folded in once (k-fold fewer adds).
    base = jnp.dot(central, w12_ref[...],
                   preferred_element_type=jnp.float32) + b_ref[...]     # (tm, Fp)

    # Batched one-hot gather: a single (k*tm, N) x (N, Fp) MXU matmul replaces
    # k separate matmuls (k-fold less RHS streaming, one bounded temporary).
    col = lax.broadcasted_iota(jnp.int32, (tm, n), 1)
    onehot = jnp.concatenate(
        [(col == idx[:, j:j + 1]).astype(jnp.float32) for j in range(k)],
        axis=0)                                                          # (k*tm, N)
    gathered = jnp.dot(onehot, xw2,
                       preferred_element_type=jnp.float32)               # (k*tm, Fp)

    # Max over k via static, sublane-aligned slices (no relayout, no reshape).
    run = gathered[0:tm]
    for j in range(1, k):
        run = jnp.maximum(run, gathered[j * tm:(j + 1) * tm])

    o_ref[0] = (base + run).astype(o_ref.dtype)


def edge_conv_apply(x, idx, W, bias, *, tile_m=256):
    """x: [B,N,Fin], idx: [B,N,k] int32, W: [2*Fin,Fout], bias: [Fout] -> [B,N,Fout]."""
    B, N, Fin = x.shape
    k = idx.shape[2]
    Fout = W.shape[1]
    W = W.astype(jnp.float32)

    # Lane-dense Fout: pad to a multiple of 128 when the overhead is <= 2x.
    Fp = Fout
    if Fout % 128 != 0 and Fout >= 64:
        Fp = ((Fout + 127) // 128) * 128

    W12 = W[:Fin, :] - W[Fin:, :]           # applied to central
    W2 = W[Fin:, :]                         # applied to gathered neighbors
    bias_p = bias.astype(jnp.float32)
    if Fp != Fout:
        pad = ((0, 0), (0, Fp - Fout))
        W12 = jnp.pad(W12, pad)
        W2 = jnp.pad(W2, pad)
        bias_p = jnp.pad(bias_p, (0, Fp - Fout))
    bias2d = bias_p.reshape(1, Fp)

    x = x.astype(jnp.float32)
    # Hoisted: x @ W2 computed once per batch in XLA (was recomputed N/tm times
    # inside the kernel and forced the whole (N, Fin) cloud to be resident).
    xw2 = jnp.einsum("bnf,fo->bno", x, W2)                   # (B, N, Fp)

    tm = _pick_tile(N, tile_m)

    out = pl.pallas_call(
        _edgeconv_kernel,
        out_shape=jax.ShapeDtypeStruct((B, N, Fp), jnp.float32),
        grid=(B, N // tm),
        in_specs=[
            pl.BlockSpec((1, N, Fp), lambda b, i: (b, 0, 0)),     # x @ W2 (batch-resident)
            pl.BlockSpec((1, tm, Fin), lambda b, i: (b, i, 0)),   # central rows
            pl.BlockSpec((1, tm, k), lambda b, i: (b, i, 0)),     # neighbor indices
            pl.BlockSpec((Fin, Fp), lambda b, i: (0, 0)),         # W1 - W2
            pl.BlockSpec((1, Fp), lambda b, i: (0, 0)),           # bias
        ],
        out_specs=pl.BlockSpec((1, tm, Fp), lambda b, i: (b, i, 0)),
        compiler_params=pltpu.CompilerParams(
            dimension_semantics=("parallel", "parallel"),
            vmem_limit_bytes=48 * 1024 * 1024),
    )(xw2, x, idx, W12, bias2d)

    if Fp != Fout:
        out = out[:, :, :Fout]
    return out


# ------------------------------- Module forward --------------------------------

def edge_conv_c_forward(x, W, bias, k, *,
                        knn_tile_m=512, knn_tile_n=1024, conv_tile_m=256):
    """edgeConvC.forward: [B, N, Fin] -> [B, N, Fout]."""
    idx = knn_indices(x, k, tile_m=knn_tile_m, tile_n=knn_tile_n)   # (B, N, k)
    return edge_conv_apply(x, idx, W, bias, tile_m=conv_tile_m)     # (B, N, Fout)


# ---------------------------------- Reference ----------------------------------

def reference_forward(x, W, bias, k):
    dist = (-2.0 * jnp.einsum("bnf,bmf->bnm", x, x)
            + jnp.sum(x * x, axis=-1, keepdims=True)
            + jnp.sum(x * x, axis=-1)[:, None, :])
    idx = jnp.argsort(dist, axis=2)[:, :, 1:k + 1]
    nbr = jax.vmap(lambda xb, ib: xb[ib])(x, idx)
    central = jnp.broadcast_to(x[:, :, None, :], nbr.shape)
    ee = jnp.concatenate([central, nbr - central], axis=3)          # (B,N,k,2Fin)
    edges = jnp.einsum("bnkc,cf->bnkf", ee, W) + bias
    return jnp.max(edges, axis=2)


# ------------------------------------ Main --------------------------------------

if __name__ == "__main__":
    B, N, Fin, Fout, k = 2, 256, 8, 16, 4

    key = jax.random.PRNGKey(0)
    kx, kw, kb = jax.random.split(key, 3)

    x = jax.random.normal(kx, (B, N, Fin), dtype=jnp.float32)

    # Deterministic Conv2d(2*Fin, Fout, 1)-shaped parameters (synthetic init).
    fan_in = 2 * Fin
    bound = 1.0 / jnp.sqrt(fan_in)
    W = jax.random.uniform(kw, (2 * Fin, Fout), jnp.float32, -bound, bound)
    bias = jax.random.uniform(kb, (Fout,), jnp.float32, -bound, bound)

    # (8,128)-aligned tiles smaller than N so the run exercises multi-tile
    # pipelining and the streaming top-(k+1) merge across column tiles.
    out = edge_conv_c_forward(x, W, bias, k,
                              knn_tile_m=128, knn_tile_n=128, conv_tile_m=128)
    out = jax.block_until_ready(out)

    assert out.shape == (B, N, Fout), out.shape

    ref = reference_forward(x, W, bias, k)
    assert jnp.allclose(out, ref, rtol=1e-4, atol=1e-4), float(
        jnp.max(jnp.abs(out - ref)))

    print("KERNEL_OK")
</pallas_src>

<mosaic_0001>
module attributes {stable_mosaic.version = 11 : i64} {
  func.func @_knn_topk_kernel(%arg0: i32, %arg1: i32, %arg2: i32, %arg3: memref<1x128x8xf32, #tpu.memory_space<vmem>>, %arg4: memref<1x128x8xf32, #tpu.memory_space<vmem>>, %arg5: memref<1x128x1xf32, #tpu.memory_space<vmem>>, %arg6: memref<1x1x128xf32, #tpu.memory_space<vmem>>, %arg7: memref<1x128x5xi32, #tpu.memory_space<vmem>>, %arg8: memref<128x5xf32, #tpu.memory_space<vmem>>, %arg9: memref<128x5xf32, #tpu.memory_space<vmem>>) attributes {dimension_semantics = [#tpu.dimension_semantics<parallel>, #tpu.dimension_semantics<parallel>, #tpu.dimension_semantics<arbitrary>], iteration_bounds = array<i64: 2, 2, 2>, scalar_prefetch = 0 : i64, scratch_operands = 2 : i64, tpu.core_type = #tpu.core_type<tc>, window_params = [{transform_indices = @transform_0, window_bounds = array<i64: 1, 128, 8>}, {transform_indices = @transform_1, window_bounds = array<i64: 1, 128, 8>}, {transform_indices = @transform_2, window_bounds = array<i64: 1, 128, 1>}, {transform_indices = @transform_3, window_bounds = array<i64: 1, 1, 128>}, {transform_indices = @transform_4, window_bounds = array<i64: 1, 128, 5>}]} {
    %c0 = arith.constant 0 : index
    %c0_0 = arith.constant 0 : index
    %c0_1 = arith.constant 0 : index
    %0 = vector.load %arg3[%c0, %c0_0, %c0_1] : memref<1x128x8xf32, #tpu.memory_space<vmem>>, vector<1x128x8xf32>
    %1 = vector.shape_cast %0 : vector<1x128x8xf32> to vector<128x8xf32>
    %c0_2 = arith.constant 0 : index
    %c0_3 = arith.constant 0 : index
    %c0_4 = arith.constant 0 : index
    %2 = vector.load %arg4[%c0_2, %c0_3, %c0_4] : memref<1x128x8xf32, #tpu.memory_space<vmem>>, vector<1x128x8xf32>
    %3 = vector.shape_cast %2 : vector<1x128x8xf32> to vector<128x8xf32>
    %cst = arith.constant dense<0.000000e+00> : vector<128x128xf32>
    %4 = tpu.matmul %1, %3, %cst {dimension_numbers = #tpu.dot_dimension_numbers<[1], [1], [0], [0], [0, 0, 1, 0], [], []>} : vector<128x8xf32>, vector<128x8xf32>, vector<128x128xf32> -> vector<128x128xf32>
    %c0_5 = arith.constant 0 : index
    %c0_6 = arith.constant 0 : index
    %c0_7 = arith.constant 0 : index
    %5 = vector.load %arg5[%c0_5, %c0_6, %c0_7] : memref<1x128x1xf32, #tpu.memory_space<vmem>>, vector<1x128x1xf32>
    %6 = vector.shape_cast %5 : vector<1x128x1xf32> to vector<128x1xf32>
    %7 = vector.broadcast %6 : vector<128x1xf32> to vector<128x128xf32>
    %8 = arith.addf %4, %7 : vector<128x128xf32>
    %c0_8 = arith.constant 0 : index
    %c0_9 = arith.constant 0 : index
    %c0_10 = arith.constant 0 : index
    %9 = vector.load %arg6[%c0_8, %c0_9, %c0_10] : memref<1x1x128xf32, #tpu.memory_space<vmem>>, vector<1x1x128xf32>
    %10 = vector.shape_cast %9 : vector<1x1x128xf32> to vector<1x128xf32>
    %11 = vector.broadcast %10 : vector<1x128xf32> to vector<128x128xf32>
    %12 = arith.addf %8, %11 : vector<128x128xf32>
    %13 = tpu.iota {dimensions = array<i32: 1>} : vector<128x128xi32>
    %c128_i32 = arith.constant 128 : i32
    %14 = arith.muli %arg2, %c128_i32 : i32
    %15 = vector.broadcast %14 : i32 to vector<128x128xi32>
    %16 = arith.addi %13, %15 : vector<128x128xi32>
    %17 = arith.sitofp %16 : vector<128x128xi32> to vector<128x128xf32>
    %cst_11 = arith.constant dense<0x7F800000> : vector<128xf32>
    %18 = vector.multi_reduction <minimumf>, %12, %cst_11 [1] : vector<128x128xf32> to vector<128xf32>
    %19 = vector.shape_cast %18 : vector<128xf32> to vector<128x1xf32>
    %20 = vector.broadcast %19 : vector<128x1xf32> to vector<128x128xf32>
    %21 = arith.cmpf oeq, %12, %20 : vector<128x128xf32>
    %cst_12 = arith.constant 1.000000e+09 : f32
    %22 = vector.broadcast %cst_12 : f32 to vector<128x128xf32>
    %23 = arith.select %21, %17, %22 : vector<128x128xi1>, vector<128x128xf32>
    %cst_13 = arith.constant dense<0x7F800000> : vector<128xf32>
    %24 = vector.multi_reduction <minimumf>, %23, %cst_13 [1] : vector<128x128xf32> to vector<128xf32>
    %25 = vector.shape_cast %24 : vector<128xf32> to vector<128x1xf32>
    %26 = vector.broadcast %25 : vector<128x1xf32> to vector<128x128xf32>
    %27 = arith.cmpf oeq, %17, %26 : vector<128x128xf32>
    %cst_14 = arith.constant 0x7F800000 : f32
    %28 = vector.broadcast %cst_14 : f32 to vector<128x128xf32>
    %29 = arith.select %27, %28, %12 : vector<128x128xi1>, vector<128x128xf32>
    %cst_15 = arith.constant dense<0x7F800000> : vector<128xf32>
    %30 = vector.multi_reduction <minimumf>, %29, %cst_15 [1] : vector<128x128xf32> to vector<128xf32>
    %31 = vector.shape_cast %30 : vector<128xf32> to vector<128x1xf32>
    %32 = vector.broadcast %31 : vector<128x1xf32> to vector<128x128xf32>
    %33 = arith.cmpf oeq, %29, %32 : vector<128x128xf32>
    %cst_16 = arith.constant 1.000000e+09 : f32
    %34 = vector.broadcast %cst_16 : f32 to vector<128x128xf32>
    %35 = arith.select %33, %17, %34 : vector<128x128xi1>, vector<128x128xf32>
    %cst_17 = arith.constant dense<0x7F800000> : vector<128xf32>
    %36 = vector.multi_reduction <minimumf>, %35, %cst_17 [1] : vector<128x128xf32> to vector<128xf32>
    %37 = vector.shape_cast %36 : vector<128xf32> to vector<128x1xf32>
    %38 = vector.broadcast %37 : vector<128x1xf32> to vector<128x128xf32>
    %39 = arith.cmpf oeq, %17, %38 : vector<128x128xf32>
    %cst_18 = arith.constant 0x7F800000 : f32
    %40 = vector.broadcast %cst_18 : f32 to vector<128x128xf32>
    %41 = arith.select %39, %40, %29 : vector<128x128xi1>, vector<128x128xf32>
    %cst_19 = arith.constant dense<0x7F800000> : vector<128xf32>
    %42 = vector.multi_reduction <minimumf>, %41, %cst_19 [1] : vector<128x128xf32> to vector<128xf32>
    %43 = vector.shape_cast %42 : vector<128xf32> to vector<128x1xf32>
    %44 = vector.broadcast %43 : vector<128x1xf32> to vector<128x128xf32>
    %45 = arith.cmpf oeq, %41, %44 : vector<128x128xf32>
    %cst_20 = arith.constant 1.000000e+09 : f32
    %46 = vector.broadcast %cst_20 : f32 to vector<128x128xf32>
    %47 = arith.select %45, %17, %46 : vector<128x128xi1>, vector<128x128xf32>
    %cst_21 = arith.constant dense<0x7F800000> : vector<128xf32>
    %48 = vector.multi_reduction <minimumf>, %47, %cst_21 [1] : vector<128x128xf32> to vector<128xf32>
    %49 = vector.shape_cast %48 : vector<128xf32> to vector<128x1xf32>
    %50 = vector.broadcast %49 : vector<128x1xf32> to vector<128x128xf32>
    %51 = arith.cmpf oeq, %17, %50 : vector<128x128xf32>
    %cst_22 = arith.constant 0x7F800000 : f32
    %52 = vector.broadcast %cst_22 : f32 to vector<128x128xf32>
    %53 = arith.select %51, %52, %41 : vector<128x128xi1>, vector<128x128xf32>
    %cst_23 = arith.constant dense<0x7F800000> : vector<128xf32>
    %54 = vector.multi_reduction <minimumf>, %53, %cst_23 [1] : vector<128x128xf32> to vector<128xf32>
    %55 = vector.shape_cast %54 : vector<128xf32> to vector<128x1xf32>
    %56 = vector.broadcast %55 : vector<128x1xf32> to vector<128x128xf32>
    %57 = arith.cmpf oeq, %53, %56 : vector<128x128xf32>
    %cst_24 = arith.constant 1.000000e+09 : f32
    %58 = vector.broadcast %cst_24 : f32 to vector<128x128xf32>
    %59 = arith.select %57, %17, %58 : vector<128x128xi1>, vector<128x128xf32>
    %cst_25 = arith.constant dense<0x7F800000> : vector<128xf32>
    %60 = vector.multi_reduction <minimumf>, %59, %cst_25 [1] : vector<128x128xf32> to vector<128xf32>
    %61 = vector.shape_cast %60 : vector<128xf32> to vector<128x1xf32>
    %62 = vector.broadcast %61 : vector<128x1xf32> to vector<128x128xf32>
    %63 = arith.cmpf oeq, %17, %62 : vector<128x128xf32>
    %cst_26 = arith.constant 0x7F800000 : f32
    %64 = vector.broadcast %cst_26 : f32 to vector<128x128xf32>
    %65 = arith.select %63, %64, %53 : vector<128x128xi1>, vector<128x128xf32>
    %cst_27 = arith.constant dense<0x7F800000> : vector<128xf32>
    %66 = vector.multi_reduction <minimumf>, %65, %cst_27 [1] : vector<128x128xf32> to vector<128xf32>
    %67 = vector.shape_cast %66 : vector<128xf32> to vector<128x1xf32>
    %68 = vector.broadcast %67 : vector<128x1xf32> to vector<128x128xf32>
    %69 = arith.cmpf oeq, %65, %68 : vector<128x128xf32>
    %cst_28 = arith.constant 1.000000e+09 : f32
    %70 = vector.broadcast %cst_28 : f32 to vector<128x128xf32>
    %71 = arith.select %69, %17, %70 : vector<128x128xi1>, vector<128x128xf32>
    %cst_29 = arith.constant dense<0x7F800000> : vector<128xf32>
    %72 = vector.multi_reduction <minimumf>, %71, %cst_29 [1] : vector<128x128xf32> to vector<128xf32>
    %73 = vector.shape_cast %72 : vector<128xf32> to vector<128x1xf32>
    %74 = tpu.concatenate %19, %31, %43, %55, %67 in 1 : vector<128x1xf32>, vector<128x1xf32>, vector<128x1xf32>, vector<128x1xf32>, vector<128x1xf32> -> vector<128x5xf32>
    %75 = tpu.concatenate %25, %37, %49, %61, %73 in 1 : vector<128x1xf32>, vector<128x1xf32>, vector<128x1xf32>, vector<128x1xf32>, vector<128x1xf32> -> vector<128x5xf32>
    %c0_i32 = arith.constant 0 : i32
    %76 = arith.cmpi eq, %arg2, %c0_i32 : i32
    %77 = arith.extui %76 : i1 to i32
    %c0_i32_30 = arith.constant 0 : i32
    %78 = arith.cmpi ne, %77, %c0_i32_30 : i32
    scf.if %78 {
      %c0_35 = arith.constant 0 : index
      %c0_36 = arith.constant 0 : index
      %85 = vector.load %arg8[%c0_35, %c0_36] : memref<128x5xf32, #tpu.memory_space<vmem>>, vector<128x5xf32>
      tpu.vector_store %arg8[%c0_35, %c0_36], %74 {strides = array<i32>} : memref<128x5xf32, #tpu.memory_space<vmem>>, vector<128x5xf32>,
      %c0_37 = arith.constant 0 : index
      %c0_38 = arith.constant 0 : index
      %86 = vector.load %arg9[%c0_37, %c0_38] : memref<128x5xf32, #tpu.memory_space<vmem>>, vector<128x5xf32>
      tpu.vector_store %arg9[%c0_37, %c0_38], %75 {strides = array<i32>} : memref<128x5xf32, #tpu.memory_space<vmem>>, vector<128x5xf32>,
    } else {
    }
    %c0_i32_31 = arith.constant 0 : i32
    %79 = arith.cmpi sgt, %arg2, %c0_i32_31 : i32
    %80 = arith.extui %79 : i1 to i32
    %cst_32 = arith.constant 1.000000e+09 : f32
    %c0_i32_33 = arith.constant 0 : i32
    %81 = arith.cmpi ne, %80, %c0_i32_33 : i32
    scf.if %81 {
      %c0_35 = arith.constant 0 : index
      %c0_36 = arith.constant 0 : index
      %85 = vector.load %arg8[%c0_35, %c0_36] : memref<128x5xf32, #tpu.memory_space<vmem>>, vector<128x5xf32>
      %86 = tpu.concatenate %85, %74 in 1 : vector<128x5xf32>, vector<128x5xf32> -> vector<128x10xf32>
      %c0_37 = arith.constant 0 : index
      %c0_38 = arith.constant 0 : index
      %87 = vector.load %arg9[%c0_37, %c0_38] : memref<128x5xf32, #tpu.memory_space<vmem>>, vector<128x5xf32>
      %88 = tpu.concatenate %87, %75 in 1 : vector<128x5xf32>, vector<128x5xf32> -> vector<128x10xf32>
      %cst_39 = arith.constant dense<0x7F800000> : vector<128xf32>
      %89 = vector.multi_reduction <minimumf>, %86, %cst_39 [1] : vector<128x10xf32> to vector<128xf32>
      %90 = vector.shape_cast %89 : vector<128xf32> to vector<128x1xf32>
      %91 = vector.broadcast %90 : vector<128x1xf32> to vector<128x10xf32>
      %92 = arith.cmpf oeq, %86, %91 : vector<128x10xf32>
      %93 = vector.broadcast %cst_32 : f32 to vector<128x10xf32>
      %94 = arith.select %92, %88, %93 : vector<128x10xi1>, vector<128x10xf32>
      %cst_40 = arith.constant dense<0x7F800000> : vector<128xf32>
      %95 = vector.multi_reduction <minimumf>, %94, %cst_40 [1] : vector<128x10xf32> to vector<128xf32>
      %96 = vector.shape_cast %95 : vector<128xf32> to vector<128x1xf32>
      %97 = vector.broadcast %96 : vector<128x1xf32> to vector<128x10xf32>
      %98 = arith.cmpf oeq, %88, %97 : vector<128x10xf32>
      %cst_41 = arith.constant 0x7F800000 : f32
      %99 = vector.broadcast %cst_41 : f32 to vector<128x10xf32>
      %100 = arith.select %98, %99, %86 : vector<128x10xi1>, vector<128x10xf32>
      %cst_42 = arith.constant dense<0x7F800000> : vector<128xf32>
      %101 = vector.multi_reduction <minimumf>, %100, %cst_42 [1] : vector<128x10xf32> to vector<128xf32>
      %102 = vector.shape_cast %101 : vector<128xf32> to vector<128x1xf32>
      %103 = vector.broadcast %102 : vector<128x1xf32> to vector<128x10xf32>
      %104 = arith.cmpf oeq, %100, %103 : vector<128x10xf32>
      %105 = vector.broadcast %cst_32 : f32 to vector<128x10xf32>
      %106 = arith.select %104, %88, %105 : vector<128x10xi1>, vector<128x10xf32>
      %cst_43 = arith.constant dense<0x7F800000> : vector<128xf32>
      %107 = vector.multi_reduction <minimumf>, %106, %cst_43 [1] : vector<128x10xf32> to vector<128xf32>
      %108 = vector.shape_cast %107 : vector<128xf32> to vector<128x1xf32>
      %109 = vector.broadcast %108 : vector<128x1xf32> to vector<128x10xf32>
      %110 = arith.cmpf oeq, %88, %109 : vector<128x10xf32>
      %cst_44 = arith.constant 0x7F800000 : f32
      %111 = vector.broadcast %cst_44 : f32 to vector<128x10xf32>
      %112 = arith.select %110, %111, %100 : vector<128x10xi1>, vector<128x10xf32>
      %cst_45 = arith.constant dense<0x7F800000> : vector<128xf32>
      %113 = vector.multi_reduction <minimumf>, %112, %cst_45 [1] : vector<128x10xf32> to vector<128xf32>
      %114 = vector.shape_cast %113 : vector<128xf32> to vector<128x1xf32>
      %115 = vector.broadcast %114 : vector<128x1xf32> to vector<128x10xf32>
      %116 = arith.cmpf oeq, %112, %115 : vector<128x10xf32>
      %117 = vector.broadcast %cst_32 : f32 to vector<128x10xf32>
      %118 = arith.select %116, %88, %117 : vector<128x10xi1>, vector<128x10xf32>
      %cst_46 = arith.constant dense<0x7F800000> : vector<128xf32>
      %119 = vector.multi_reduction <minimumf>, %118, %cst_46 [1] : vector<128x10xf32> to vector<128xf32>
      %120 = vector.shape_cast %119 : vector<128xf32> to vector<128x1xf32>
      %121 = vector.broadcast %120 : vector<128x1xf32> to vector<128x10xf32>
      %122 = arith.cmpf oeq, %88, %121 : vector<128x10xf32>
      %cst_47 = arith.constant 0x7F800000 : f32
      %123 = vector.broadcast %cst_47 : f32 to vector<128x10xf32>
      %124 = arith.select %122, %123, %112 : vector<128x10xi1>, vector<128x10xf32>
      %cst_48 = arith.constant dense<0x7F800000> : vector<128xf32>
      %125 = vector.multi_reduction <minimumf>, %124, %cst_48 [1] : vector<128x10xf32> to vector<128xf32>
      %126 = vector.shape_cast %125 : vector<128xf32> to vector<128x1xf32>
      %127 = vector.broadcast %126 : vector<128x1xf32> to vector<128x10xf32>
      %128 = arith.cmpf oeq, %124, %127 : vector<128x10xf32>
      %129 = vector.broadcast %cst_32 : f32 to vector<128x10xf32>
      %130 = arith.select %128, %88, %129 : vector<128x10xi1>, vector<128x10xf32>
      %cst_49 = arith.constant dense<0x7F800000> : vector<128xf32>
      %131 = vector.multi_reduction <minimumf>, %130, %cst_49 [1] : vector<128x10xf32> to vector<128xf32>
      %132 = vector.shape_cast %131 : vector<128xf32> to vector<128x1xf32>
      %133 = vector.broadcast %132 : vector<128x1xf32> to vector<128x10xf32>
      %134 = arith.cmpf oeq, %88, %133 : vector<128x10xf32>
      %cst_50 = arith.constant 0x7F800000 : f32
      %135 = vector.broadcast %cst_50 : f32 to vector<128x10xf32>
      %136 = arith.select %134, %135, %124 : vector<128x10xi1>, vector<128x10xf32>
      %cst_51 = arith.constant dense<0x7F800000> : vector<128xf32>
      %137 = vector.multi_reduction <minimumf>, %136, %cst_51 [1] : vector<128x10xf32> to vector<128xf32>
      %138 = vector.shape_cast %137 : vector<128xf32> to vector<128x1xf32>
      %139 = vector.broadcast %138 : vector<128x1xf32> to vector<128x10xf32>
      %140 = arith.cmpf oeq, %136, %139 : vector<128x10xf32>
      %141 = vector.broadcast %cst_32 : f32 to vector<128x10xf32>
      %142 = arith.select %140, %88, %141 : vector<128x10xi1>, vector<128x10xf32>
      %cst_52 = arith.constant dense<0x7F800000> : vector<128xf32>
      %143 = vector.multi_reduction <minimumf>, %142, %cst_52 [1] : vector<128x10xf32> to vector<128xf32>
      %144 = vector.shape_cast %143 : vector<128xf32> to vector<128x1xf32>
      %145 = tpu.concatenate %90, %102, %114, %126, %138 in 1 : vector<128x1xf32>, vector<128x1xf32>, vector<128x1xf32>, vector<128x1xf32>, vector<128x1xf32> -> vector<128x5xf32>
      %c0_53 = arith.constant 0 : index
      %c0_54 = arith.constant 0 : index
      %146 = vector.load %arg8[%c0_53, %c0_54] : memref<128x5xf32, #tpu.memory_space<vmem>>, vector<128x5xf32>
      tpu.vector_store %arg8[%c0_53, %c0_54], %145 {strides = array<i32>} : memref<128x5xf32, #tpu.memory_space<vmem>>, vector<128x5xf32>,
      %147 = tpu.concatenate %96, %108, %120, %132, %144 in 1 : vector<128x1xf32>, vector<128x1xf32>, vector<128x1xf32>, vector<128x1xf32>, vector<128x1xf32> -> vector<128x5xf32>
      %c0_55 = arith.constant 0 : index
      %c0_56 = arith.constant 0 : index
      %148 = vector.load %arg9[%c0_55, %c0_56] : memref<128x5xf32, #tpu.memory_space<vmem>>, vector<128x5xf32>
      tpu.vector_store %arg9[%c0_55, %c0_56], %147 {strides = array<i32>} : memref<128x5xf32, #tpu.memory_space<vmem>>, vector<128x5xf32>,
    } else {
    }
    %c1_i32 = arith.constant 1 : i32
    %82 = arith.cmpi eq, %arg2, %c1_i32 : i32
    %83 = arith.extui %82 : i1 to i32
    %c0_i32_34 = arith.constant 0 : i32
    %84 = arith.cmpi ne, %83, %c0_i32_34 : i32
    scf.if %84 {
      %c0_35 = arith.constant 0 : index
      %c0_36 = arith.constant 0 : index
      %85 = vector.load %arg9[%c0_35, %c0_36] : memref<128x5xf32, #tpu.memory_space<vmem>>, vector<128x5xf32>
      %86 = arith.fptosi %85 : vector<128x5xf32> to vector<128x5xi32>
      %c0_37 = arith.constant 0 : index
      %c0_38 = arith.constant 0 : index
      %c0_39 = arith.constant 0 : index
      %87 = vector.load %arg7[%c0_37, %c0_38, %c0_39] : memref<1x128x5xi32, #tpu.memory_space<vmem>>, vector<1x128x5xi32>
      %88 = vector.shape_cast %87 : vector<1x128x5xi32> to vector<128x5xi32>
      %89 = vector.shape_cast %86 : vector<128x5xi32> to vector<1x128x5xi32>
      tpu.vector_store %arg7[%c0_37, %c0_38, %c0_39], %89 {strides = array<i32>} : memref<1x128x5xi32, #tpu.memory_space<vmem>>, vector<1x128x5xi32>,
    } else {
    }
    return
  }
  func.func @transform_0(%arg0: i32, %arg1: i32, %arg2: i32) -> (i32, i32, i32) {
    %c0_i32 = arith.constant 0 : i32
    %c0_i32_0 = arith.constant 0 : i32
    return %arg0, %arg1, %c0_i32 : i32, i32, i32
  }
  func.func @transform_1(%arg0: i32, %arg1: i32, %arg2: i32) -> (i32, i32, i32) {
    %c0_i32 = arith.constant 0 : i32
    %c0_i32_0 = arith.constant 0 : i32
    return %arg0, %arg2, %c0_i32 : i32, i32, i32
  }
  func.func @transform_2(%arg0: i32, %arg1: i32, %arg2: i32) -> (i32, i32, i32) {
    %c0_i32 = arith.constant 0 : i32
    %c0_i32_0 = arith.constant 0 : i32
    return %arg0, %arg1, %c0_i32 : i32, i32, i32
  }
  func.func @transform_3(%arg0: i32, %arg1: i32, %arg2: i32) -> (i32, i32, i32) {
    %c0_i32 = arith.constant 0 : i32
    %c0_i32_0 = arith.constant 0 : i32
    return %arg0, %c0_i32, %arg2 : i32, i32, i32
  }
  func.func @transform_4(%arg0: i32, %arg1: i32, %arg2: i32) -> (i32, i32, i32) {
    %c0_i32 = arith.constant 0 : i32
    %c0_i32_0 = arith.constant 0 : i32
    return %arg0, %arg1, %c0_i32 : i32, i32, i32
  }
}

</mosaic_0001>

<bundles_post_ra>
// kernel: tpu_custom_call.1
= control target key start
LH: loop header
LB: loop body
LE: loop exit
PB: predicated region body
PF: predicated region fallthrough
CT: control target
= control target key end

     0   :  { %s3230_s15 = smov 0   ;;  %s3232_s16 = smov 0   ;;  %s6231_s0 = inlined_call_operand.vmem [shape: f32[2,256,8], index: 0, kind: input, shape index: {}]   ;;  %s6232_s1 = inlined_call_operand.vmem [shape: f32[2,256,8], index: 1, kind: input, shape index: {}]   ;;  %s6233_s2 = inlined_call_operand.vmem [shape: f32[2,256,1], index: 2, kind: input, shape index: {}]   ;;  %s6234_s3 = inlined_call_operand.vmem [shape: f32[2,1,256], index: 3, kind: input, shape index: {}]   ;;  %s6235_s4 = inlined_call_operand.vmem [shape: s32[2,256,5], index: 4, kind: output, shape index: {}]  }
   0x1   :  { %s3234_s17 = smov 0   ;;  %s3236_s18 = smov 0  }
   0x2   :  { %s3238_s19 = smov 0   ;;  %s3240_s20 = smov 0  }
   0x3   :  { %s3242_s21 = smov 0  }
   0x4 LB: > { %s26_s22 = sadd.s32 1, %s3189_s18  ;;  %s29_s23 = sadd.s32 1, %s3193_s19  ;;  %s3201_s21 = sphi %s3242_s21, %s14_s21   ;;  %s3197_s20 = sphi %s3240_s20, %s6641_s20   ;;  %s3193_s19 = sphi %s3238_s19, %s6640_s19   ;;  %s3189_s18 = sphi %s3236_s18, %s6639_s18   ;;  %s3185_s17 = sphi %s3234_s17, %s6638_s17   ;;  %s3181_s16 = sphi %s3232_s16, %s6637_s16   ;;  %s3177_s15 = sphi %s3230_s15, %s6636_s15  }
   0x5   : > { %p27_p0 = scmp.ge.s32.totalorder %s26_s22, 2  ;;  %p2850_p1 = scmp.ge.s32.totalorder %s3201_s21, 1 }
   0x6   : > { %p238_p2 = scmp.lt.s32.totalorder %s3201_s21, 9  ;;  %s33_s24 = sadd.s32 1, %s3197_s20 }
   0x7   : > { %s6643_s22 = smov (%p27_p0, %s26_s22), 0  ;;  %s6645_s23 = smov (!%p27_p0, %s29_s23), %s3193_s19 }
   0x8   : > { %p239_p3 = pnand %p2850_p1, %p238_p2  ;;  %p31_p4 = scmp.ge.s32.totalorder %s6645_s23, 2 }
   0xa   : > { %s6647_s23 = smov (%p31_p4, %s6645_s23), 0  ;;  %s6649_s24 = smov (!%p31_p4, %s33_s24), %s3197_s20 }
   0xb   : > { %p35_p5 = scmp.ge.s32.totalorder %s6649_s24, 2  ;;  %242 = sbr.rel (%p239_p3) target bundleno = 3426 (0xd62), region = 36 }
   0xd   : > { %s6651_s24 = smov (%p35_p5, %s6649_s24), 0 }
  0x12   : > { %p298_p6 = scmp.lt.s32.totalorder %s3185_s17, 1  ;;  %s2854_s25 = sshll.u32 %s3177_s15, 4  ;;  %v3203_v0 = vmov 0   ;;  %vm472_vm0 = vcmask 64512  }
  0x13   : > { %p310_p7 = scmp.lt.s32.totalorder %s2854_s25, 31  ;;  %s2851_s26 = sshll.u32 %s3181_s16, 4  ;;  %3146 = vset.pattern.permute.xlu1 %v3203_v0  ;;  %3145 = vset.pattern.permute.xlu0 %v3203_v0  ;;  %vm3288_vm1 = vmpackc.low %vm472_vm0, %vm472_vm0 }
  0x14   : > { %s6653_s17 = smov (!%p298_p6, %s3185_s17), 1  ;;  %p300_p8 = scmp.lt.s32.totalorder %s2851_s26, 31 }
  0x15   : > { %s6655_s25 = smov (!%p310_p7, %s2854_s25), 31  ;;  %s2852_s27 = sshll.u32 %s6653_s17, 5 }
  0x16   : > { %s313_s28 = sadd.s32 %s2852_s27, %s6655_s25  ;;  %s6657_s26 = smov (!%p300_p8, %s2851_s26), 31 }
  0x17   : > { %s2856_s29 = sshll.u32 %s313_s28, 3  ;;  %s303_s7 = sadd.s32 %s2852_s27, %s6657_s26 }
  0x18   : > { %s3284_s6 = scalar_lea.vmem %s6232_s1, %s2856_s29  ;;  %s2853_s8 = sshll.u32 %s303_s7, 3 }
  0x19   : > { %v360_v2 = vld [vmem:[%s3284_s6] sm:$0xff]  ;;  %v361_v3 = vld [vmem:[%s3284_s6 + $0x8] sm:$0xff]  ;;  %v362_v4 = vld [vmem:[%s3284_s6 + $0x10] sm:$0xff]  ;;  %s3307_s11 = scalar_lea.vmem %s6231_s0, %s2853_s8  ;;  %s3312_s14 = scalar_lea.vmem %s6235_s4, %s2853_s8 }
  0x1a   : > { %v2991_v5 = vpack.c.bf16 %v361_v3, %v360_v2  ;;  %v363_v6 = vld [vmem:[%s3284_s6 + $0x18] sm:$0xff]  ;;  %v344_v8 = vld [vmem:[%s3307_s11] sm:$0xff]  ;;  %v365_v11 = vld [vmem:[%s3284_s6 + $0x28] sm:$0xff]  ;;  %s3327_s26 = scalar_lea.vmem %s6233_s2, %s2853_s8  ;;  %p329_p9 = scmp.lt.s32.totalorder %s3177_s15, 1 }
  0x1b   : > { %v2997_v7 = vpack.c.bf16 %v363_v6, %v362_v4  ;;  %v352_v9 = vld [vmem:[%s3307_s11 + $0x40] sm:$0xff]  ;;  %2967 = vmatprep.mubr.msk.f32.mxu0 %vm472_vm0, %v344_v8  ;;  %v378_v13 = vld [vmem:[%s3327_s26 + $0x10] sm:$0xff]  ;;  %v379_v14 = vld [vmem:[%s3327_s26 + $0x18] sm:$0xff]  ;;  %s2860_s28 = sshll.u32 %s6653_s17, 1  ;;  %s2897_s17 = sshll.u32 %s3177_s15, 7 }
  0x1c   : > { %2993 = vmatprep.subr.msk.bf16.mxu0 %vm3288_vm1, %v2991_v5  ;;  %3039 = vmatprep.subr.msk.bf16.mxu1 %vm3288_vm1, %v2991_v5  ;;  %v364_v10 = vld [vmem:[%s3284_s6 + $0x20] sm:$0xff]  ;;  %v366_v16 = vld [vmem:[%s3284_s6 + $0x30] sm:$0xff]  ;;  %v367_v17 = vld [vmem:[%s3284_s6 + $0x38] sm:$0xff]  ;;  %s330_s27 = scalar_select %p329_p9, %s3177_s15, 1 }
  0x1d   : > { %2996 = vmatpush3.bf16.xpose.msk.msra.mxu0 %vm3288_vm1, %v2991_v5  ;;  %3047 = vmatpush3.bf16.xpose.msk.msra.mxu1 %vm3288_vm1, %v2991_v5  ;;  %v3003_v12 = vpack.c.bf16 %v365_v11, %v364_v10  ;;  %v376_v15 = vld [vmem:[%s3327_s26] sm:$0xff]  ;;  %v377_v18 = vld [vmem:[%s3327_s26 + $0x8] sm:$0xff]  ;;  %v3009_v20 = vpack.c.bf16 %v367_v17, %v366_v16  ;;  %v383_v22 = vld [vmem:[%s3327_s26 + $0x38] sm:$0xff]  ;;  %p2898_p10 = scmp.ne.s32.totalorder %s3177_s15, 0 }
  0x1e   : > { %2999 = vmatprep.subr.msk.bf16.mxu0 %vm3288_vm1, %v2997_v7  ;;  %3040 = vmatprep.subr.msk.bf16.mxu1 %vm3288_vm1, %v2997_v7  ;;  %v381_v19 = vld [vmem:[%s3327_s26 + $0x28] sm:$0xff]  ;;  %v380_v21 = vld [vmem:[%s3327_s26 + $0x20] sm:$0xff]  ;;  %v382_v25 = vld [vmem:[%s3327_s26 + $0x30] sm:$0xff]  ;;  %s332_s29 = sadd.s32 %s2860_s28, %s330_s27 }
  0x1f   : > { %2979 = vmatprep.mubr.msk.f32.mxu1 %vm472_vm0, %v352_v9  ;;  %404 = vperm.xlu1 %3146, %v378_v13   ;;  %v368_v23 = vld [vmem:[%s3284_s6 + $0x40] sm:$0xff]  ;;  %v369_v24 = vld [vmem:[%s3284_s6 + $0x48] sm:$0xff]  ;;  %v387_v29 = vld [vmem:[%s3327_s26 + $0x58] sm:$0xff] }
  0x20   : > { %394 = vperm.xlu0 %3145, %v376_v15   ;;  %v385_v26 = vld [vmem:[%s3327_s26 + $0x48] sm:$0xff]  ;;  %v3015_v27 = vpack.c.bf16 %v369_v24, %v368_v23  ;;  %v384_v28 = vld [vmem:[%s3327_s26 + $0x40] sm:$0xff]  ;;  %v370_v30 = vld [vmem:[%s3284_s6 + $0x50] sm:$0xff] }
  0x21   : > { %v371_v31 = vld [vmem:[%s3284_s6 + $0x58] sm:$0xff]  ;;  %v386_v32 = vld [vmem:[%s3327_s26 + $0x50] sm:$0xff]  ;;  %v389_v33 = vld [vmem:[%s3327_s26 + $0x68] sm:$0xff] }
  0x22   : > { %v3021_v34 = vpack.c.bf16 %v371_v31, %v370_v30  ;;  %v388_v35 = vld [vmem:[%s3327_s26 + $0x60] sm:$0xff]  ;;  %v391_v36 = vld [vmem:[%s3327_s26 + $0x78] sm:$0xff]  ;;  %v373_v38 = vld [vmem:[%s3284_s6 + $0x68] sm:$0xff] }
  0x23   : > { %409 = vperm.xlu1 %3146, %v379_v14   ;;  %v372_v37 = vld [vmem:[%s3284_s6 + $0x60] sm:$0xff]  ;;  %v390_v39 = vld [vmem:[%s3327_s26 + $0x70] sm:$0xff]  ;;  %v375_v42 = vld [vmem:[%s3284_s6 + $0x78] sm:$0xff] }
  0x24   : > { %399 = vperm.xlu0 %3145, %v377_v18   ;;  %v3027_v40 = vpack.c.bf16 %v373_v38, %v372_v37  ;;  %v374_v41 = vld [vmem:[%s3284_s6 + $0x70] sm:$0xff]  ;;  %v345_v44 = vld [vmem:[%s3307_s11 + $0x8] sm:$0xff]  ;;  %v347_v48 = vld [vmem:[%s3307_s11 + $0x18] sm:$0xff]  ;;  %s333_s6 = scalar_lea.vmem %s6234_s3, %s332_s29 }
  0x25   : > { %3002 = vmatpush3.bf16.xpose.msk.msra.mxu0 %vm3288_vm1, %v2997_v7  ;;  %3048 = vmatpush3.bf16.xpose.msk.msra.mxu1 %vm3288_vm1, %v2997_v7  ;;  %v3033_v43 = vpack.c.bf16 %v375_v42, %v374_v41  ;;  %v353_v45 = vld [vmem:[%s3307_s11 + $0x48] sm:$0xff]  ;;  %v346_v46 = vld [vmem:[%s3307_s11 + $0x10] sm:$0xff]  ;;  %v355_v49 = vld [vmem:[%s3307_s11 + $0x58] sm:$0xff] }
  0x26   : > { %3005 = vmatprep.subr.msk.bf16.mxu0 %vm3288_vm1, %v3003_v12  ;;  %3041 = vmatprep.subr.msk.bf16.mxu1 %vm3288_vm1, %v3003_v12  ;;  %v354_v47 = vld [vmem:[%s3307_s11 + $0x50] sm:$0xff]  ;;  %v348_v50 = vld [vmem:[%s3307_s11 + $0x20] sm:$0xff]  ;;  %v349_v52 = vld [vmem:[%s3307_s11 + $0x28] sm:$0xff] }
  0x27   : > { %419 = vperm.xlu1 %3146, %v381_v19   ;;  %v356_v51 = vld [vmem:[%s3307_s11 + $0x60] sm:$0xff]  ;;  %v357_v53 = vld [vmem:[%s3307_s11 + $0x68] sm:$0xff]  ;;  %v350_v54 = vld [vmem:[%s3307_s11 + $0x30] sm:$0xff] }
  0x28   : > { %414 = vperm.xlu0 %3145, %v380_v21   ;;  %v358_v55 = vld [vmem:[%s3307_s11 + $0x70] sm:$0xff]  ;;  %v351_v56 = vld [vmem:[%s3307_s11 + $0x38] sm:$0xff]  ;;  %v2896_v7 = vld [vmem:[%s333_s6] ss:$0 sm:$0xff] }
  0x29   : > { %v359_v57 = vld [vmem:[%s3307_s11 + $0x78] sm:$0xff] }
  0x2b   : > { %429 = vperm.xlu1 %3146, %v383_v22  }
  0x2c   : > { %424 = vperm.xlu0 %3145, %v382_v25  }
  0x2d   : > { %3008 = vmatpush3.bf16.xpose.msk.msra.mxu0 %vm3288_vm1, %v3003_v12  ;;  %3049 = vmatpush3.bf16.xpose.msk.msra.mxu1 %vm3288_vm1, %v3003_v12 }
  0x2e   : > { %3011 = vmatprep.subr.msk.bf16.mxu0 %vm3288_vm1, %v3009_v20  ;;  %3042 = vmatprep.subr.msk.bf16.mxu1 %vm3288_vm1, %v3009_v20 }
  0x2f   : > { %439 = vperm.xlu1 %3146, %v385_v26  }
  0x30   : > { %434 = vperm.xlu0 %3145, %v384_v28  }
  0x33   : > { %449 = vperm.xlu1 %3146, %v387_v29  }
  0x34   : > { %444 = vperm.xlu0 %3145, %v386_v32  }
  0x35   : > { %3014 = vmatpush3.bf16.xpose.msk.msra.mxu0 %vm3288_vm1, %v3009_v20  ;;  %3050 = vmatpush3.bf16.xpose.msk.msra.mxu1 %vm3288_vm1, %v3009_v20 }
  0x36   : > { %3017 = vmatprep.subr.msk.bf16.mxu0 %vm3288_vm1, %v3015_v27  ;;  %3043 = vmatprep.subr.msk.bf16.mxu1 %vm3288_vm1, %v3015_v27 }
  0x37   : > { %459 = vperm.xlu1 %3146, %v389_v33  }
  0x38   : > { %454 = vperm.xlu0 %3145, %v388_v35  }
  0x3b   : > { %469 = vperm.xlu1 %3146, %v391_v36  }
  0x3c   : > { %464 = vperm.xlu0 %3145, %v390_v39  }
  0x3d   : > { %3020 = vmatpush3.bf16.xpose.msk.msra.mxu0 %vm3288_vm1, %v3015_v27  ;;  %3051 = vmatpush3.bf16.xpose.msk.msra.mxu1 %vm3288_vm1, %v3015_v27 }
  0x3e   : > { %3023 = vmatprep.subr.msk.bf16.mxu0 %vm3288_vm1, %v3021_v34  ;;  %3044 = vmatprep.subr.msk.bf16.mxu1 %vm3288_vm1, %v3021_v34 }
  0x45   : > { %3026 = vmatpush3.bf16.xpose.msk.msra.mxu0 %vm3288_vm1, %v3021_v34  ;;  %3052 = vmatpush3.bf16.xpose.msk.msra.mxu1 %vm3288_vm1, %v3021_v34 }
  0x46   : > { %3029 = vmatprep.subr.msk.bf16.mxu0 %vm3288_vm1, %v3027_v40  ;;  %3045 = vmatprep.subr.msk.bf16.mxu1 %vm3288_vm1, %v3027_v40 }
  0x4d   : > { %3032 = vmatpush3.bf16.xpose.msk.msra.mxu0 %vm3288_vm1, %v3027_v40  ;;  %3053 = vmatpush3.bf16.xpose.msk.msra.mxu1 %vm3288_vm1, %v3027_v40 }
  0x4e   : > { %3035 = vmatprep.subr.msk.bf16.mxu0 %vm3288_vm1, %v3033_v43  ;;  %3046 = vmatprep.subr.msk.bf16.mxu1 %vm3288_vm1, %v3033_v43 }
  0x55   : > { %3038 = vmatpush3.bf16.xpose.msk.msra.mxu0 %vm3288_vm1, %v3033_v43  ;;  %3054 = vmatpush3.bf16.xpose.msk.msra.mxu1 %vm3288_vm1, %v3033_v43 }
  0x5c   : > { %2968 = vmatmul.mubr.msk.f32.vlgmr.msra.gmra.mrb[0].mxu0 %vm472_vm0, %v345_v44  ;;  %2980 = vmatmul.mubr.msk.f32.vlgmr.msra.gmra.mrb[0].mxu1 %vm472_vm0, %v353_v45 }
  0x5d   : > { %2970 = vmatprep.mubr.msk.f32.mxu0 %vm472_vm0, %v346_v46  ;;  %2982 = vmatprep.mubr.msk.f32.mxu1 %vm472_vm0, %v354_v47 }
  0x60   : > { %2971 = vmatmul.mubr.msk.f32.gmra.mrb[2].mxu0 %vm472_vm0, %v347_v48  ;;  %2983 = vmatmul.mubr.msk.f32.gmra.mrb[2].mxu1 %vm472_vm0, %v355_v49 }
  0x61   : > { %2973 = vmatprep.mubr.msk.f32.mxu0 %vm472_vm0, %v348_v50  ;;  %2985 = vmatprep.mubr.msk.f32.mxu1 %vm472_vm0, %v356_v51 }
  0x64   : > { %2974 = vmatmul.mubr.msk.f32.gmra.mrb[4].mxu0 %vm472_vm0, %v349_v52  ;;  %2986 = vmatmul.mubr.msk.f32.gmra.mrb[4].mxu1 %vm472_vm0, %v357_v53 }
  0x65   : > { %2976 = vmatprep.mubr.msk.f32.mxu0 %vm472_vm0, %v350_v54  ;;  %2988 = vmatprep.mubr.msk.f32.mxu1 %vm472_vm0, %v358_v55 }
  0x68   : > { %2977 = vmatmul.mubr.msk.f32.gmra.mrb[6].mxu0 %vm472_vm0, %v351_v56  ;;  %2989 = vmatmul.mubr.msk.f32.gmra.mrb[6].mxu1 %vm472_vm0, %v359_v57 }
  0x9e   : > { %v405_v58 = vpop.permute.xlu1 %404 }
  0x9f   : > { %v395_v59 = vpop.permute.xlu0 %394 }
  0xa2   : > { %v410_v60 = vpop.permute.xlu1 %409 }
  0xa3   : > { %v400_v61 = vpop.permute.xlu0 %399 }
  0xa6   : > { %v420_v62 = vpop.permute.xlu1 %419 }
  0xa7   : > { %v415_v63 = vpop.permute.xlu0 %414 }
  0xaa   : > { %v430_v0 = vpop.permute.xlu1 %429 }
  0xab   : > { %v3435_v1 = vpop.permute.xlu0 %424 }
  0xae   : > { %v440_v2 = vpop.permute.xlu1 %439 }
  0xaf   : > { %v435_v3 = vpop.permute.xlu0 %434 }
  0xb2   : > { %v450_v4 = vpop.permute.xlu1 %449 }
  0xb3   : > { %v445_v5 = vpop.permute.xlu0 %444 }
  0xb6   : > { %v460_v15 = vpop.permute.xlu1 %459 }
  0xb7   : > { %v455_v16 = vpop.permute.xlu0 %454 }
  0xba   : > { %v470_v41 = vpop.permute.xlu1 %469 }
  0xbb   : > { %v465_v42 = vpop.permute.xlu0 %464 }
 0x12f   : > { %v2969_v6 = vpop.f32.mrb[0].mxu0  ;;  %v2981_v8 = vpop.f32.mrb[0].mxu1 }
 0x130   : > { %v641_v9 = vadd.f32 %v2969_v6, %v400_v61  ;;  %v681_v10 = vadd.f32 %v2981_v8, %v440_v2  ;;  %v635_v11 = vpop.f32.mrb[1].mxu0  ;;  %v675_v12 = vpop.f32.mrb[1].mxu1  ;;  %v740_v61 = vstv %s2897_s17 }
 0x131   : > { %v636_v13 = vadd.f32 %v635_v11, %v395_v59  ;;  %v676_v14 = vadd.f32 %v675_v12, %v435_v3  ;;  %v737_v59 = vlaneseq }
 0x132   : > { %v3443_v17 = vadd.f32 %v2896_v7, %v641_v9  ;;  %v3445_v18 = vadd.f32 %v2896_v7, %v681_v10 }
 0x133   : > { %v3447_v19 = vadd.f32 %v2896_v7, %v636_v13  ;;  %v3449_v20 = vadd.f32 %v2896_v7, %v676_v14  ;;  %v2972_v21 = vpop.f32.mrb[2].mxu0  ;;  %v2984_v22 = vpop.f32.mrb[2].mxu1 }
 0x134   : > { %v651_v23 = vadd.f32 %v2972_v21, %v410_v60  ;;  %v691_v24 = vadd.f32 %v2984_v22, %v450_v4  ;;  %761 = vmin.xlane.f32.xlu0 %v3445_v18  ;;  %v685_v25 = vpop.f32.mrb[3].mxu1  ;;  %745 = vmin.xlane.f32.xlu1 %v3443_v17  ;;  %v645_v26 = vpop.f32.mrb[3].mxu0  ;;  %v738_v60 = vand.u32 127, %v737_v59 }
 0x135   : > { %v686_v27 = vadd.f32 %v685_v25, %v445_v5  ;;  %v646_v28 = vadd.f32 %v645_v26, %v405_v58 }
 0x136   : > { %v3453_v29 = vadd.f32 %v2896_v7, %v651_v23  ;;  %v3455_v30 = vadd.f32 %v2896_v7, %v691_v24 }
 0x137   : > { %v3457_v31 = vadd.f32 %v2896_v7, %v686_v27  ;;  %v3459_v32 = vadd.f32 %v2896_v7, %v646_v28  ;;  %v2975_v33 = vpop.f32.mrb[4].mxu0  ;;  %v2987_v34 = vpop.f32.mrb[4].mxu1 }
 0x138   : > { %v661_v35 = vadd.f32 %v2975_v33, %v420_v62  ;;  %v701_v36 = vadd.f32 %v2987_v34, %v460_v15  ;;  %v695_v37 = vpop.f32.mrb[5].mxu1  ;;  %759 = vmin.xlane.f32.xlu1 %v3449_v20  ;;  %v655_v38 = vpop.f32.mrb[5].mxu0  ;;  %743 = vmin.xlane.f32.xlu0 %v3447_v19  ;;  %v741_v62 = vadd.s32 %v740_v61, %v738_v60 }
 0x139   : > { %v696_v39 = vadd.f32 %v695_v37, %v455_v16  ;;  %v656_v40 = vadd.f32 %v655_v38, %v415_v63 }
 0x13a   : > { %v3463_v43 = vadd.f32 %v2896_v7, %v661_v35  ;;  %v3465_v44 = vadd.f32 %v2896_v7, %v701_v36  ;;  %v3493_v63 = vcvt.s32.f32 %v741_v62 }
 0x13b   : > { %v3467_v45 = vadd.f32 %v2896_v7, %v696_v39  ;;  %v3469_v46 = vadd.f32 %v2896_v7, %v656_v40  ;;  %v2978_v47 = vpop.f32.mrb[6].mxu0  ;;  %v2990_v48 = vpop.f32.mrb[6].mxu1 }
 0x13c   : > { %v671_v49 = vadd.f32 %v2978_v47, %v430_v0  ;;  %v711_v50 = vadd.f32 %v2990_v48, %v470_v41  ;;  %v705_v51 = vpop.f32.mrb[7].mxu1  ;;  %763 = vmin.xlane.f32.xlu1 %v3457_v31  ;;  %v665_v52 = vpop.f32.mrb[7].mxu0  ;;  %749 = vmin.xlane.f32.xlu0 %v3453_v29 }
 0x13d   : > { %v706_v53 = vadd.f32 %v705_v51, %v465_v42  ;;  %v666_v54 = vadd.f32 %v665_v52, %v3435_v1 }
 0x13e   : > { %v3474_v55 = vadd.f32 %v2896_v7, %v671_v49  ;;  %v3476_v56 = vadd.f32 %v2896_v7, %v711_v50 }
 0x13f   : > { %v3478_v57 = vadd.f32 %v2896_v7, %v706_v53  ;;  %v3480_v58 = vadd.f32 %v2896_v7, %v666_v54 }
 0x140   : > { %751 = vmin.xlane.f32.xlu1 %v3469_v46  ;;  %765 = vmin.xlane.f32.xlu0 %v3455_v30 }
 0x144   : > { %767 = vmin.xlane.f32.xlu1 %v3467_v45  ;;  %747 = vmin.xlane.f32.xlu0 %v3459_v32 }
 0x148   : > { %755 = vmin.xlane.f32.xlu1 %v3480_v58  ;;  %753 = vmin.xlane.f32.xlu0 %v3463_v43 }
 0x14c   : > { %771 = vmin.xlane.f32.xlu1 %v3478_v57  ;;  %769 = vmin.xlane.f32.xlu0 %v3465_v44 }
 0x150   : > { %757 = vmin.xlane.f32.xlu0 %v3474_v55 }
 0x154   : > { %773 = vmin.xlane.f32.xlu0 %v3476_v56 }
 0x1c1   : > { %v3495_v0 = vpop.xlane.xlu0 %761  ;;  %v3497_v1 = vpop.xlane.xlu1 %745 }
 0x1c2   : > { %vm776_vm2 = vcmp.eq.f32.partialorder %v3443_v17, %v3497_v1  ;;  %vm784_vm3 = vcmp.eq.f32.partialorder %v3445_v18, %v3495_v0 }
 0x1c3   : > { %v792_v2 = vsel %vm776_vm2, %v3493_v63, 1e+09  ;;  %v800_v5 = vsel %vm784_vm3, %v3493_v63, 1e+09 }
 0x1c4   : > { %809 = vmin.xlane.f32.xlu0 %v792_v2 }
 0x1c5   : > { %v3504_v3 = vpop.xlane.xlu1 %759  ;;  %v3506_v4 = vpop.xlane.xlu0 %743 }
 0x1c6   : > { %vm775_vm4 = vcmp.eq.f32.partialorder %v3447_v19, %v3506_v4  ;;  %vm783_vm5 = vcmp.eq.f32.partialorder %v3449_v20, %v3504_v3 }
 0x1c7   : > { %v791_v6 = vsel %vm775_vm4, %v3493_v63, 1e+09  ;;  %v799_v9 = vsel %vm783_vm5, %v3493_v63, 1e+09 }
 0x1c8   : > { %825 = vmin.xlane.f32.xlu0 %v800_v5  ;;  %807 = vmin.xlane.f32.xlu1 %v791_v6 }
 0x1c9   : > { %v3514_v7 = vpop.xlane.xlu1 %763  ;;  %v3516_v8 = vpop.xlane.xlu0 %749 }
 0x1ca   : > { %vm778_vm6 = vcmp.eq.f32.partialorder %v3453_v29, %v3516_v8  ;;  %vm785_vm9 = vcmp.eq.f32.partialorder %v3457_v31, %v3514_v7 }
 0x1cb   : > { %v794_v10 = vsel %vm778_vm6, %v3493_v63, 1e+09  ;;  %v801_v22 = vsel %vm785_vm9, %v3493_v63, 1e+09 }
 0x1cc   : > { %823 = vmin.xlane.f32.xlu1 %v799_v9  ;;  %813 = vmin.xlane.f32.xlu0 %v794_v10 }
 0x1cd   : > { %v3522_v11 = vpop.xlane.xlu0 %765  ;;  %v3526_v12 = vpop.xlane.xlu1 %751 }
 0x1ce   : > { %vm786_vm7 = vcmp.eq.f32.partialorder %v3455_v30, %v3522_v11  ;;  %vm779_vm11 = vcmp.eq.f32.partialorder %v3469_v46, %v3526_v12 }
 0x1cf   : > { %v802_v13 = vsel %vm786_vm7, %v3493_v63, 1e+09  ;;  %v795_v26 = vsel %vm779_vm11, %v3493_v63, 1e+09 }
 0x1d0   : > { %829 = vmin.xlane.f32.xlu0 %v802_v13 }
 0x1d1   : > { %v3529_v14 = vpop.xlane.xlu0 %747  ;;  %v3536_v16 = vpop.xlane.xlu1 %767 }
 0x1d2   : > { %vm777_vm8 = vcmp.eq.f32.partialorder %v3459_v32, %v3529_v14  ;;  %vm787_vm13 = vcmp.eq.f32.partialorder %v3467_v45, %v3536_v16 }
 0x1d3   : > { %v793_v15 = vsel %vm777_vm8, %v3493_v63, 1e+09  ;;  %v803_v33 = vsel %vm787_vm13, %v3493_v63, 1e+09 }
 0x1d4   : > { %811 = vmin.xlane.f32.xlu1 %v793_v15 }
 0x1d5   : > { %v3538_v21 = vpop.xlane.xlu0 %753  ;;  %v3550_v25 = vpop.xlane.xlu1 %755 }
 0x1d6   : > { %vm780_vm10 = vcmp.eq.f32.partialorder %v3463_v43, %v3538_v21  ;;  %6366 = vst [vmem:[#allocation4_spill] sm:$0xff] %v3550_v25  ;;  %vm781_vm15 = vcmp.eq.f32.partialorder %v3480_v58, %v3550_v25 }
 0x1d7   : > { %v796_v23 = vsel %vm780_vm10, %v3493_v63, 1e+09  ;;  %v797_v37 = vsel %vm781_vm15, %v3493_v63, 1e+09 }
 0x1d8   : > { %827 = vmin.xlane.f32.xlu1 %v801_v22  ;;  %817 = vmin.xlane.f32.xlu0 %v796_v23 }
 0x1d9   : > { %v3546_v24 = vpop.xlane.xlu0 %769  ;;  %v3564_v35 = vpop.xlane.xlu1 %771 }
 0x1da   : > { %vm788_vm12 = vcmp.eq.f32.partialorder %v3465_v44, %v3546_v24  ;;  %6367 = vst [vmem:[#allocation5_spill] sm:$0xff] %v3564_v35  ;;  %vm789_vm1 = vcmp.eq.f32.partialorder %v3478_v57, %v3564_v35 }
 0x1db   : > { %v804_v27 = vsel %vm788_vm12, %v3493_v63, 1e+09  ;;  %v805_v39 = vsel %vm789_vm1, %v3493_v63, 1e+09 }
 0x1dc   : > { %815 = vmin.xlane.f32.xlu1 %v795_v26  ;;  %833 = vmin.xlane.f32.xlu0 %v804_v27 }
 0x1dd   : > { %v3556_v28 = vpop.xlane.xlu0 %757 }
 0x1de   : > { %vm782_vm14 = vcmp.eq.f32.partialorder %v3474_v55, %v3556_v28 }
 0x1df   : > { %v798_v34 = vsel %vm782_vm14, %v3493_v63, 1e+09 }
 0x1e0   : > { %831 = vmin.xlane.f32.xlu1 %v803_v33  ;;  %821 = vmin.xlane.f32.xlu0 %v798_v34 }
 0x1e1   : > { %v3566_v36 = vpop.xlane.xlu0 %773 }
 0x1e2   : > { %6368 = vst [vmem:[#allocation6_spill] sm:$0xff] %v3566_v36  ;;  %vm790_vm0 = vcmp.eq.f32.partialorder %v3476_v56, %v3566_v36 }
 0x1e3   : > { %v806_v38 = vsel %vm790_vm0, %v3493_v63, 1e+09 }
 0x1e4   : > { %819 = vmin.xlane.f32.xlu1 %v797_v37  ;;  %837 = vmin.xlane.f32.xlu0 %v806_v38 }
 0x1e8   : > { %835 = vmin.xlane.f32.xlu1 %v805_v39 }
 0x251   : > { %v3575_v40 = vpop.xlane.xlu0 %809 }
 0x252   : > { %6369 = vst [vmem:[#allocation7_spill] sm:$0xff] %v3575_v40  ;;  %vm840_vm2 = vcmp.eq.f32.partialorder %v3493_v63, %v3575_v40 }
 0x253   : > { %v3580_v41 = vsel %vm840_vm2, inf, %v3443_v17 }
 0x254   : > { %873 = vmin.xlane.f32.xlu0 %v3580_v41 }
 0x255   : > { %v3583_v42 = vpop.xlane.xlu1 %807  ;;  %v3585_v47 = vpop.xlane.xlu0 %825 }
 0x256   : > { %6370 = vst [vmem:[#allocation8_spill] sm:$0xff] %v3583_v42  ;;  %6371 = vst [vmem:[#allocation9_spill] sm:$0xff] %v3585_v47  ;;  %vm839_vm3 = vcmp.eq.f32.partialorder %v3493_v63, %v3583_v42  ;;  %vm848_vm4 = vcmp.eq.f32.partialorder %v3493_v63, %v3585_v47 }
 0x257   : > { %v3592_v48 = vsel %vm839_vm3, inf, %v3447_v19  ;;  %v3595_v49 = vsel %vm848_vm4, inf, %v3445_v18 }
 0x258   : > { %871 = vmin.xlane.f32.xlu1 %v3592_v48  ;;  %889 = vmin.xlane.f32.xlu0 %v3595_v49 }
 0x259   : > { %v3599_v17 = vpop.xlane.xlu1 %823  ;;  %v3601_v50 = vpop.xlane.xlu0 %813 }
 0x25a   : > { %6372 = vst [vmem:[#allocation10_spill] sm:$0xff] %v3599_v17  ;;  %6373 = vst [vmem:[#allocation11_spill] sm:$0xff] %v3601_v50  ;;  %vm847_vm5 = vcmp.eq.f32.partialorder %v3493_v63, %v3599_v17  ;;  %vm842_vm6 = vcmp.eq.f32.partialorder %v3493_v63, %v3601_v50 }
 0x25b   : > { %v3608_v19 = vsel %vm847_vm5, inf, %v3449_v20  ;;  %v3611_v18 = vsel %vm842_vm6, inf, %v3453_v29 }
 0x25c   : > { %887 = vmin.xlane.f32.xlu1 %v3608_v19  ;;  %877 = vmin.xlane.f32.xlu0 %v3611_v18 }
 0x25d   : > { %v3615_v51 = vpop.xlane.xlu0 %829 }
 0x25e   : > { %6374 = vst [vmem:[#allocation12_spill] sm:$0xff] %v3615_v51  ;;  %vm850_vm7 = vcmp.eq.f32.partialorder %v3493_v63, %v3615_v51 }
 0x25f   : > { %v3620_v52 = vsel %vm850_vm7, inf, %v3455_v30 }
 0x260   : > { %893 = vmin.xlane.f32.xlu0 %v3620_v52 }
 0x261   : > { %v3623_v53 = vpop.xlane.xlu1 %811 }
 0x262   : > { %6375 = vst [vmem:[#allocation13_spill] sm:$0xff] %v3623_v53  ;;  %vm841_vm8 = vcmp.eq.f32.partialorder %v3493_v63, %v3623_v53 }
 0x263   : > { %v3628_v20 = vsel %vm841_vm8, inf, %v3459_v32 }
 0x264   : > { %875 = vmin.xlane.f32.xlu1 %v3628_v20 }
 0x265   : > { %v3631_v29 = vpop.xlane.xlu1 %827  ;;  %v3633_v54 = vpop.xlane.xlu0 %817 }
 0x266   : > { %6376 = vst [vmem:[#allocation14_spill] sm:$0xff] %v3631_v29  ;;  %6377 = vst [vmem:[#allocation15_spill] sm:$0xff] %v3633_v54  ;;  %vm849_vm9 = vcmp.eq.f32.partialorder %v3493_v63, %v3631_v29  ;;  %vm844_vm10 = vcmp.eq.f32.partialorder %v3493_v63, %v3633_v54 }
 0x267   : > { %v3640_v30 = vsel %vm849_vm9, inf, %v3457_v31  ;;  %v3643_v59 = vsel %vm844_vm10, inf, %v3463_v43 }
 0x268   : > { %891 = vmin.xlane.f32.xlu1 %v3640_v30  ;;  %881 = vmin.xlane.f32.xlu0 %v3643_v59 }
 0x269   : > { %v3647_v32 = vpop.xlane.xlu1 %815  ;;  %v3649_v60 = vpop.xlane.xlu0 %833 }
 0x26a   : > { %6378 = vst [vmem:[#allocation16_spill] sm:$0xff] %v3647_v32  ;;  %6379 = vst [vmem:[#allocation17_spill] sm:$0xff] %v3649_v60  ;;  %vm843_vm11 = vcmp.eq.f32.partialorder %v3493_v63, %v3647_v32  ;;  %vm852_vm12 = vcmp.eq.f32.partialorder %v3493_v63, %v3649_v60 }
 0x26b   : > { %v3656_v31 = vsel %vm843_vm11, inf, %v3469_v46  ;;  %v3659_v43 = vsel %vm852_vm12, inf, %v3465_v44 }
 0x26c   : > { %879 = vmin.xlane.f32.xlu1 %v3656_v31  ;;  %897 = vmin.xlane.f32.xlu0 %v3659_v43 }
 0x26d   : > { %v3663_v61 = vpop.xlane.xlu1 %831  ;;  %v3665_v62 = vpop.xlane.xlu0 %821 }
 0x26e   : > { %6380 = vst [vmem:[#allocation18_spill] sm:$0xff] %v3663_v61  ;;  %6381 = vst [vmem:[#allocation19_spill] sm:$0xff] %v3665_v62  ;;  %vm851_vm13 = vcmp.eq.f32.partialorder %v3493_v63, %v3663_v61  ;;  %vm846_vm14 = vcmp.eq.f32.partialorder %v3493_v63, %v3665_v62 }
 0x26f   : > { %v3672_v46 = vsel %vm851_vm13, inf, %v3467_v45  ;;  %v3675_v44 = vsel %vm846_vm14, inf, %v3474_v55 }
 0x270   : > { %895 = vmin.xlane.f32.xlu1 %v3672_v46  ;;  %885 = vmin.xlane.f32.xlu0 %v3675_v44 }
 0x271   : > { %v3679_v2 = vpop.xlane.xlu1 %819  ;;  %v3681_v5 = vpop.xlane.xlu0 %837 }
 0x272   : > { %6382 = vst [vmem:[#allocation20_spill] sm:$0xff] %v3679_v2  ;;  %6383 = vst [vmem:[#allocation21_spill] sm:$0xff] %v3681_v5  ;;  %vm845_vm15 = vcmp.eq.f32.partialorder %v3493_v63, %v3679_v2  ;;  %vm854_vm0 = vcmp.eq.f32.partialorder %v3493_v63, %v3681_v5 }
 0x273   : > { %v3688_v45 = vsel %vm845_vm15, inf, %v3480_v58  ;;  %v3691_v55 = vsel %vm854_vm0, inf, %v3476_v56 }
 0x274   : > { %883 = vmin.xlane.f32.xlu1 %v3688_v45  ;;  %901 = vmin.xlane.f32.xlu0 %v3691_v55 }
 0x275   : > { %v3695_v6 = vpop.xlane.xlu1 %835 }
 0x276   : > { %6384 = vst [vmem:[#allocation22_spill] sm:$0xff] %v3695_v6  ;;  %vm853_vm1 = vcmp.eq.f32.partialorder %v3493_v63, %v3695_v6 }
 0x277   : > { %v3700_v9 = vsel %vm853_vm1, inf, %v3478_v57 }
 0x278   : > { %899 = vmin.xlane.f32.xlu1 %v3700_v9 }
 0x2e1   : > { %v3703_v10 = vpop.xlane.xlu0 %873 }
 0x2e2   : > { %vm904_vm2 = vcmp.eq.f32.partialorder %v3580_v41, %v3703_v10 }
 0x2e3   : > { %v920_v56 = vsel %vm904_vm2, %v3493_v63, 1e+09 }
 0x2e4   : > { %937 = vmin.xlane.f32.xlu0 %v920_v56 }
 0x2e5   : > { %v3708_v58 = vpop.xlane.xlu1 %871  ;;  %v3710_v13 = vpop.xlane.xlu0 %889 }
 0x2e6   : > { %vm903_vm3 = vcmp.eq.f32.partialorder %v3592_v48, %v3708_v58  ;;  %vm912_vm4 = vcmp.eq.f32.partialorder %v3595_v49, %v3710_v13 }
 0x2e7   : > { %v919_v57 = vsel %vm903_vm3, %v3493_v63, 1e+09  ;;  %v928_v15 = vsel %vm912_vm4, %v3493_v63, 1e+09 }
 0x2e8   : > { %935 = vmin.xlane.f32.xlu1 %v919_v57  ;;  %953 = vmin.xlane.f32.xlu0 %v928_v15 }
 0x2e9   : > { %v3718_v22 = vpop.xlane.xlu1 %887  ;;  %v3720_v23 = vpop.xlane.xlu0 %877 }
 0x2ea   : > { %vm911_vm5 = vcmp.eq.f32.partialorder %v3608_v19, %v3718_v22  ;;  %vm906_vm6 = vcmp.eq.f32.partialorder %v3611_v18, %v3720_v23 }
 0x2eb   : > { %v927_v26 = vsel %vm911_vm5, %v3493_v63, 1e+09  ;;  %v922_v27 = vsel %vm906_vm6, %v3493_v63, 1e+09 }
 0x2ec   : > { %951 = vmin.xlane.f32.xlu1 %v927_v26  ;;  %941 = vmin.xlane.f32.xlu0 %v922_v27 }
 0x2ed   : > { %v3728_v33 = vpop.xlane.xlu0 %893 }
 0x2ee   : > { %vm914_vm7 = vcmp.eq.f32.partialorder %v3620_v52, %v3728_v33 }
 0x2ef   : > { %v930_v34 = vsel %vm914_vm7, %v3493_v63, 1e+09 }
 0x2f0   : > { %957 = vmin.xlane.f32.xlu0 %v930_v34 }
 0x2f1   : > { %v3733_v37 = vpop.xlane.xlu1 %875 }
 0x2f2   : > { %vm905_vm8 = vcmp.eq.f32.partialorder %v3628_v20, %v3733_v37 }
 0x2f3   : > { %v921_v38 = vsel %vm905_vm8, %v3493_v63, 1e+09 }
 0x2f4   : > { %939 = vmin.xlane.f32.xlu1 %v921_v38 }
 0x2f5   : > { %v3738_v39 = vpop.xlane.xlu1 %891  ;;  %v3740_v56 = vpop.xlane.xlu0 %881 }
 0x2f6   : > { %vm913_vm9 = vcmp.eq.f32.partialorder %v3640_v30, %v3738_v39  ;;  %vm908_vm10 = vcmp.eq.f32.partialorder %v3643_v59, %v3740_v56 }
 0x2f7   : > { %v929_v57 = vsel %vm913_vm9, %v3493_v63, 1e+09  ;;  %v924_v15 = vsel %vm908_vm10, %v3493_v63, 1e+09 }
 0x2f8   : > { %955 = vmin.xlane.f32.xlu1 %v929_v57  ;;  %945 = vmin.xlane.f32.xlu0 %v924_v15 }
 0x2f9   : > { %v3748_v26 = vpop.xlane.xlu1 %879  ;;  %v3750_v27 = vpop.xlane.xlu0 %897 }
 0x2fa   : > { %vm907_vm11 = vcmp.eq.f32.partialorder %v3656_v31, %v3748_v26  ;;  %vm916_vm12 = vcmp.eq.f32.partialorder %v3659_v43, %v3750_v27 }
 0x2fb   : > { %v923_v34 = vsel %vm907_vm11, %v3493_v63, 1e+09  ;;  %v932_v38 = vsel %vm916_vm12, %v3493_v63, 1e+09 }
 0x2fc   : > { %943 = vmin.xlane.f32.xlu1 %v923_v34  ;;  %961 = vmin.xlane.f32.xlu0 %v932_v38 }
 0x2fd   : > { %v3758_v6 = vpop.xlane.xlu1 %895  ;;  %v3760_v57 = vpop.xlane.xlu0 %885 }
 0x2fe   : > { %vm915_vm13 = vcmp.eq.f32.partialorder %v3672_v46, %v3758_v6  ;;  %vm910_vm14 = vcmp.eq.f32.partialorder %v3675_v44, %v3760_v57 }
 0x2ff   : > { %v931_v15 = vsel %vm915_vm13, %v3493_v63, 1e+09  ;;  %v926_v5 = vsel %vm910_vm14, %v3493_v63, 1e+09 }
 0x300   : > { %959 = vmin.xlane.f32.xlu1 %v931_v15  ;;  %949 = vmin.xlane.f32.xlu0 %v926_v5 }
 0x301   : > { %v3768_v35 = vpop.xlane.xlu1 %883  ;;  %v3770_v34 = vpop.xlane.xlu0 %901 }
 0x302   : > { %6385 = vst [vmem:[#allocation23_spill] sm:$0xff] %v3770_v34  ;;  %vm909_vm15 = vcmp.eq.f32.partialorder %v3688_v45, %v3768_v35  ;;  %vm918_vm0 = vcmp.eq.f32.partialorder %v3691_v55, %v3770_v34 }
 0x303   : > { %v925_v38 = vsel %vm909_vm15, %v3493_v63, 1e+09  ;;  %v934_v36 = vsel %vm918_vm0, %v3493_v63, 1e+09 }
 0x304   : > { %947 = vmin.xlane.f32.xlu1 %v925_v38  ;;  %965 = vmin.xlane.f32.xlu0 %v934_v36 }
 0x305   : > { %v3778_v2 = vpop.xlane.xlu1 %899 }
 0x306   : > { %6386 = vst [vmem:[#allocation24_spill] sm:$0xff] %v3778_v2  ;;  %vm917_vm1 = vcmp.eq.f32.partialorder %v3700_v9, %v3778_v2 }
 0x307   : > { %v933_v5 = vsel %vm917_vm1, %v3493_v63, 1e+09 }
 0x308   : > { %963 = vmin.xlane.f32.xlu1 %v933_v5 }
 0x371   : > { %v3783_v15 = vpop.xlane.xlu0 %937 }
 0x372   : > { %6387 = vst [vmem:[#allocation25_spill] sm:$0xff] %v3783_v15  ;;  %vm968_vm2 = vcmp.eq.f32.partialorder %v3493_v63, %v3783_v15 }
 0x373   : > { %v3788_v34 = vsel %vm968_vm2, inf, %v3580_v41 }
 0x374   : > { %1001 = vmin.xlane.f32.xlu0 %v3788_v34 }
 0x375   : > { %v3791_v38 = vpop.xlane.xlu1 %935  ;;  %v3793_v36 = vpop.xlane.xlu0 %953 }
 0x376   : > { %6388 = vst [vmem:[#allocation26_spill] sm:$0xff] %v3791_v38  ;;  %6389 = vst [vmem:[#allocation27_spill] sm:$0xff] %v3793_v36  ;;  %vm967_vm3 = vcmp.eq.f32.partialorder %v3493_v63, %v3791_v38  ;;  %vm976_vm4 = vcmp.eq.f32.partialorder %v3493_v63, %v3793_v36 }
 0x377   : > { %v3800_v5 = vsel %vm967_vm3, inf, %v3592_v48  ;;  %v3803_v2 = vsel %vm976_vm4, inf, %v3595_v49 }
 0x378   : > { %999 = vmin.xlane.f32.xlu1 %v3800_v5  ;;  %1017 = vmin.xlane.f32.xlu0 %v3803_v2 }
 0x379   : > { %v3807_v41 = vpop.xlane.xlu1 %951  ;;  %v3809_v62 = vpop.xlane.xlu0 %941 }
 0x37a   : > { %6390 = vst [vmem:[#allocation28_spill] sm:$0xff] %v3807_v41  ;;  %6391 = vst [vmem:[#allocation29_spill] sm:$0xff] %v3809_v62  ;;  %vm975_vm5 = vcmp.eq.f32.partialorder %v3493_v63, %v3807_v41  ;;  %vm970_vm6 = vcmp.eq.f32.partialorder %v3493_v63, %v3809_v62 }
 0x37b   : > { %v3816_v48 = vsel %vm975_vm5, inf, %v3608_v19  ;;  %v3819_v49 = vsel %vm970_vm6, inf, %v3611_v18 }
 0x37c   : > { %1015 = vmin.xlane.f32.xlu1 %v3816_v48  ;;  %1005 = vmin.xlane.f32.xlu0 %v3819_v49 }
 0x37d   : > { %v3823_v61 = vpop.xlane.xlu0 %957 }
 0x37e   : > { %6392 = vst [vmem:[#allocation30_spill] sm:$0xff] %v3823_v61  ;;  %vm978_vm7 = vcmp.eq.f32.partialorder %v3493_v63, %v3823_v61 }
 0x37f   : > { %v3828_v60 = vsel %vm978_vm7, inf, %v3620_v52 }
 0x380   : > { %1021 = vmin.xlane.f32.xlu0 %v3828_v60 }
 0x381   : > { %v3831_v32 = vpop.xlane.xlu1 %939 }
 0x382   : > { %6393 = vst [vmem:[#allocation31_spill] sm:$0xff] %v3831_v32  ;;  %vm969_vm8 = vcmp.eq.f32.partialorder %v3493_v63, %v3831_v32 }
 0x383   : > { %v3836_v19 = vsel %vm969_vm8, inf, %v3628_v20 }
 0x384   : > { %1003 = vmin.xlane.f32.xlu1 %v3836_v19 }
 0x385   : > { %v3839_v18 = vpop.xlane.xlu1 %955  ;;  %v3841_v54 = vpop.xlane.xlu0 %945 }
 0x386   : > { %6394 = vst [vmem:[#allocation32_spill] sm:$0xff] %v3839_v18  ;;  %6395 = vst [vmem:[#allocation33_spill] sm:$0xff] %v3841_v54  ;;  %vm977_vm9 = vcmp.eq.f32.partialorder %v3493_v63, %v3839_v18  ;;  %vm972_vm10 = vcmp.eq.f32.partialorder %v3493_v63, %v3841_v54 }
 0x387   : > { %v3848_v52 = vsel %vm977_vm9, inf, %v3640_v30  ;;  %v3851_v29 = vsel %vm972_vm10, inf, %v3643_v59 }
 0x388   : > { %1019 = vmin.xlane.f32.xlu1 %v3848_v52  ;;  %1009 = vmin.xlane.f32.xlu0 %v3851_v29 }
 0x389   : > { %v3855_v20 = vpop.xlane.xlu1 %943  ;;  %v3857_v53 = vpop.xlane.xlu0 %961 }
 0x38a   : > { %6396 = vst [vmem:[#allocation34_spill] sm:$0xff] %v3855_v20  ;;  %6397 = vst [vmem:[#allocation35_spill] sm:$0xff] %v3857_v53  ;;  %vm971_vm11 = vcmp.eq.f32.partialorder %v3493_v63, %v3855_v20  ;;  %vm980_vm12 = vcmp.eq.f32.partialorder %v3493_v63, %v3857_v53 }
 0x38b   : > { %v3864_v30 = vsel %vm971_vm11, inf, %v3656_v31  ;;  %v3867_v59 = vsel %vm980_vm12, inf, %v3659_v43 }
 0x38c   : > { %1007 = vmin.xlane.f32.xlu1 %v3864_v30  ;;  %1025 = vmin.xlane.f32.xlu0 %v3867_v59 }
 0x38d   : > { %v3871_v54 = vpop.xlane.xlu1 %959  ;;  %v3873_v18 = vpop.xlane.xlu0 %949 }
 0x38e   : > { %6398 = vst [vmem:[#allocation36_spill] sm:$0xff] %v3871_v54  ;;  %6399 = vst [vmem:[#allocation37_spill] sm:$0xff] %v3873_v18  ;;  %vm979_vm13 = vcmp.eq.f32.partialorder %v3493_v63, %v3871_v54  ;;  %vm974_vm14 = vcmp.eq.f32.partialorder %v3493_v63, %v3873_v18 }
 0x38f   : > { %v3880_v31 = vsel %vm979_vm13, inf, %v3672_v46  ;;  %v3883_v43 = vsel %vm974_vm14, inf, %v3675_v44 }
 0x390   : > { %1023 = vmin.xlane.f32.xlu1 %v3880_v31  ;;  %1013 = vmin.xlane.f32.xlu0 %v3883_v43 }
 0x391   : > { %v3887_v53 = vpop.xlane.xlu1 %947  ;;  %v3889_v20 = vpop.xlane.xlu0 %965 }
 0x392   : > { %6400 = vst [vmem:[#allocation38_spill] sm:$0xff] %v3887_v53  ;;  %6401 = vst [vmem:[#allocation39_spill] sm:$0xff] %v3889_v20  ;;  %vm982_vm15 = vcmp.eq.f32.partialorder %v3493_v63, %v3889_v20  ;;  %vm973_vm0 = vcmp.eq.f32.partialorder %v3493_v63, %v3887_v53 }
 0x393   : > { %v3896_v46 = vsel %vm973_vm0, inf, %v3688_v45  ;;  %v3899_v44 = vsel %vm982_vm15, inf, %v3691_v55 }
 0x394   : > { %1011 = vmin.xlane.f32.xlu1 %v3896_v46  ;;  %1029 = vmin.xlane.f32.xlu0 %v3899_v44 }
 0x395   : > { %v3903_v18 = vpop.xlane.xlu1 %963 }
 0x396   : > { %6402 = vst [vmem:[#allocation40_spill] sm:$0xff] %v3903_v18  ;;  %vm981_vm1 = vcmp.eq.f32.partialorder %v3493_v63, %v3903_v18 }
 0x397   : > { %v3908_v20 = vsel %vm981_vm1, inf, %v3700_v9 }
 0x398   : > { %1027 = vmin.xlane.f32.xlu1 %v3908_v20 }
 0x401   : > { %v3911_v53 = vpop.xlane.xlu0 %1001 }
 0x402   : > { %vm1032_vm2 = vcmp.eq.f32.partialorder %v3788_v34, %v3911_v53 }
 0x403   : > { %v1048_v45 = vsel %vm1032_vm2, %v3493_v63, 1e+09 }
 0x404   : > { %1065 = vmin.xlane.f32.xlu0 %v1048_v45 }
 0x405   : > { %v3916_v55 = vpop.xlane.xlu1 %999  ;;  %v3918_v54 = vpop.xlane.xlu0 %1017 }
 0x406   : > { %vm1040_vm3 = vcmp.eq.f32.partialorder %v3803_v2, %v3918_v54  ;;  %vm1031_vm4 = vcmp.eq.f32.partialorder %v3800_v5, %v3916_v55 }
 0x407   : > { %v1047_v9 = vsel %vm1031_vm4, %v3493_v63, 1e+09  ;;  %v1056_v18 = vsel %vm1040_vm3, %v3493_v63, 1e+09 }
 0x408   : > { %1063 = vmin.xlane.f32.xlu1 %v1047_v9  ;;  %1081 = vmin.xlane.f32.xlu0 %v1056_v18 }
 0x409   : > { %v3926_v32 = vpop.xlane.xlu1 %1015  ;;  %v3928_v51 = vpop.xlane.xlu0 %1005 }
 0x40a   : > { %vm1034_vm5 = vcmp.eq.f32.partialorder %v3819_v49, %v3928_v51  ;;  %vm1039_vm6 = vcmp.eq.f32.partialorder %v3816_v48, %v3926_v32 }
 0x40b   : > { %v1055_v45 = vsel %vm1039_vm6, %v3493_v63, 1e+09  ;;  %v1050_v61 = vsel %vm1034_vm5, %v3493_v63, 1e+09 }
 0x40c   : > { %1079 = vmin.xlane.f32.xlu1 %v1055_v45  ;;  %1069 = vmin.xlane.f32.xlu0 %v1050_v61 }
 0x40d   : > { %v3936_v50 = vpop.xlane.xlu0 %1021 }
 0x40e   : > { %vm1042_vm7 = vcmp.eq.f32.partialorder %v3828_v60, %v3936_v50 }
 0x40f   : > { %v1058_v18 = vsel %vm1042_vm7, %v3493_v63, 1e+09 }
 0x410   : > { %1085 = vmin.xlane.f32.xlu0 %v1058_v18 }
 0x411   : > { %v3941_v9 = vpop.xlane.xlu1 %1003 }
 0x412   : > { %vm1033_vm8 = vcmp.eq.f32.partialorder %v3836_v19, %v3941_v9 }
 0x413   : > { %v1049_v62 = vsel %vm1033_vm8, %v3493_v63, 1e+09 }
 0x414   : > { %1067 = vmin.xlane.f32.xlu1 %v1049_v62 }
 0x415   : > { %v3946_v17 = vpop.xlane.xlu1 %1019  ;;  %v3948_v45 = vpop.xlane.xlu0 %1009 }
 0x416   : > { %vm1041_vm9 = vcmp.eq.f32.partialorder %v3848_v52, %v3946_v17  ;;  %vm1036_vm10 = vcmp.eq.f32.partialorder %v3851_v29, %v3948_v45 }
 0x417   : > { %v1057_v61 = vsel %vm1041_vm9, %v3493_v63, 1e+09  ;;  %v1052_v18 = vsel %vm1036_vm10, %v3493_v63, 1e+09 }
 0x418   : > { %1083 = vmin.xlane.f32.xlu1 %v1057_v61  ;;  %1073 = vmin.xlane.f32.xlu0 %v1052_v18 }
 0x419   : > { %v3956_v41 = vpop.xlane.xlu1 %1007  ;;  %v3958_v47 = vpop.xlane.xlu0 %1025 }
 0x41a   : > { %vm1035_vm11 = vcmp.eq.f32.partialorder %v3864_v30, %v3956_v41  ;;  %vm1044_vm12 = vcmp.eq.f32.partialorder %v3867_v59, %v3958_v47 }
 0x41b   : > { %v1051_v62 = vsel %vm1035_vm11, %v3493_v63, 1e+09  ;;  %v1060_v36 = vsel %vm1044_vm12, %v3493_v63, 1e+09 }
 0x41c   : > { %1071 = vmin.xlane.f32.xlu1 %v1051_v62  ;;  %1089 = vmin.xlane.f32.xlu0 %v1060_v36 }
 0x41d   : > { %v3966_v42 = vpop.xlane.xlu1 %1023  ;;  %v3968_v61 = vpop.xlane.xlu0 %1013 }
 0x41e   : > { %vm1043_vm13 = vcmp.eq.f32.partialorder %v3880_v31, %v3966_v42  ;;  %vm1038_vm14 = vcmp.eq.f32.partialorder %v3883_v43, %v3968_v61 }
 0x41f   : > { %v1059_v18 = vsel %vm1043_vm13, %v3493_v63, 1e+09  ;;  %v1054_v38 = vsel %vm1038_vm14, %v3493_v63, 1e+09 }
 0x420   : > { %1087 = vmin.xlane.f32.xlu1 %v1059_v18  ;;  %1077 = vmin.xlane.f32.xlu0 %v1054_v38 }
 0x421   : > { %v3976_v40 = vpop.xlane.xlu1 %1011  ;;  %v3978_v62 = vpop.xlane.xlu0 %1029 }
 0x422   : > { %6403 = vst [vmem:[#allocation41_spill] sm:$0xff] %v3978_v62  ;;  %vm1037_vm15 = vcmp.eq.f32.partialorder %v3896_v46, %v3976_v40  ;;  %vm1046_vm0 = vcmp.eq.f32.partialorder %v3899_v44, %v3978_v62 }
 0x423   : > { %v1053_v36 = vsel %vm1037_vm15, %v3493_v63, 1e+09  ;;  %v1062_v15 = vsel %vm1046_vm0, %v3493_v63, 1e+09 }
 0x424   : > { %1075 = vmin.xlane.f32.xlu1 %v1053_v36  ;;  %1093 = vmin.xlane.f32.xlu0 %v1062_v15 }
 0x425   : > { %v3986_v25 = vpop.xlane.xlu1 %1027 }
 0x426   : > { %6404 = vst [vmem:[#allocation42_spill] sm:$0xff] %v3986_v25  ;;  %vm1045_vm1 = vcmp.eq.f32.partialorder %v3908_v20, %v3986_v25 }
 0x427   : > { %v1061_v38 = vsel %vm1045_vm1, %v3493_v63, 1e+09 }
 0x428   : > { %1091 = vmin.xlane.f32.xlu1 %v1061_v38 }
 0x491   : > { %v3991_v18 = vpop.xlane.xlu0 %1065 }
 0x492   : > { %6405 = vst [vmem:[#allocation43_spill] sm:$0xff] %v3991_v18  ;;  %vm1096_vm2 = vcmp.eq.f32.partialorder %v3493_v63, %v3991_v18 }
 0x493   : > { %v3996_v62 = vsel %vm1096_vm2, inf, %v3788_v34  ;;  %vm1351_vm2 = vcmask 7168  }
 0x494   : > { %1129 = vmin.xlane.f32.xlu0 %v3996_v62 }
 0x495   : > { %v3999_v36 = vpop.xlane.xlu1 %1063  ;;  %v4001_v15 = vpop.xlane.xlu0 %1081 }
 0x496   : > { %6406 = vst [vmem:[#allocation44_spill] sm:$0xff] %v3999_v36  ;;  %6407 = vst [vmem:[#allocation45_spill] sm:$0xff] %v4001_v15  ;;  %vm1095_vm3 = vcmp.eq.f32.partialorder %v3493_v63, %v3999_v36  ;;  %vm1104_vm4 = vcmp.eq.f32.partialorder %v3493_v63, %v4001_v15 }
 0x497   : > { %v4008_v38 = vsel %vm1095_vm3, inf, %v3800_v5  ;;  %v4011_v25 = vsel %vm1104_vm4, inf, %v3803_v2  ;;  %vm1368_vm3 = vcmask 15360   ;;  %vm1385_vm4 = vcmask 23552  }
 0x498   : > { %1127 = vmin.xlane.f32.xlu1 %v4008_v38  ;;  %1145 = vmin.xlane.f32.xlu0 %v4011_v25 }
 0x499   : > { %v4015_v34 = vpop.xlane.xlu1 %1079  ;;  %v4017_v18 = vpop.xlane.xlu0 %1069 }
 0x49a   : > { %6408 = vst [vmem:[#allocation46_spill] sm:$0xff] %v4015_v34  ;;  %6409 = vst [vmem:[#allocation47_spill] sm:$0xff] %v4017_v18  ;;  %vm1103_vm5 = vcmp.eq.f32.partialorder %v3493_v63, %v4015_v34  ;;  %vm1098_vm6 = vcmp.eq.f32.partialorder %v3493_v63, %v4017_v18 }
 0x49b   : > { %v4024_v5 = vsel %vm1103_vm5, inf, %v3816_v48  ;;  %v4027_v2 = vsel %vm1098_vm6, inf, %v3819_v49 }
 0x49c   : > { %1143 = vmin.xlane.f32.xlu1 %v4024_v5  ;;  %1133 = vmin.xlane.f32.xlu0 %v4027_v2 }
 0x49d   : > { %v4031_v15 = vpop.xlane.xlu0 %1085 }
 0x49e   : > { %6410 = vst [vmem:[#allocation48_spill] sm:$0xff] %v4031_v15  ;;  %vm1106_vm7 = vcmp.eq.f32.partialorder %v3493_v63, %v4031_v15 }
 0x49f   : > { %v4036_v34 = vsel %vm1106_vm7, inf, %v3828_v60 }
 0x4a0   : > { %1149 = vmin.xlane.f32.xlu0 %v4036_v34 }
 0x4a1   : > { %v4039_v18 = vpop.xlane.xlu1 %1067 }
 0x4a2   : > { %6411 = vst [vmem:[#allocation49_spill] sm:$0xff] %v4039_v18  ;;  %vm1097_vm8 = vcmp.eq.f32.partialorder %v3493_v63, %v4039_v18 }
 0x4a3   : > { %v4044_v48 = vsel %vm1097_vm8, inf, %v3836_v19 }
 0x4a4   : > { %1131 = vmin.xlane.f32.xlu1 %v4044_v48 }
 0x4a5   : > { %v4047_v49 = vpop.xlane.xlu1 %1083  ;;  %v4049_v36 = vpop.xlane.xlu0 %1073 }
 0x4a6   : > { %6412 = vst [vmem:[#allocation50_spill] sm:$0xff] %v4047_v49  ;;  %6413 = vst [vmem:[#allocation51_spill] sm:$0xff] %v4049_v36  ;;  %vm1105_vm9 = vcmp.eq.f32.partialorder %v3493_v63, %v4047_v49  ;;  %vm1100_vm10 = vcmp.eq.f32.partialorder %v3493_v63, %v4049_v36 }
 0x4a7   : > { %v4056_v60 = vsel %vm1105_vm9, inf, %v3848_v52  ;;  %v4059_v18 = vsel %vm1100_vm10, inf, %v3851_v29 }
 0x4a8   : > { %1147 = vmin.xlane.f32.xlu1 %v4056_v60  ;;  %1137 = vmin.xlane.f32.xlu0 %v4059_v18 }
 0x4a9   : > { %v4063_v19 = vpop.xlane.xlu1 %1071  ;;  %v4065_v15 = vpop.xlane.xlu0 %1089 }
 0x4aa   : > { %6414 = vst [vmem:[#allocation52_spill] sm:$0xff] %v4063_v19  ;;  %6415 = vst [vmem:[#allocation53_spill] sm:$0xff] %v4065_v15  ;;  %vm1099_vm11 = vcmp.eq.f32.partialorder %v3493_v63, %v4063_v19  ;;  %vm1108_vm12 = vcmp.eq.f32.partialorder %v3493_v63, %v4065_v15 }
 0x4ab   : > { %v4072_v52 = vsel %vm1099_vm11, inf, %v3864_v30  ;;  %v4075_v29 = vsel %vm1108_vm12, inf, %v3867_v59 }
 0x4ac   : > { %1135 = vmin.xlane.f32.xlu1 %v4072_v52  ;;  %1153 = vmin.xlane.f32.xlu0 %v4075_v29 }
 0x4ad   : > { %v4079_v36 = vpop.xlane.xlu1 %1087  ;;  %v4081_v49 = vpop.xlane.xlu0 %1077 }
 0x4ae   : > { %6416 = vst [vmem:[#allocation54_spill] sm:$0xff] %v4079_v36  ;;  %6417 = vst [vmem:[#allocation55_spill] sm:$0xff] %v4081_v49  ;;  %vm1107_vm13 = vcmp.eq.f32.partialorder %v3493_v63, %v4079_v36  ;;  %vm1102_vm14 = vcmp.eq.f32.partialorder %v3493_v63, %v4081_v49  ;;  %v1352_v36 = vsel %vm1351_vm2, %v3506_v4, %v3708_v58 }
 0x4af   : > { %v4088_v30 = vsel %vm1107_vm13, inf, %v3880_v31  ;;  %v4091_v59 = vsel %vm1102_vm14, inf, %v3883_v43 }
 0x4b0   : > { %1151 = vmin.xlane.f32.xlu1 %v4088_v30  ;;  %1141 = vmin.xlane.f32.xlu0 %v4091_v59 }
 0x4b1   : > { %v4095_v15 = vpop.xlane.xlu1 %1075  ;;  %v4097_v19 = vpop.xlane.xlu0 %1093 }
 0x4b2   : > { %6418 = vst [vmem:[#allocation56_spill] sm:$0xff] %v4095_v15  ;;  %6419 = vst [vmem:[#allocation57_spill] sm:$0xff] %v4097_v19  ;;  %vm1101_vm15 = vcmp.eq.f32.partialorder %v3493_v63, %v4095_v15  ;;  %vm1110_vm0 = vcmp.eq.f32.partialorder %v3493_v63, %v4097_v19 }
 0x4b3   : > { %v4104_v31 = vsel %vm1101_vm15, inf, %v3896_v46  ;;  %v4107_v43 = vsel %vm1110_vm0, inf, %v3899_v44  ;;  %v1353_v46 = vsel %vm1351_vm2, %v3497_v1, %v3703_v10  ;;  %v1369_v1 = vsel %vm1368_vm3, %v1352_v36, %v3916_v55 }
 0x4b4   : > { %1139 = vmin.xlane.f32.xlu1 %v4104_v31  ;;  %1157 = vmin.xlane.f32.xlu0 %v4107_v43  ;;  %v1370_v44 = vsel %vm1368_vm3, %v1353_v46, %v3911_v53 }
 0x4b5   : > { %v4111_v49 = vpop.xlane.xlu1 %1091 }
 0x4b6   : > { %6420 = vst [vmem:[#allocation58_spill] sm:$0xff] %v4111_v49  ;;  %vm1109_vm1 = vcmp.eq.f32.partialorder %v3493_v63, %v4111_v49 }
 0x4b7   : > { %v4116_v15 = vsel %vm1109_vm1, inf, %v3908_v20 }
 0x4b8   : > { %6421 = vst [vmem:[#allocation59_spill] sm:$0xff] %v4116_v15  ;;  %1155 = vmin.xlane.f32.xlu1 %v4116_v15  ;;  %v1361_v15 = vsel %vm1351_vm2, %v3495_v0, %v3710_v13  ;;  %v1355_v13 = vsel %vm1351_vm2, %v3516_v8, %v3720_v23 }
 0x4b9   : > { %v1378_v53 = vsel %vm1368_vm3, %v1361_v15, %v3918_v54  ;;  %v1360_v54 = vsel %vm1351_vm2, %v3504_v3, %v3718_v22  ;;  %v1372_v36 = vsel %vm1368_vm3, %v1355_v13, %v3928_v51  ;;  %v1363_v51 = vsel %vm1351_vm2, %v3522_v11, %v3728_v33 }
 0x4ba   : > { %v1377_v55 = vsel %vm1368_vm3, %v1360_v54, %v3926_v32  ;;  %v1380_v32 = vsel %vm1368_vm3, %v1363_v51, %v3936_v50 }
 0x521   : > { %v1130_v19 = vpop.xlane.xlu0 %1129 }
 0x522   : > { %vm1160_vm5 = vcmp.eq.f32.partialorder %v3996_v62, %v1130_v19  ;;  %v4126_v49 = vsel %vm1385_vm4, %v1370_v44, %v1130_v19 }
 0x523   : > { %v1176_v20 = vsel %vm1160_vm5, %v3493_v63, 1e+09 }
 0x524   : > { %1193 = vmin.xlane.f32.xlu0 %v1176_v20 }
 0x525   : > { %v1128_v10 = vpop.xlane.xlu1 %1127  ;;  %v1146_v19 = vpop.xlane.xlu0 %1145 }
 0x526   : > { %vm1159_vm6 = vcmp.eq.f32.partialorder %v4008_v38, %v1128_v10  ;;  %v4141_v46 = vsel %vm1385_vm4, %v1369_v1, %v1128_v10  ;;  %vm1168_vm7 = vcmp.eq.f32.partialorder %v4011_v25, %v1146_v19  ;;  %v4145_v4 = vsel %vm1385_vm4, %v1378_v53, %v1146_v19 }
 0x527   : > { %v1175_v0 = vsel %vm1159_vm6, %v3493_v63, 1e+09  ;;  %v1184_v58 = vsel %vm1168_vm7, %v3493_v63, 1e+09  ;;  %v1354_v10 = vsel %vm1351_vm2, %v3529_v14, %v3733_v37  ;;  %v1357_v14 = vsel %vm1351_vm2, %v3538_v21, %v3740_v56 }
 0x528   : > { %1191 = vmin.xlane.f32.xlu1 %v1175_v0  ;;  %1209 = vmin.xlane.f32.xlu0 %v1184_v58  ;;  %v1371_v11 = vsel %vm1368_vm3, %v1354_v10, %v3941_v9  ;;  %v1362_v0 = vsel %vm1351_vm2, %v3514_v7, %v3738_v39  ;;  %v1374_v9 = vsel %vm1368_vm3, %v1357_v14, %v3948_v45  ;;  %v6425_v14 = vld [vmem:[#allocation7_spill] sm:$0xff] }
 0x529   : > { %v1144_v15 = vpop.xlane.xlu1 %1143  ;;  %v1134_v44 = vpop.xlane.xlu0 %1133  ;;  %v1379_v37 = vsel %vm1368_vm3, %v1362_v0, %v3946_v17  ;;  %v1356_v17 = vsel %vm1351_vm2, %v3526_v12, %v3748_v26  ;;  %v1365_v56 = vsel %vm1351_vm2, %v3546_v24, %v3750_v27  ;;  %v1359_v27 = vsel %vm1351_vm2, %v3556_v28, %v3760_v57  ;;  %v6424_v0 = vld [vmem:[#allocation25_spill] sm:$0xff] }
 0x52a   : > { %vm1167_vm8 = vcmp.eq.f32.partialorder %v4024_v5, %v1144_v15  ;;  %v4161_v20 = vsel %vm1385_vm4, %v1377_v55, %v1144_v15  ;;  %vm1162_vm9 = vcmp.eq.f32.partialorder %v4027_v2, %v1134_v44  ;;  %v4165_v3 = vsel %vm1385_vm4, %v1372_v36, %v1134_v44 }
 0x52b   : > { %v1183_v8 = vsel %vm1167_vm8, %v3493_v63, 1e+09  ;;  %v1178_v22 = vsel %vm1162_vm9, %v3493_v63, 1e+09  ;;  %v1373_v45 = vsel %vm1368_vm3, %v1356_v17, %v3956_v41  ;;  %v1382_v55 = vsel %vm1368_vm3, %v1365_v56, %v3958_v47  ;;  %v6427_v17 = vld [vmem:[#allocation26_spill] sm:$0xff]  ;;  %v6428_v56 = vld [vmem:[#allocation8_spill] sm:$0xff] }
 0x52c   : > { %1207 = vmin.xlane.f32.xlu1 %v1183_v8  ;;  %1197 = vmin.xlane.f32.xlu0 %v1178_v22  ;;  %v1364_v47 = vsel %vm1351_vm2, %v3536_v16, %v3758_v6  ;;  %v1376_v8 = vsel %vm1368_vm3, %v1359_v27, %v3968_v61 }
 0x52d   : > { %v1150_v23 = vpop.xlane.xlu0 %1149  ;;  %v1381_v41 = vsel %vm1368_vm3, %v1364_v47, %v3966_v42  ;;  %v6422_v42 = vld [vmem:[#allocation4_spill] sm:$0xff]  ;;  %v6432_v47 = vld [vmem:[#allocation45_spill] sm:$0xff] }
 0x52e   : > { %vm1170_vm10 = vcmp.eq.f32.partialorder %v4036_v34, %v1150_v23  ;;  %v4176_v1 = vsel %vm1385_vm4, %v1380_v32, %v1150_v23  ;;  %v1358_v57 = vsel %vm1351_vm2, %v6422_v42, %v3768_v35  ;;  %v6434_v42 = vld [vmem:[#allocation10_spill] sm:$0xff] }
 0x52f   : > { %v1186_v53 = vsel %vm1170_vm10, %v3493_v63, 1e+09  ;;  %v1375_v61 = vsel %vm1368_vm3, %v1358_v57, %v3976_v40  ;;  %v6423_v40 = vld [vmem:[#allocation59_spill] sm:$0xff] }
 0x530   : > { %1213 = vmin.xlane.f32.xlu0 %v1186_v53 }
 0x531   : > { %v1132_v33 = vpop.xlane.xlu1 %1131 }
 0x532   : > { %vm1161_vm11 = vcmp.eq.f32.partialorder %v4044_v48, %v1132_v33  ;;  %v4186_v50 = vsel %vm1385_vm4, %v1371_v11, %v1132_v33 }
 0x533   : > { %v1177_v19 = vsel %vm1161_vm11, %v3493_v63, 1e+09 }
 0x534   : > { %1195 = vmin.xlane.f32.xlu1 %v1177_v19 }
 0x535   : > { %v1148_v58 = vpop.xlane.xlu1 %1147  ;;  %v1138_v54 = vpop.xlane.xlu0 %1137 }
 0x536   : > { %vm1169_vm12 = vcmp.eq.f32.partialorder %v4056_v60, %v1148_v58  ;;  %v4201_v13 = vsel %vm1385_vm4, %v1379_v37, %v1148_v58  ;;  %vm1164_vm13 = vcmp.eq.f32.partialorder %v4059_v18, %v1138_v54  ;;  %v4205_v7 = vsel %vm1385_vm4, %v1374_v9, %v1138_v54  ;;  %v6426_v9 = vld [vmem:[#allocation43_spill] sm:$0xff] }
 0x537   : > { %v1185_v21 = vsel %vm1169_vm12, %v3493_v63, 1e+09  ;;  %v1180_v39 = vsel %vm1164_vm13, %v3493_v63, 1e+09  ;;  %v1420_v37 = vsel %vm1351_vm2, %v6425_v14, %v6424_v0 }
 0x538   : > { %1211 = vmin.xlane.f32.xlu1 %v1185_v21  ;;  %1201 = vmin.xlane.f32.xlu0 %v1180_v39  ;;  %v1436_v58 = vsel %vm1368_vm3, %v1420_v37, %v6426_v9 }
 0x539   : > { %v1136_v36 = vpop.xlane.xlu1 %1135  ;;  %v1154_v15 = vpop.xlane.xlu0 %1153 }
 0x53a   : > { %vm1163_vm14 = vcmp.eq.f32.partialorder %v4072_v52, %v1136_v36  ;;  %v4221_v44 = vsel %vm1385_vm4, %v1373_v45, %v1136_v36  ;;  %vm1172_vm15 = vcmp.eq.f32.partialorder %v4075_v29, %v1154_v15  ;;  %v4225_v12 = vsel %vm1385_vm4, %v1382_v55, %v1154_v15  ;;  %v6429_v55 = vld [vmem:[#allocation27_spill] sm:$0xff]  ;;  %v6430_v36 = vld [vmem:[#allocation9_spill] sm:$0xff] }
 0x53b   : > { %v1179_v24 = vsel %vm1163_vm14, %v3493_v63, 1e+09  ;;  %v1188_v26 = vsel %vm1172_vm15, %v3493_v63, 1e+09  ;;  %v1419_v45 = vsel %vm1351_vm2, %v6428_v56, %v6427_v17  ;;  %v1428_v15 = vsel %vm1351_vm2, %v6430_v36, %v6429_v55  ;;  %v6439_v17 = vld [vmem:[#allocation30_spill] sm:$0xff]  ;;  %v6440_v56 = vld [vmem:[#allocation12_spill] sm:$0xff] }
 0x53c   : > { %1199 = vmin.xlane.f32.xlu1 %v1179_v24  ;;  %1217 = vmin.xlane.f32.xlu0 %v1188_v26  ;;  %v6431_v24 = vld [vmem:[#allocation44_spill] sm:$0xff]  ;;  %v1444_v27 = vsel %vm1368_vm3, %v1428_v15, %v6432_v47 }
 0x53d   : > { %v1152_v22 = vpop.xlane.xlu1 %1151  ;;  %v1142_v51 = vpop.xlane.xlu0 %1141  ;;  %v1435_v26 = vsel %vm1368_vm3, %v1419_v45, %v6431_v24  ;;  %v1430_v45 = vsel %vm1351_vm2, %v6440_v56, %v6439_v17  ;;  %v6441_v55 = vld [vmem:[#allocation48_spill] sm:$0xff]  ;;  %v6442_v24 = vld [vmem:[#allocation31_spill] sm:$0xff] }
 0x53e   : > { %vm1171_vm0 = vcmp.eq.f32.partialorder %v4088_v30, %v1152_v22  ;;  %v4241_v32 = vsel %vm1385_vm4, %v1381_v41, %v1152_v22  ;;  %vm1166_vm1 = vcmp.eq.f32.partialorder %v4091_v59, %v1142_v51  ;;  %v4245_v16 = vsel %vm1385_vm4, %v1376_v8, %v1142_v51 }
 0x53f   : > { %v1187_v28 = vsel %vm1171_vm0, %v3493_v63, 1e+09  ;;  %v1182_v6 = vsel %vm1166_vm1, %v3493_v63, 1e+09  ;;  %v1446_v36 = vsel %vm1368_vm3, %v1430_v45, %v6441_v55 }
 0x540   : > { %1215 = vmin.xlane.f32.xlu1 %v1187_v28  ;;  %1205 = vmin.xlane.f32.xlu0 %v1182_v6  ;;  %v6433_v6 = vld [vmem:[#allocation28_spill] sm:$0xff] }
 0x541   : > { %v1140_v23 = vpop.xlane.xlu1 %1139  ;;  %v4254_v53 = vpop.xlane.xlu0 %1157  ;;  %v1427_v57 = vsel %vm1351_vm2, %v6434_v42, %v6433_v6 }
 0x542   : > { %vm1165_vm5 = vcmp.eq.f32.partialorder %v4104_v31, %v1140_v23  ;;  %v4258_v10 = vsel %vm1385_vm4, %v1375_v61, %v1140_v23  ;;  %vm1174_vm6 = vcmp.eq.f32.partialorder %v4107_v43, %v4254_v53  ;;  %v6435_v61 = vld [vmem:[#allocation29_spill] sm:$0xff]  ;;  %v6436_v23 = vld [vmem:[#allocation11_spill] sm:$0xff] }
 0x543   : > { %v1181_v11 = vsel %vm1165_vm5, %v3493_v63, 1e+09  ;;  %v1190_v35 = vsel %vm1174_vm6, %v3493_v63, 1e+09 }
 0x544   : > { %1203 = vmin.xlane.f32.xlu1 %v1181_v11  ;;  %1221 = vmin.xlane.f32.xlu0 %v1190_v35  ;;  %v1422_v11 = vsel %vm1351_vm2, %v6436_v23, %v6435_v61  ;;  %v6437_v35 = vld [vmem:[#allocation46_spill] sm:$0xff]  ;;  %v6447_v23 = vld [vmem:[#allocation33_spill] sm:$0xff] }
 0x545   : > { %v4264_v33 = vpop.xlane.xlu1 %1155 }
 0x546   : > { %vm1173_vm7 = vcmp.eq.f32.partialorder %v6423_v40, %v4264_v33 }
 0x547   : > { %v1189_v19 = vsel %vm1173_vm7, %v3493_v63, 1e+09 }
 0x548   : > { %1219 = vmin.xlane.f32.xlu1 %v1189_v19  ;;  %v1443_v19 = vsel %vm1368_vm3, %v1427_v57, %v6437_v35  ;;  %v6446_v57 = vld [vmem:[#allocation14_spill] sm:$0xff] }
 0x5b1   : > { %v1194_v54 = vpop.xlane.xlu0 %1193 }
 0x5b2   : > { %vm1224_vm8 = vcmp.eq.f32.partialorder %v3493_v63, %v1194_v54  ;;  %v4276_v21 = vsel %vm1385_vm4, %v1436_v58, %v1194_v54 }
 0x5b3   : > { %v4279_v39 = vsel %vm1224_vm8, inf, %v3996_v62 }
 0x5b4   : > { %1257 = vmin.xlane.f32.xlu0 %v4279_v39 }
 0x5b5   : > { %v1192_v41 = vpop.xlane.xlu1 %1191  ;;  %v1210_v8 = vpop.xlane.xlu0 %1209 }
 0x5b6   : > { %vm1223_vm9 = vcmp.eq.f32.partialorder %v3493_v63, %v1192_v41  ;;  %v4294_v62 = vsel %vm1385_vm4, %v1435_v26, %v1192_v41  ;;  %vm1232_vm10 = vcmp.eq.f32.partialorder %v3493_v63, %v1210_v8  ;;  %v4298_v22 = vsel %vm1385_vm4, %v1444_v27, %v1210_v8  ;;  %v6443_v26 = vld [vmem:[#allocation13_spill] sm:$0xff] }
 0x5b7   : > { %v4301_v51 = vsel %vm1223_vm9, inf, %v4008_v38  ;;  %v4304_v28 = vsel %vm1232_vm10, inf, %v4011_v25  ;;  %v6438_v38 = vld [vmem:[#allocation47_spill] sm:$0xff]  ;;  %v1421_v47 = vsel %vm1351_vm2, %v6443_v26, %v6442_v24  ;;  %v6444_v27 = vld [vmem:[#allocation49_spill] sm:$0xff] }
 0x5b8   : > { %1255 = vmin.xlane.f32.xlu1 %v4301_v51  ;;  %1273 = vmin.xlane.f32.xlu0 %v4304_v28  ;;  %v1438_v0 = vsel %vm1368_vm3, %v1422_v11, %v6438_v38  ;;  %v1437_v41 = vsel %vm1368_vm3, %v1421_v47, %v6444_v27  ;;  %v6448_v11 = vld [vmem:[#allocation15_spill] sm:$0xff]  ;;  %v6454_v47 = vld [vmem:[#allocation17_spill] sm:$0xff] }
 0x5b9   : > { %v1208_v25 = vpop.xlane.xlu1 %1207  ;;  %v1198_v14 = vpop.xlane.xlu0 %1197  ;;  %v1424_v35 = vsel %vm1351_vm2, %v6448_v11, %v6447_v23  ;;  %v6453_v26 = vld [vmem:[#allocation35_spill] sm:$0xff] }
 0x5ba   : > { %vm1231_vm11 = vcmp.eq.f32.partialorder %v3493_v63, %v1208_v25  ;;  %v4320_v37 = vsel %vm1385_vm4, %v1443_v19, %v1208_v25  ;;  %vm1226_vm12 = vcmp.eq.f32.partialorder %v3493_v63, %v1198_v14  ;;  %v4324_v9 = vsel %vm1385_vm4, %v1438_v0, %v1198_v14  ;;  %v6449_v19 = vld [vmem:[#allocation50_spill] sm:$0xff]  ;;  %v6450_v0 = vld [vmem:[#allocation51_spill] sm:$0xff] }
 0x5bb   : > { %v4327_v58 = vsel %vm1231_vm11, inf, %v4024_v5  ;;  %v4330_v54 = vsel %vm1226_vm12, inf, %v4027_v2  ;;  %v1440_v25 = vsel %vm1368_vm3, %v1424_v35, %v6450_v0  ;;  %v1432_v27 = vsel %vm1351_vm2, %v6454_v47, %v6453_v26 }
 0x5bc   : > { %1271 = vmin.xlane.f32.xlu1 %v4327_v58  ;;  %1261 = vmin.xlane.f32.xlu0 %v4330_v54  ;;  %vm1402_vm11 = vcmask 31744  }
 0x5bd   : > { %v1214_v15 = vpop.xlane.xlu0 %1213 }
 0x5be   : > { %vm1234_vm13 = vcmp.eq.f32.partialorder %v3493_v63, %v1214_v15  ;;  %v4341_v5 = vsel %vm1385_vm4, %v1446_v36, %v1214_v15  ;;  %v6451_v36 = vld [vmem:[#allocation34_spill] sm:$0xff]  ;;  %v6452_v15 = vld [vmem:[#allocation16_spill] sm:$0xff] }
 0x5bf   : > { %v4344_v2 = vsel %vm1234_vm13, inf, %v4036_v34  ;;  %v6445_v34 = vld [vmem:[#allocation32_spill] sm:$0xff]  ;;  %v1423_v24 = vsel %vm1351_vm2, %v6452_v15, %v6451_v36  ;;  %v6461_v36 = vld [vmem:[#allocation54_spill] sm:$0xff] }
 0x5c0   : > { %1277 = vmin.xlane.f32.xlu0 %v4344_v2  ;;  %v1429_v61 = vsel %vm1351_vm2, %v6446_v57, %v6445_v34 }
 0x5c1   : > { %v1196_v8 = vpop.xlane.xlu1 %1195  ;;  %v1445_v38 = vsel %vm1368_vm3, %v1429_v61, %v6449_v19  ;;  %v6457_v19 = vld [vmem:[#allocation36_spill] sm:$0xff] }
 0x5c2   : > { %vm1225_vm14 = vcmp.eq.f32.partialorder %v3493_v63, %v1196_v8  ;;  %v4354_v6 = vsel %vm1385_vm4, %v1437_v41, %v1196_v8  ;;  %v6455_v41 = vld [vmem:[#allocation52_spill] sm:$0xff] }
 0x5c3   : > { %v4357_v42 = vsel %vm1225_vm14, inf, %v4044_v48  ;;  %v1439_v8 = vsel %vm1368_vm3, %v1423_v24, %v6455_v41 }
 0x5c4   : > { %1259 = vmin.xlane.f32.xlu1 %v4357_v42 }
 0x5c5   : > { %v1212_v14 = vpop.xlane.xlu1 %1211  ;;  %v1202_v17 = vpop.xlane.xlu0 %1201 }
 0x5c6   : > { %vm1233_vm15 = vcmp.eq.f32.partialorder %v3493_v63, %v1212_v14  ;;  %v4372_v48 = vsel %vm1385_vm4, %v1445_v38, %v1212_v14  ;;  %vm1228_vm0 = vcmp.eq.f32.partialorder %v3493_v63, %v1202_v17  ;;  %v4376_v56 = vsel %vm1385_vm4, %v1440_v25, %v1202_v17  ;;  %v6458_v38 = vld [vmem:[#allocation18_spill] sm:$0xff]  ;;  %v6459_v25 = vld [vmem:[#allocation37_spill] sm:$0xff]  ;;  %v6460_v14 = vld [vmem:[#allocation19_spill] sm:$0xff] }
 0x5c7   : > { %v4379_v45 = vsel %vm1233_vm15, inf, %v4056_v60  ;;  %v4382_v55 = vsel %vm1228_vm0, inf, %v4059_v18  ;;  %v6456_v60 = vld [vmem:[#allocation53_spill] sm:$0xff]  ;;  %v1431_v0 = vsel %vm1351_vm2, %v6458_v38, %v6457_v19  ;;  %v1426_v17 = vsel %vm1351_vm2, %v6460_v14, %v6459_v25 }
 0x5c8   : > { %1275 = vmin.xlane.f32.xlu1 %v4379_v45  ;;  %1265 = vmin.xlane.f32.xlu0 %v4382_v55  ;;  %v1448_v34 = vsel %vm1368_vm3, %v1432_v27, %v6456_v60  ;;  %v1447_v15 = vsel %vm1368_vm3, %v1431_v0, %v6461_v36  ;;  %v6463_v60 = vld [vmem:[#allocation38_spill] sm:$0xff] }
 0x5c9   : > { %v1200_v18 = vpop.xlane.xlu1 %1199  ;;  %v1218_v57 = vpop.xlane.xlu0 %1217 }
 0x5ca   : > { %vm1227_vm1 = vcmp.eq.f32.partialorder %v3493_v63, %v1200_v18  ;;  %v4398_v61 = vsel %vm1385_vm4, %v1439_v8, %v1200_v18  ;;  %vm1236_vm5 = vcmp.eq.f32.partialorder %v3493_v63, %v1218_v57  ;;  %v4402_v23 = vsel %vm1385_vm4, %v1448_v34, %v1218_v57  ;;  %v6464_v34 = vld [vmem:[#allocation20_spill] sm:$0xff] }
 0x5cb   : > { %v4405_v11 = vsel %vm1227_vm1, inf, %v4072_v52  ;;  %v4408_v35 = vsel %vm1236_vm5, inf, %v4075_v29  ;;  %v6462_v52 = vld [vmem:[#allocation55_spill] sm:$0xff]  ;;  %v1425_v18 = vsel %vm1351_vm2, %v6464_v34, %v6463_v60  ;;  %v6465_v57 = vld [vmem:[#allocation56_spill] sm:$0xff] }
 0x5cc   : > { %1263 = vmin.xlane.f32.xlu1 %v4405_v11  ;;  %1281 = vmin.xlane.f32.xlu0 %v4408_v35  ;;  %v1442_v24 = vsel %vm1368_vm3, %v1426_v17, %v6462_v52  ;;  %v1441_v19 = vsel %vm1368_vm3, %v1425_v18, %v6465_v57 }
 0x5cd   : > { %v1216_v29 = vpop.xlane.xlu1 %1215  ;;  %v1206_v26 = vpop.xlane.xlu0 %1205 }
 0x5ce   : > { %vm1235_vm6 = vcmp.eq.f32.partialorder %v3493_v63, %v1216_v29  ;;  %v4424_v47 = vsel %vm1385_vm4, %v1447_v15, %v1216_v29  ;;  %vm1230_vm7 = vcmp.eq.f32.partialorder %v3493_v63, %v1206_v26  ;;  %v4428_v27 = vsel %vm1385_vm4, %v1442_v24, %v1206_v26 }
 0x5cf   : > { %v4431_v41 = vsel %vm1235_vm6, inf, %v4088_v30  ;;  %v4434_v8 = vsel %vm1230_vm7, inf, %v4091_v59 }
 0x5d0   : > { %1279 = vmin.xlane.f32.xlu1 %v4431_v41  ;;  %1269 = vmin.xlane.f32.xlu0 %v4434_v8 }
 0x5d1   : > { %v1204_v38 = vpop.xlane.xlu1 %1203  ;;  %v4443_v0 = vpop.xlane.xlu0 %1221 }
 0x5d2   : > { %vm1229_vm8 = vcmp.eq.f32.partialorder %v3493_v63, %v1204_v38  ;;  %v4447_v30 = vsel %vm1385_vm4, %v1441_v19, %v1204_v38  ;;  %vm1238_vm9 = vcmp.eq.f32.partialorder %v3493_v63, %v4443_v0 }
 0x5d3   : > { %v4452_v59 = vsel %vm1229_vm8, inf, %v4104_v31  ;;  %v4455_v25 = vsel %vm1238_vm9, inf, %v4107_v43 }
 0x5d4   : > { %1267 = vmin.xlane.f32.xlu1 %v4452_v59  ;;  %1285 = vmin.xlane.f32.xlu0 %v4455_v25 }
 0x5d5   : > { %v4459_v14 = vpop.xlane.xlu1 %1219 }
 0x5d6   : > { %vm1237_vm10 = vcmp.eq.f32.partialorder %v3493_v63, %v4459_v14 }
 0x5d7   : > { %v4464_v17 = vsel %vm1237_vm10, inf, %v6423_v40 }
 0x5d8   : > { %1283 = vmin.xlane.f32.xlu1 %v4464_v17 }
 0x641   : > { %v1258_v31 = vpop.xlane.xlu0 %1257 }
 0x642   : > { %vm1288_vm12 = vcmp.eq.f32.partialorder %v4279_v39, %v1258_v31  ;;  %v4470_v43 = vsel %vm1402_vm11, %v4126_v49, %v1258_v31 }
 0x643   : > { %v1304_v36 = vsel %vm1288_vm12, %v3493_v63, 1e+09 }
 0x644   : > { %1321 = vmin.xlane.f32.xlu0 %v1304_v36 }
 0x645   : > { %v1256_v15 = vpop.xlane.xlu1 %1255  ;;  %v1274_v52 = vpop.xlane.xlu0 %1273 }
 0x646   : > { %vm1287_vm13 = vcmp.eq.f32.partialorder %v4301_v51, %v1256_v15  ;;  %v4476_v40 = vsel %vm1402_vm11, %v4141_v46, %v1256_v15  ;;  %vm1296_vm14 = vcmp.eq.f32.partialorder %v4304_v28, %v1274_v52  ;;  %v4481_v39 = vsel %vm1402_vm11, %v4145_v4, %v1274_v52 }
 0x647   : > { %v1303_v49 = vsel %vm1287_vm13, %v3493_v63, 1e+09  ;;  %v1312_v24 = vsel %vm1296_vm14, %v3493_v63, 1e+09 }
 0x648   : > { %1319 = vmin.xlane.f32.xlu1 %v1303_v49  ;;  %1337 = vmin.xlane.f32.xlu0 %v1312_v24  ;;  %v6468_v24 = vld [vmem:[#allocation41_spill] sm:$0xff] }
 0x649   : > { %v1272_v29 = vpop.xlane.xlu1 %1271  ;;  %v1262_v26 = vpop.xlane.xlu0 %1261 }
 0x64a   : > { %vm1295_vm15 = vcmp.eq.f32.partialorder %v4327_v58, %v1272_v29  ;;  %v4488_v46 = vsel %vm1402_vm11, %v4161_v20, %v1272_v29  ;;  %vm1290_vm0 = vcmp.eq.f32.partialorder %v4330_v54, %v1262_v26  ;;  %v4493_v4 = vsel %vm1402_vm11, %v4165_v3, %v1262_v26 }
 0x64b   : > { %v1311_v51 = vsel %vm1295_vm15, %v3493_v63, 1e+09  ;;  %v1306_v28 = vsel %vm1290_vm0, %v3493_v63, 1e+09  ;;  %vm1487_vm0 = vcmask (!%p2898_p10), 39936  }
 0x64c   : > { %1335 = vmin.xlane.f32.xlu1 %v1311_v51  ;;  %1325 = vmin.xlane.f32.xlu0 %v1306_v28  ;;  %v6469_v51 = vld [vmem:[#allocation24_spill] sm:$0xff]  ;;  %v6470_v28 = vld [vmem:[#allocation5_spill] sm:$0xff]  ;;  %1488 = vst.msk [vmem:[#allocation2] sm:$0xff] (!%p2898_p10), %vm1487_vm0, %v4476_v40  ;;  %1489 = vst.msk [vmem:[#allocation2 + $0x8] sm:$0xff] (!%p2898_p10), %vm1487_vm0, %v4470_v43 }
 0x64d   : > { %v1278_v60 = vpop.xlane.xlu0 %1277  ;;  %1491 = vst.msk [vmem:[#allocation2 + $0x18] sm:$0xff] (!%p2898_p10), %vm1487_vm0, %v4493_v4  ;;  %1496 = vst.msk [vmem:[#allocation2 + $0x40] sm:$0xff] (!%p2898_p10), %vm1487_vm0, %v4488_v46 }
 0x64e   : > { %vm1298_vm1 = vcmp.eq.f32.partialorder %v4344_v2, %v1278_v60  ;;  %v4500_v58 = vsel %vm1402_vm11, %v4176_v1, %v1278_v60  ;;  %v1366_v60 = vsel %vm1351_vm2, %v6470_v28, %v6469_v51  ;;  %1497 = vst.msk [vmem:[#allocation2 + $0x48] sm:$0xff] (!%p2898_p10), %vm1487_vm0, %v4481_v39 }
 0x64f   : > { %v1314_v20 = vsel %vm1298_vm1, %v3493_v63, 1e+09  ;;  %1499 = vst.msk [vmem:[#allocation2 + $0x58] sm:$0xff] (!%p2898_p10), %vm1487_vm0, %v4500_v58 }
 0x650   : > { %1341 = vmin.xlane.f32.xlu0 %v1314_v20 }
 0x651   : > { %v1260_v54 = vpop.xlane.xlu1 %1259 }
 0x652   : > { %vm1289_vm5 = vcmp.eq.f32.partialorder %v4357_v42, %v1260_v54  ;;  %v4506_v3 = vsel %vm1402_vm11, %v4186_v50, %v1260_v54  ;;  %v6471_v54 = vld [vmem:[#allocation42_spill] sm:$0xff] }
 0x653   : > { %v1305_v34 = vsel %vm1289_vm5, %v3493_v63, 1e+09  ;;  %1490 = vst.msk [vmem:[#allocation2 + $0x10] sm:$0xff] (!%p2898_p10), %vm1487_vm0, %v4506_v3 }
 0x654   : > { %1323 = vmin.xlane.f32.xlu1 %v1305_v34 }
 0x655   : > { %v1276_v18 = vpop.xlane.xlu1 %1275  ;;  %v1266_v57 = vpop.xlane.xlu0 %1265 }
 0x656   : > { %vm1297_vm6 = vcmp.eq.f32.partialorder %v4379_v45, %v1276_v18  ;;  %v4512_v1 = vsel %vm1402_vm11, %v4201_v13, %v1276_v18  ;;  %vm1292_vm7 = vcmp.eq.f32.partialorder %v4382_v55, %v1266_v57  ;;  %v4517_v2 = vsel %vm1402_vm11, %v4205_v7, %v1266_v57 }
 0x657   : > { %v1313_v50 = vsel %vm1297_vm6, %v3493_v63, 1e+09  ;;  %v1308_v42 = vsel %vm1292_vm7, %v3493_v63, 1e+09  ;;  %1493 = vst.msk [vmem:[#allocation2 + $0x28] sm:$0xff] (!%p2898_p10), %vm1487_vm0, %v4517_v2  ;;  %1498 = vst.msk [vmem:[#allocation2 + $0x50] sm:$0xff] (!%p2898_p10), %vm1487_vm0, %v4512_v1 }
 0x658   : > { %1339 = vmin.xlane.f32.xlu1 %v1313_v50  ;;  %1329 = vmin.xlane.f32.xlu0 %v1308_v42 }
 0x659   : > { %v1264_v19 = vpop.xlane.xlu1 %1263  ;;  %v1282_v38 = vpop.xlane.xlu0 %1281 }
 0x65a   : > { %vm1291_vm8 = vcmp.eq.f32.partialorder %v4405_v11, %v1264_v19  ;;  %v4524_v13 = vsel %vm1402_vm11, %v4221_v44, %v1264_v19  ;;  %vm1300_vm9 = vcmp.eq.f32.partialorder %v4408_v35, %v1282_v38  ;;  %v4529_v7 = vsel %vm1402_vm11, %v4225_v12, %v1282_v38  ;;  %v6466_v11 = vld [vmem:[#allocation23_spill] sm:$0xff]  ;;  %v6467_v35 = vld [vmem:[#allocation6_spill] sm:$0xff] }
 0x65b   : > { %v1307_v45 = vsel %vm1291_vm8, %v3493_v63, 1e+09  ;;  %v1316_v55 = vsel %vm1300_vm9, %v3493_v63, 1e+09  ;;  %v1367_v15 = vsel %vm1351_vm2, %v6467_v35, %v6466_v11  ;;  %1492 = vst.msk [vmem:[#allocation2 + $0x20] sm:$0xff] (!%p2898_p10), %vm1487_vm0, %v4524_v13  ;;  %1501 = vst.msk [vmem:[#allocation2 + $0x68] sm:$0xff] (!%p2898_p10), %vm1487_vm0, %v4529_v7 }
 0x65c   : > { %1327 = vmin.xlane.f32.xlu1 %v1307_v45  ;;  %1345 = vmin.xlane.f32.xlu0 %v1316_v55 }
 0x65d   : > { %v1280_v31 = vpop.xlane.xlu1 %1279  ;;  %v1270_v36 = vpop.xlane.xlu0 %1269 }
 0x65e   : > { %vm1299_vm10 = vcmp.eq.f32.partialorder %v4431_v41, %v1280_v31  ;;  %v4536_v44 = vsel %vm1402_vm11, %v4241_v32, %v1280_v31  ;;  %vm1294_vm12 = vcmp.eq.f32.partialorder %v4434_v8, %v1270_v36  ;;  %v4541_v12 = vsel %vm1402_vm11, %v4245_v16, %v1270_v36 }
 0x65f   : > { %v1315_v52 = vsel %vm1299_vm10, %v3493_v63, 1e+09  ;;  %v1310_v49 = vsel %vm1294_vm12, %v3493_v63, 1e+09  ;;  %v1384_v41 = vsel %vm1368_vm3, %v1367_v15, %v6468_v24  ;;  %v6472_v24 = vld [vmem:[#allocation39_spill] sm:$0xff]  ;;  %1495 = vst.msk [vmem:[#allocation2 + $0x38] sm:$0xff] (!%p2898_p10), %vm1487_vm0, %v4541_v12 }
 0x660   : > { %1343 = vmin.xlane.f32.xlu1 %v1315_v52  ;;  %1333 = vmin.xlane.f32.xlu0 %v1310_v49  ;;  %v1401_v32 = vsel %vm1385_vm4, %v1384_v41, %v4254_v53  ;;  %v6473_v41 = vld [vmem:[#allocation21_spill] sm:$0xff]  ;;  %1500 = vst.msk [vmem:[#allocation2 + $0x60] sm:$0xff] (!%p2898_p10), %vm1487_vm0, %v4536_v44 }
 0x661   : > { %v1268_v8 = vpop.xlane.xlu1 %1267  ;;  %v1286_v29 = vpop.xlane.xlu0 %1285 }
 0x662   : > { %vm1293_vm13 = vcmp.eq.f32.partialorder %v4452_v59, %v1268_v8  ;;  %v4555_v16 = vsel %vm1402_vm11, %v4258_v10, %v1268_v8  ;;  %vm1302_vm14 = vcmp.eq.f32.partialorder %v4455_v25, %v1286_v29  ;;  %v4559_v26 = vsel %vm1402_vm11, %v1401_v32, %v1286_v29 }
 0x663   : > { %v1309_v20 = vsel %vm1293_vm13, %v3493_v63, 1e+09  ;;  %v1318_v53 = vsel %vm1302_vm14, %v3493_v63, 1e+09  ;;  %v1383_v59 = vsel %vm1368_vm3, %v1366_v60, %v6471_v54  ;;  %v1434_v32 = vsel %vm1351_vm2, %v6473_v41, %v6472_v24  ;;  %v6476_v60 = vld [vmem:[#allocation22_spill] sm:$0xff]  ;;  %1494 = vst.msk [vmem:[#allocation2 + $0x30] sm:$0xff] (!%p2898_p10), %vm1487_vm0, %v4555_v16 }
 0x664   : > { %1331 = vmin.xlane.f32.xlu1 %v1309_v20  ;;  %1349 = vmin.xlane.f32.xlu0 %v1318_v53  ;;  %v1400_v10 = vsel %vm1385_vm4, %v1383_v59, %v4264_v33  ;;  %v6477_v53 = vld [vmem:[#allocation58_spill] sm:$0xff]  ;;  %1503 = vst.msk [vmem:[#allocation2 + $0x78] sm:$0xff] (!%p2898_p10), %vm1487_vm0, %v4559_v26 }
 0x665   : > { %v1284_v25 = vpop.xlane.xlu1 %1283 }
 0x666   : > { %vm1301_vm15 = vcmp.eq.f32.partialorder %v4464_v17, %v1284_v25  ;;  %v4572_v34 = vsel %vm1402_vm11, %v1400_v10, %v1284_v25 }
 0x667   : > { %v1317_v18 = vsel %vm1301_vm15, %v3493_v63, 1e+09  ;;  %1502 = vst.msk [vmem:[#allocation2 + $0x70] sm:$0xff] (!%p2898_p10), %vm1487_vm0, %v4572_v34 }
 0x668   : > { %1347 = vmin.xlane.f32.xlu1 %v1317_v18 }
 0x6d1   : > { %v1322_v57 = vpop.xlane.xlu0 %1321 }
 0x6d2   : > { %v4577_v50 = vsel %vm1402_vm11, %v4276_v21, %v1322_v57 }
 0x6d3   : > { %1505 = vst.msk [vmem:[#allocation3 + $0x8] sm:$0xff] (!%p2898_p10), %vm1487_vm0, %v4577_v50 }
 0x6d5   : > { %v1320_v42 = vpop.xlane.xlu1 %1319  ;;  %v1338_v19 = vpop.xlane.xlu0 %1337 }
 0x6d6   : > { %v4581_v38 = vsel %vm1402_vm11, %v4294_v62, %v1320_v42  ;;  %v4585_v33 = vsel %vm1402_vm11, %v4298_v22, %v1338_v19 }
 0x6d7   : > { %1504 = vst.msk [vmem:[#allocation3] sm:$0xff] (!%p2898_p10), %vm1487_vm0, %v4581_v38  ;;  %1513 = vst.msk [vmem:[#allocation3 + $0x48] sm:$0xff] (!%p2898_p10), %vm1487_vm0, %v4585_v33 }
 0x6d9   : > { %v1336_v17 = vpop.xlane.xlu1 %1335  ;;  %v1326_v45 = vpop.xlane.xlu0 %1325 }
 0x6da   : > { %v4589_v63 = vsel %vm1402_vm11, %v4320_v37, %v1336_v17  ;;  %v4593_v21 = vsel %vm1402_vm11, %v4324_v9, %v1326_v45 }
 0x6db   : > { %1507 = vst.msk [vmem:[#allocation3 + $0x18] sm:$0xff] (!%p2898_p10), %vm1487_vm0, %v4593_v21  ;;  %1512 = vst.msk [vmem:[#allocation3 + $0x40] sm:$0xff] (!%p2898_p10), %vm1487_vm0, %v4589_v63 }
 0x6dd   : > { %v1342_v55 = vpop.xlane.xlu0 %1341 }
 0x6de   : > { %v4597_v31 = vsel %vm1402_vm11, %v4341_v5, %v1342_v55 }
 0x6df   : > { %1515 = vst.msk [vmem:[#allocation3 + $0x58] sm:$0xff] (!%p2898_p10), %vm1487_vm0, %v4597_v31 }
 0x6e1   : > { %v1324_v62 = vpop.xlane.xlu1 %1323 }
 0x6e2   : > { %v4601_v22 = vsel %vm1402_vm11, %v4354_v6, %v1324_v62 }
 0x6e3   : > { %1506 = vst.msk [vmem:[#allocation3 + $0x10] sm:$0xff] (!%p2898_p10), %vm1487_vm0, %v4601_v22 }
 0x6e5   : > { %v1340_v36 = vpop.xlane.xlu1 %1339  ;;  %v1330_v11 = vpop.xlane.xlu0 %1329 }
 0x6e6   : > { %v4605_v37 = vsel %vm1402_vm11, %v4372_v48, %v1340_v36  ;;  %v4609_v9 = vsel %vm1402_vm11, %v4376_v56, %v1330_v11 }
 0x6e7   : > { %1509 = vst.msk [vmem:[#allocation3 + $0x28] sm:$0xff] (!%p2898_p10), %vm1487_vm0, %v4609_v9  ;;  %1514 = vst.msk [vmem:[#allocation3 + $0x50] sm:$0xff] (!%p2898_p10), %vm1487_vm0, %v4605_v37 }
 0x6e9   : > { %v1328_v35 = vpop.xlane.xlu1 %1327  ;;  %v1346_v15 = vpop.xlane.xlu0 %1345 }
 0x6ea   : > { %v4613_v5 = vsel %vm1402_vm11, %v4398_v61, %v1328_v35  ;;  %v4617_v6 = vsel %vm1402_vm11, %v4402_v23, %v1346_v15  ;;  %v6474_v61 = vld [vmem:[#allocation57_spill] sm:$0xff] }
 0x6eb   : > { %v1450_v8 = vsel %vm1368_vm3, %v1434_v32, %v6474_v61  ;;  %1508 = vst.msk [vmem:[#allocation3 + $0x20] sm:$0xff] (!%p2898_p10), %vm1487_vm0, %v4613_v5  ;;  %1517 = vst.msk [vmem:[#allocation3 + $0x68] sm:$0xff] (!%p2898_p10), %vm1487_vm0, %v4617_v6 }
 0x6ec   : > { %v1466_v23 = vsel %vm1385_vm4, %v1450_v8, %v4443_v0 }
 0x6ed   : > { %v1344_v52 = vpop.xlane.xlu1 %1343  ;;  %v1334_v49 = vpop.xlane.xlu0 %1333 }
 0x6ee   : > { %v4621_v48 = vsel %vm1402_vm11, %v4424_v47, %v1344_v52  ;;  %v4625_v56 = vsel %vm1402_vm11, %v4428_v27, %v1334_v49  ;;  %v6475_v27 = vld [vmem:[#allocation40_spill] sm:$0xff] }
 0x6ef   : > { %v1433_v20 = vsel %vm1351_vm2, %v6476_v60, %v6475_v27  ;;  %1511 = vst.msk [vmem:[#allocation3 + $0x38] sm:$0xff] (!%p2898_p10), %vm1487_vm0, %v4625_v56  ;;  %1516 = vst.msk [vmem:[#allocation3 + $0x60] sm:$0xff] (!%p2898_p10), %vm1487_vm0, %v4621_v48 }
 0x6f0   : > { %v1449_v54 = vsel %vm1368_vm3, %v1433_v20, %v6477_v53  ;;  %1486 = sbr.rel (%p2898_p10) target bundleno = 1784 (0x6f8), region = 40 }
 0x6f1   : > { %v1332_v29 = vpop.xlane.xlu1 %1331  ;;  %v1350_v51 = vpop.xlane.xlu0 %1349  ;;  %v1465_v59 = vsel %vm1385_vm4, %v1449_v54, %v4459_v14 }
 0x6f2   : > { %v4636_v47 = vsel %vm1402_vm11, %v4447_v30, %v1332_v29  ;;  %v4639_v28 = vsel %vm1402_vm11, %v1466_v23, %v1350_v51 }
 0x6f3   : > { %1510 = vst.msk [vmem:[#allocation3 + $0x30] sm:$0xff] (!%p2898_p10), %vm1487_vm0, %v4636_v47  ;;  %1519 = vst.msk [vmem:[#allocation3 + $0x78] sm:$0xff] (!%p2898_p10), %vm1487_vm0, %v4639_v28 }
 0x6f5   : > { %v1348_v0 = vpop.xlane.xlu1 %1347 }
 0x6f6   : > { %v4649_v10 = vsel %vm1402_vm11, %v1465_v59, %v1348_v0 }
 0x6f7   : > { %1518 = vst.msk [vmem:[#allocation3 + $0x70] sm:$0xff] %vm1487_vm0, %v4649_v10 }
 0x6f8 PF: > { %p2899_p11 = scmp.le.s32.totalorder %s3177_s15, 0 }
 0x6fa   : > { %1523 = sbr.rel (%p2899_p11) target bundleno = 3412 (0xd54), region = 44 }
 0x701   : > { %s3204_s7 = smov 5   ;;  %vm1604_vm1 = vcmask 39936   ;;  %v1524_v30 = vld [vmem:[#allocation2] sm:$0xff]  ;;  %v1526_v14 = vld [vmem:[#allocation2 + $0x10] sm:$0xff]  ;;  %vm1717_vm5 = vcmask 80896   ;;  %v1533_v11 = vld [vmem:[#allocation2 + $0x48] sm:$0xff] }
 0x702   : > { %1556 = vrot.lane.b32.xlu0 %v4476_v40, %s3204_s7  ;;  %1560 = vrot.lane.b32.xlu1 %v4506_v3, %s3204_s7  ;;  %v1527_v3 = vld [vmem:[#allocation2 + $0x18] sm:$0xff]  ;;  %v1530_v19 = vld [vmem:[#allocation2 + $0x30] sm:$0xff]  ;;  %v1532_v36 = vld [vmem:[#allocation2 + $0x40] sm:$0xff] }
 0x703   : > { %v1534_v24 = vld [vmem:[#allocation2 + $0x50] sm:$0xff]  ;;  %v1535_v41 = vld [vmem:[#allocation2 + $0x58] sm:$0xff]  ;;  %v1536_v27 = vld [vmem:[#allocation2 + $0x60] sm:$0xff] }
 0x704   : > { %v1537_v60 = vld [vmem:[#allocation2 + $0x68] sm:$0xff] }
 0x706   : > { %1558 = vrot.lane.b32.xlu0 %v4470_v43, %s3204_s7  ;;  %1562 = vrot.lane.b32.xlu1 %v4493_v4, %s3204_s7 }
 0x70a   : > { %1564 = vrot.lane.b32.xlu0 %v4524_v13, %s3204_s7  ;;  %1566 = vrot.lane.b32.xlu1 %v4517_v2, %s3204_s7 }
 0x70e   : > { %1568 = vrot.lane.b32.xlu0 %v4555_v16, %s3204_s7  ;;  %1570 = vrot.lane.b32.xlu1 %v4541_v12, %s3204_s7  ;;  %v1528_v16 = vld [vmem:[#allocation2 + $0x20] sm:$0xff] }
 0x712   : > { %1572 = vrot.lane.b32.xlu0 %v4488_v46, %s3204_s7  ;;  %1574 = vrot.lane.b32.xlu1 %v4481_v39, %s3204_s7 }
 0x716   : > { %1576 = vrot.lane.b32.xlu0 %v4512_v1, %s3204_s7  ;;  %1578 = vrot.lane.b32.xlu1 %v4500_v58, %s3204_s7  ;;  %v1525_v58 = vld [vmem:[#allocation2 + $0x8] sm:$0xff] }
 0x71a   : > { %1580 = vrot.lane.b32.xlu0 %v4536_v44, %s3204_s7  ;;  %1582 = vrot.lane.b32.xlu1 %v4529_v7, %s3204_s7 }
 0x71e   : > { %1584 = vrot.lane.b32.xlu0 %v4572_v34, %s3204_s7  ;;  %1586 = vrot.lane.b32.xlu1 %v4559_v26, %s3204_s7  ;;  %v1529_v26 = vld [vmem:[#allocation2 + $0x28] sm:$0xff] }
 0x722   : > { %1653 = vrot.lane.b32.xlu1 %v4581_v38, %s3204_s7  ;;  %1655 = vrot.lane.b32.xlu0 %v4577_v50, %s3204_s7  ;;  %v1531_v38 = vld [vmem:[#allocation2 + $0x38] sm:$0xff] }
 0x726   : > { %1657 = vrot.lane.b32.xlu1 %v4601_v22, %s3204_s7  ;;  %1661 = vrot.lane.b32.xlu0 %v4613_v5, %s3204_s7 }
 0x72a   : > { %1659 = vrot.lane.b32.xlu1 %v4593_v21, %s3204_s7 }
 0x72e   : > { %1663 = vrot.lane.b32.xlu1 %v4609_v9, %s3204_s7 }
 0x774   : > { %v1557_v43 = vpop.permute.xlu0 %1556  ;;  %v1561_v40 = vpop.permute.xlu1 %1560 }
 0x775   : > { %v4762_v39 = vsel %vm1604_vm1, %v1524_v30, %v1557_v43  ;;  %v4765_v46 = vsel %vm1604_vm1, %v1526_v14, %v1561_v40  ;;  %v1538_v14 = vld [vmem:[#allocation2 + $0x70] sm:$0xff]  ;;  %v1539_v43 = vld [vmem:[#allocation2 + $0x78] sm:$0xff] }
 0x776   : > { %v1718_v4 = vsel %vm1717_vm5, %v4762_v39, inf  ;;  %v1724_v2 = vsel %vm1717_vm5, %v4765_v46, inf }
 0x777   : > { %1719 = vmin.xlane.f32.xlu0 %v1718_v4 }
 0x778   : > { %v1559_v1 = vpop.permute.xlu0 %1558  ;;  %v1563_v13 = vpop.permute.xlu1 %1562 }
 0x779   : > { %v4772_v7 = vsel %vm1604_vm1, %v1525_v58, %v1559_v1  ;;  %v4775_v44 = vsel %vm1604_vm1, %v1527_v3, %v1563_v13 }
 0x77a   : > { %v1721_v12 = vsel %vm1717_vm5, %v4772_v7, inf  ;;  %v1727_v34 = vsel %vm1717_vm5, %v4775_v44, inf }
 0x77b   : > { %1722 = vmin.xlane.f32.xlu1 %v1721_v12  ;;  %1725 = vmin.xlane.f32.xlu0 %v1724_v2  ;;  %v1621_v12 = vld [vmem:[#allocation3] sm:$0xff] }
 0x77c   : > { %v1565_v25 = vpop.permute.xlu0 %1564  ;;  %v1567_v18 = vpop.permute.xlu1 %1566 }
 0x77d   : > { %v4782_v57 = vsel %vm1604_vm1, %v1528_v16, %v1565_v25  ;;  %v4785_v50 = vsel %vm1604_vm1, %v1529_v26, %v1567_v18 }
 0x77e   : > { %v1730_v42 = vsel %vm1717_vm5, %v4782_v57, inf  ;;  %v1733_v45 = vsel %vm1717_vm5, %v4785_v50, inf }
 0x77f   : > { %1731 = vmin.xlane.f32.xlu1 %v1730_v42  ;;  %1728 = vmin.xlane.f32.xlu0 %v1727_v34 }
 0x780   : > { %v1569_v17 = vpop.permute.xlu0 %1568  ;;  %v1571_v21 = vpop.permute.xlu1 %1570 }
 0x781   : > { %v4792_v55 = vsel %vm1604_vm1, %v1530_v19, %v1569_v17  ;;  %v4795_v62 = vsel %vm1604_vm1, %v1531_v38, %v1571_v21  ;;  %v1624_v19 = vld [vmem:[#allocation3 + $0x18] sm:$0xff]  ;;  %v1625_v38 = vld [vmem:[#allocation3 + $0x20] sm:$0xff] }
 0x782   : > { %v1736_v22 = vsel %vm1717_vm5, %v4792_v55, inf  ;;  %v1739_v35 = vsel %vm1717_vm5, %v4795_v62, inf }
 0x783   : > { %1737 = vmin.xlane.f32.xlu1 %v1736_v22  ;;  %1734 = vmin.xlane.f32.xlu0 %v1733_v45 }
 0x784   : > { %v1573_v9 = vpop.permute.xlu0 %1572  ;;  %v1575_v15 = vpop.permute.xlu1 %1574 }
 0x785   : > { %v4802_v5 = vsel %vm1604_vm1, %v1532_v36, %v1573_v9  ;;  %v4805_v52 = vsel %vm1604_vm1, %v1533_v11, %v1575_v15  ;;  %v1626_v15 = vld [vmem:[#allocation3 + $0x28] sm:$0xff] }
 0x786   : > { %v1742_v49 = vsel %vm1717_vm5, %v4802_v5, inf  ;;  %v1745_v61 = vsel %vm1717_vm5, %v4805_v52, inf }
 0x787   : > { %1743 = vmin.xlane.f32.xlu1 %v1742_v49  ;;  %1740 = vmin.xlane.f32.xlu0 %v1739_v35 }
 0x788   : > { %v1577_v32 = vpop.permute.xlu0 %1576  ;;  %v1579_v8 = vpop.permute.xlu1 %1578 }
 0x789   : > { %v4812_v23 = vsel %vm1604_vm1, %v1534_v24, %v1577_v32  ;;  %v4815_v29 = vsel %vm1604_vm1, %v1535_v41, %v1579_v8 }
 0x78a   : > { %v1748_v51 = vsel %vm1717_vm5, %v4812_v23, inf  ;;  %v1751_v53 = vsel %vm1717_vm5, %v4815_v29, inf }
 0x78b   : > { %1749 = vmin.xlane.f32.xlu1 %v1748_v51  ;;  %1746 = vmin.xlane.f32.xlu0 %v1745_v61 }
 0x78c   : > { %v1581_v20 = vpop.permute.xlu0 %1580  ;;  %v1583_v54 = vpop.permute.xlu1 %1582 }
 0x78d   : > { %v4822_v59 = vsel %vm1604_vm1, %v1536_v27, %v1581_v20  ;;  %v4825_v0 = vsel %vm1604_vm1, %v1537_v60, %v1583_v54 }
 0x78e   : > { %v1754_v30 = vsel %vm1717_vm5, %v4822_v59, inf  ;;  %v1757_v4 = vsel %vm1717_vm5, %v4825_v0, inf }
 0x78f   : > { %1755 = vmin.xlane.f32.xlu1 %v1754_v30  ;;  %1752 = vmin.xlane.f32.xlu0 %v1751_v53 }
 0x790   : > { %v1585_v40 = vpop.permute.xlu0 %1584  ;;  %v1587_v58 = vpop.permute.xlu1 %1586 }
 0x791   : > { %v4832_v3 = vsel %vm1604_vm1, %v1538_v14, %v1585_v40  ;;  %v4835_v1 = vsel %vm1604_vm1, %v1539_v43, %v1587_v58  ;;  %v1628_v58 = vld [vmem:[#allocation3 + $0x38] sm:$0xff] }
 0x792   : > { %v1760_v2 = vsel %vm1717_vm5, %v4832_v3, inf  ;;  %v1763_v13 = vsel %vm1717_vm5, %v4835_v1, inf }
 0x793   : > { %1761 = vmin.xlane.f32.xlu1 %v1760_v2  ;;  %1758 = vmin.xlane.f32.xlu0 %v1757_v4 }
 0x797   : > { %1764 = vmin.xlane.f32.xlu0 %v1763_v13 }
 0x7a4   : > { %1667 = vrot.lane.b32.xlu1 %v4625_v56, %s3204_s7  ;;  %v1656_v56 = vpop.permute.xlu0 %1655 }
 0x7a8   : > { %1671 = vrot.lane.b32.xlu1 %v4585_v33, %s3204_s7  ;;  %v1654_v33 = vpop.permute.xlu1 %1653 }
 0x7ac   : > { %1675 = vrot.lane.b32.xlu1 %v4597_v31, %s3204_s7  ;;  %v1658_v31 = vpop.permute.xlu1 %1657 }
 0x7ad   : > { %1665 = vrot.lane.b32.xlu0 %v4636_v47, %s3204_s7 }
 0x7b0   : > { %1679 = vrot.lane.b32.xlu1 %v4617_v6, %s3204_s7  ;;  %v1660_v47 = vpop.permute.xlu1 %1659  ;;  %v1662_v6 = vpop.permute.xlu0 %1661 }
 0x7b1   : > { %1669 = vrot.lane.b32.xlu0 %v4589_v63, %s3204_s7  ;;  %v4893_v9 = vsel %vm1604_vm1, %v1624_v19, %v1660_v47  ;;  %v4896_v35 = vsel %vm1604_vm1, %v1625_v38, %v1662_v6  ;;  %v1627_v47 = vld [vmem:[#allocation3 + $0x30] sm:$0xff]  ;;  %v1629_v38 = vld [vmem:[#allocation3 + $0x40] sm:$0xff] }
 0x7b4   : > { %1683 = vrot.lane.b32.xlu1 %v4639_v28, %s3204_s7  ;;  %v1664_v16 = vpop.permute.xlu1 %1663  ;;  %v4864_v28 = vsel %vm1604_vm1, %v1621_v12, %v1654_v33 }
 0x7b5   : > { %1673 = vrot.lane.b32.xlu0 %v4605_v37, %s3204_s7  ;;  %v1623_v37 = vld [vmem:[#allocation3 + $0x10] sm:$0xff]  ;;  %v4911_v51 = vsel %vm1604_vm1, %v1626_v15, %v1664_v16 }
 0x7b6   : > { %v4875_v18 = vsel %vm1604_vm1, %v1623_v37, %v1658_v31  ;;  %v1630_v31 = vld [vmem:[#allocation3 + $0x48] sm:$0xff] }
 0x7b9   : > { %1677 = vrot.lane.b32.xlu0 %v4621_v48, %s3204_s7  ;;  %v1622_v48 = vld [vmem:[#allocation3 + $0x8] sm:$0xff] }
 0x7ba   : > { %v4878_v42 = vsel %vm1604_vm1, %v1622_v48, %v1656_v56 }
 0x7bd   : > { %1681 = vrot.lane.b32.xlu0 %v4649_v10, %s3204_s7 }
 0x804   : > { %v4861_v63 = vpop.xlane.xlu0 %1719 }
 0x805   : > { %vm1766_vm6 = vcmp.eq.f32.partialorder %v4762_v39, %v4861_v63 }
 0x806   : > { %v1782_v26 = vsel %vm1766_vm6, %v4864_v28, 1e+09 }
 0x807   : > { %v1798_v10 = vsel %vm1717_vm5, %v1782_v26, inf  ;;  %v1632_v26 = vld [vmem:[#allocation3 + $0x58] sm:$0xff] }
 0x808   : > { %v4870_v25 = vpop.xlane.xlu1 %1722  ;;  %1799 = vmin.xlane.f32.xlu0 %v1798_v10  ;;  %v4872_v34 = vpop.xlane.xlu0 %1725 }
 0x809   : > { %vm1767_vm7 = vcmp.eq.f32.partialorder %v4772_v7, %v4870_v25  ;;  %vm1768_vm8 = vcmp.eq.f32.partialorder %v4765_v46, %v4872_v34 }
 0x80a   : > { %v1783_v17 = vsel %vm1767_vm7, %v4878_v42, 1e+09  ;;  %v1784_v45 = vsel %vm1768_vm8, %v4875_v18, 1e+09 }
 0x80b   : > { %v1801_v21 = vsel %vm1717_vm5, %v1783_v17, inf  ;;  %v1804_v22 = vsel %vm1717_vm5, %v1784_v45, inf }
 0x80c   : > { %1802 = vmin.xlane.f32.xlu1 %v1801_v21  ;;  %v4888_v36 = vpop.xlane.xlu1 %1731  ;;  %1805 = vmin.xlane.f32.xlu0 %v1804_v22  ;;  %v4890_v11 = vpop.xlane.xlu0 %1728 }
 0x80d   : > { %vm1770_vm9 = vcmp.eq.f32.partialorder %v4782_v57, %v4888_v36  ;;  %vm1769_vm10 = vcmp.eq.f32.partialorder %v4775_v44, %v4890_v11 }
 0x80e   : > { %v1786_v49 = vsel %vm1770_vm9, %v4896_v35, 1e+09  ;;  %v1785_v24 = vsel %vm1769_vm10, %v4893_v9, 1e+09 }
 0x80f   : > { %v1810_v41 = vsel %vm1717_vm5, %v1786_v49, inf  ;;  %v1807_v32 = vsel %vm1717_vm5, %v1785_v24, inf  ;;  %v1634_v24 = vld [vmem:[#allocation3 + $0x68] sm:$0xff] }
 0x810   : > { %1811 = vmin.xlane.f32.xlu1 %v1810_v41  ;;  %v4906_v61 = vpop.xlane.xlu1 %1737  ;;  %1808 = vmin.xlane.f32.xlu0 %v1807_v32  ;;  %v4908_v8 = vpop.xlane.xlu0 %1734 }
 0x811   : > { %vm1771_vm12 = vcmp.eq.f32.partialorder %v4785_v50, %v4908_v8  ;;  %vm1772_vm15 = vcmp.eq.f32.partialorder %v4792_v55, %v4906_v61 }
 0x812   : > { %v1787_v27 = vsel %vm1771_vm12, %v4911_v51, 1e+09 }
 0x813   : > { %v1813_v60 = vsel %vm1717_vm5, %v1787_v27, inf  ;;  %v1631_v27 = vld [vmem:[#allocation3 + $0x50] sm:$0xff] }
 0x814   : > { %v4917_v20 = vpop.xlane.xlu1 %1743  ;;  %1814 = vmin.xlane.f32.xlu0 %v1813_v60  ;;  %v4919_v53 = vpop.xlane.xlu0 %1740 }
 0x815   : > { %6478 = vst [vmem:[#allocation60_spill] sm:$0xff] %v4917_v20  ;;  %vm1773_vm13 = vcmp.eq.f32.partialorder %v4795_v62, %v4919_v53  ;;  %vm1774_vm6 = vcmp.eq.f32.partialorder %v4802_v5, %v4917_v20 }
 0x818   : > { %v4921_v54 = vpop.xlane.xlu1 %1749  ;;  %v4923_v30 = vpop.xlane.xlu0 %1746 }
 0x819   : > { %6479 = vst [vmem:[#allocation61_spill] sm:$0xff] %v4921_v54  ;;  %6480 = vst [vmem:[#allocation62_spill] sm:$0xff] %v4923_v30  ;;  %vm1775_vm14 = vcmp.eq.f32.partialorder %v4805_v52, %v4923_v30  ;;  %vm1776_vm8 = vcmp.eq.f32.partialorder %v4812_v23, %v4921_v54 }
 0x81c   : > { %v4925_v14 = vpop.xlane.xlu1 %1755  ;;  %v4927_v43 = vpop.xlane.xlu0 %1752 }
 0x81d   : > { %6481 = vst [vmem:[#allocation63_spill] sm:$0xff] %v4925_v14  ;;  %6482 = vst [vmem:[#allocation64_spill] sm:$0xff] %v4927_v43  ;;  %vm1777_vm0 = vcmp.eq.f32.partialorder %v4815_v29, %v4927_v43  ;;  %vm1778_vm10 = vcmp.eq.f32.partialorder %v4822_v59, %v4925_v14 }
 0x820   : > { %v4929_v40 = vpop.xlane.xlu1 %1761  ;;  %v4931_v4 = vpop.xlane.xlu0 %1758 }
 0x821   : > { %6483 = vst [vmem:[#allocation65_spill] sm:$0xff] %v4929_v40  ;;  %6484 = vst [vmem:[#allocation66_spill] sm:$0xff] %v4931_v4  ;;  %vm1779_vm7 = vcmp.eq.f32.partialorder %v4825_v0, %v4931_v4  ;;  %vm1780_vm12 = vcmp.eq.f32.partialorder %v4832_v3, %v4929_v40 }
 0x824   : > { %v1668_v2 = vpop.permute.xlu1 %1667  ;;  %v4933_v13 = vpop.xlane.xlu0 %1764 }
 0x825   : > { %6485 = vst [vmem:[#allocation67_spill] sm:$0xff] %v4933_v13  ;;  %v4936_v33 = vsel %vm1604_vm1, %v1628_v58, %v1668_v2  ;;  %vm1781_vm9 = vcmp.eq.f32.partialorder %v4835_v1, %v4933_v13 }
 0x826   : > { %v1789_v56 = vsel %vm1773_vm13, %v4936_v33, 1e+09 }
 0x827   : > { %v1819_v6 = vsel %vm1717_vm5, %v1789_v56, inf }
 0x828   : > { %v1672_v12 = vpop.permute.xlu1 %1671  ;;  %1820 = vmin.xlane.f32.xlu0 %v1819_v6  ;;  %v1666_v16 = vpop.permute.xlu0 %1665  ;;  %v1636_v6 = vld [vmem:[#allocation3 + $0x78] sm:$0xff] }
 0x829   : > { %v4943_v37 = vsel %vm1604_vm1, %v1630_v31, %v1672_v12  ;;  %v4946_v48 = vsel %vm1604_vm1, %v1627_v47, %v1666_v16 }
 0x82a   : > { %v1791_v10 = vsel %vm1775_vm14, %v4943_v37, 1e+09  ;;  %v1788_v19 = vsel %vm1772_vm15, %v4946_v48, 1e+09 }
 0x82b   : > { %v1825_v17 = vsel %vm1717_vm5, %v1791_v10, inf  ;;  %v1816_v45 = vsel %vm1717_vm5, %v1788_v19, inf }
 0x82c   : > { %v1676_v21 = vpop.permute.xlu1 %1675  ;;  %1826 = vmin.xlane.f32.xlu0 %v1825_v17  ;;  %1817 = vmin.xlane.f32.xlu1 %v1816_v45  ;;  %v1670_v22 = vpop.permute.xlu0 %1669 }
 0x82d   : > { %v4957_v15 = vsel %vm1604_vm1, %v1632_v26, %v1676_v21  ;;  %v4960_v49 = vsel %vm1604_vm1, %v1629_v38, %v1670_v22  ;;  %v1633_v26 = vld [vmem:[#allocation3 + $0x60] sm:$0xff] }
 0x82e   : > { %v1793_v41 = vsel %vm1777_vm0, %v4957_v15, 1e+09  ;;  %v1790_v32 = vsel %vm1774_vm6, %v4960_v49, 1e+09 }
 0x82f   : > { %v1831_v60 = vsel %vm1717_vm5, %v1793_v41, inf  ;;  %v1822_v58 = vsel %vm1717_vm5, %v1790_v32, inf  ;;  %v1635_v41 = vld [vmem:[#allocation3 + $0x70] sm:$0xff] }
 0x830   : > { %v1680_v2 = vpop.permute.xlu1 %1679  ;;  %1832 = vmin.xlane.f32.xlu0 %v1831_v60  ;;  %1823 = vmin.xlane.f32.xlu1 %v1822_v58  ;;  %v1674_v31 = vpop.permute.xlu0 %1673 }
 0x831   : > { %v4971_v56 = vsel %vm1604_vm1, %v1634_v24, %v1680_v2  ;;  %v4974_v47 = vsel %vm1604_vm1, %v1631_v27, %v1674_v31 }
 0x832   : > { %v1795_v12 = vsel %vm1779_vm7, %v4971_v56, 1e+09  ;;  %v1792_v16 = vsel %vm1776_vm8, %v4974_v47, 1e+09 }
 0x833   : > { %v1837_v10 = vsel %vm1717_vm5, %v1795_v12, inf  ;;  %v1828_v19 = vsel %vm1717_vm5, %v1792_v16, inf }
 0x834   : > { %v1684_v38 = vpop.permute.xlu1 %1683  ;;  %1838 = vmin.xlane.f32.xlu0 %v1837_v10  ;;  %1829 = vmin.xlane.f32.xlu1 %v1828_v19  ;;  %v1678_v17 = vpop.permute.xlu0 %1677 }
 0x835   : > { %v4985_v45 = vsel %vm1604_vm1, %v1636_v6, %v1684_v38  ;;  %v4988_v21 = vsel %vm1604_vm1, %v1633_v26, %v1678_v17 }
 0x836   : > { %v1797_v22 = vsel %vm1781_vm9, %v4985_v45, 1e+09  ;;  %v1794_v24 = vsel %vm1778_vm10, %v4988_v21, 1e+09 }
 0x837   : > { %v1843_v32 = vsel %vm1717_vm5, %v1797_v22, inf  ;;  %v1834_v27 = vsel %vm1717_vm5, %v1794_v24, inf }
 0x838   : > { %1844 = vmin.xlane.f32.xlu0 %v1843_v32  ;;  %1835 = vmin.xlane.f32.xlu1 %v1834_v27  ;;  %v1682_v60 = vpop.permute.xlu0 %1681 }
 0x839   : > { %v4999_v58 = vsel %vm1604_vm1, %v1635_v41, %v1682_v60 }
 0x83a   : > { %v1796_v2 = vsel %vm1780_vm12, %v4999_v58, 1e+09 }
 0x83b   : > { %v1840_v31 = vsel %vm1717_vm5, %v1796_v2, inf }
 0x83c   : > { %1841 = vmin.xlane.f32.xlu1 %v1840_v31 }
 0x895   : > { %v5005_v6 = vpop.xlane.xlu0 %1799 }
 0x896   : > { %6486 = vst [vmem:[#allocation68_spill] sm:$0xff] %v5005_v6  ;;  %vm1846_vm13 = vcmp.eq.f32.partialorder %v4864_v28, %v5005_v6 }
 0x897   : > { %v5010_v12 = vsel %vm1846_vm13, inf, %v4762_v39 }
 0x898   : > { %v1878_v16 = vsel %vm1717_vm5, %v5010_v12, inf }
 0x899   : > { %v5014_v26 = vpop.xlane.xlu1 %1802  ;;  %1879 = vmin.xlane.f32.xlu1 %v1878_v16  ;;  %v5016_v10 = vpop.xlane.xlu0 %1805 }
 0x89a   : > { %6487 = vst [vmem:[#allocation69_spill] sm:$0xff] %v5014_v26  ;;  %6488 = vst [vmem:[#allocation70_spill] sm:$0xff] %v5016_v10  ;;  %vm1847_vm14 = vcmp.eq.f32.partialorder %v4878_v42, %v5014_v26  ;;  %vm1848_vm15 = vcmp.eq.f32.partialorder %v4875_v18, %v5016_v10 }
 0x89b   : > { %v5023_v19 = vsel %vm1847_vm14, inf, %v4772_v7  ;;  %v5026_v39 = vsel %vm1848_vm15, inf, %v4765_v46 }
 0x89c   : > { %v1881_v38 = vsel %vm1717_vm5, %v5023_v19, inf  ;;  %v1884_v17 = vsel %vm1717_vm5, %v5026_v39, inf }
 0x89d   : > { %v5032_v22 = vpop.xlane.xlu1 %1811  ;;  %1882 = vmin.xlane.f32.xlu0 %v1881_v38  ;;  %1885 = vmin.xlane.f32.xlu1 %v1884_v17  ;;  %v5034_v24 = vpop.xlane.xlu0 %1808 }
 0x89e   : > { %6489 = vst [vmem:[#allocation71_spill] sm:$0xff] %v5032_v22  ;;  %6490 = vst [vmem:[#allocation72_spill] sm:$0xff] %v5034_v24  ;;  %vm1850_vm0 = vcmp.eq.f32.partialorder %v4896_v35, %v5032_v22  ;;  %vm1849_vm6 = vcmp.eq.f32.partialorder %v4893_v9, %v5034_v24 }
 0x89f   : > { %v5041_v46 = vsel %vm1850_vm0, inf, %v4782_v57  ;;  %v5044_v7 = vsel %vm1849_vm6, inf, %v4775_v44 }
 0x8a0   : > { %v1890_v41 = vsel %vm1717_vm5, %v5041_v46, inf  ;;  %v1887_v32 = vsel %vm1717_vm5, %v5044_v7, inf }
 0x8a1   : > { %1891 = vmin.xlane.f32.xlu1 %v1890_v41  ;;  %1888 = vmin.xlane.f32.xlu0 %v1887_v32  ;;  %v5050_v27 = vpop.xlane.xlu0 %1814 }
 0x8a2   : > { %6491 = vst [vmem:[#allocation73_spill] sm:$0xff] %v5050_v27  ;;  %vm1851_vm7 = vcmp.eq.f32.partialorder %v4911_v51, %v5050_v27 }
 0x8a3   : > { %v5055_v60 = vsel %vm1851_vm7, inf, %v4785_v50 }
 0x8a4   : > { %v1893_v44 = vsel %vm1717_vm5, %v5055_v60, inf }
 0x8a5   : > { %1894 = vmin.xlane.f32.xlu0 %v1893_v44 }
 0x8b5   : > { %v5059_v57 = vpop.xlane.xlu0 %1820 }
 0x8b6   : > { %6492 = vst [vmem:[#allocation74_spill] sm:$0xff] %v5059_v57  ;;  %vm1853_vm8 = vcmp.eq.f32.partialorder %v4936_v33, %v5059_v57 }
 0x8b7   : > { %v5064_v2 = vsel %vm1853_vm8, inf, %v4795_v62 }
 0x8b8   : > { %v1899_v31 = vsel %vm1717_vm5, %v5064_v2, inf }
 0x8b9   : > { %v5068_v16 = vpop.xlane.xlu1 %1817  ;;  %1900 = vmin.xlane.f32.xlu0 %v1899_v31  ;;  %v5070_v50 = vpop.xlane.xlu0 %1826 }
 0x8ba   : > { %6493 = vst [vmem:[#allocation75_spill] sm:$0xff] %v5068_v16  ;;  %6494 = vst [vmem:[#allocation76_spill] sm:$0xff] %v5070_v50  ;;  %vm1852_vm9 = vcmp.eq.f32.partialorder %v4946_v48, %v5068_v16  ;;  %vm1855_vm10 = vcmp.eq.f32.partialorder %v4943_v37, %v5070_v50 }
 0x8bb   : > { %v5077_v38 = vsel %vm1852_vm9, inf, %v4792_v55  ;;  %v5080_v62 = vsel %vm1855_vm10, inf, %v4805_v52 }
 0x8bc   : > { %v1896_v17 = vsel %vm1717_vm5, %v5077_v38, inf  ;;  %v1905_v41 = vsel %vm1717_vm5, %v5080_v62, inf }
 0x8bd   : > { %v5086_v32 = vpop.xlane.xlu1 %1823  ;;  %1897 = vmin.xlane.f32.xlu1 %v1896_v17  ;;  %1906 = vmin.xlane.f32.xlu0 %v1905_v41  ;;  %v5088_v44 = vpop.xlane.xlu0 %1832 }
 0x8be   : > { %6495 = vst [vmem:[#allocation77_spill] sm:$0xff] %v5086_v32  ;;  %6496 = vst [vmem:[#allocation78_spill] sm:$0xff] %v5088_v44  ;;  %vm1854_vm12 = vcmp.eq.f32.partialorder %v4960_v49, %v5086_v32  ;;  %vm1857_vm13 = vcmp.eq.f32.partialorder %v4957_v15, %v5088_v44 }
 0x8bf   : > { %v5095_v55 = vsel %vm1854_vm12, inf, %v4802_v5  ;;  %v5098_v52 = vsel %vm1857_vm13, inf, %v4815_v29 }
 0x8c0   : > { %v1902_v31 = vsel %vm1717_vm5, %v5095_v55, inf  ;;  %v1911_v17 = vsel %vm1717_vm5, %v5098_v52, inf }
 0x8c1   : > { %v5104_v41 = vpop.xlane.xlu1 %1829  ;;  %1903 = vmin.xlane.f32.xlu1 %v1902_v31  ;;  %1912 = vmin.xlane.f32.xlu0 %v1911_v17  ;;  %v5106_v40 = vpop.xlane.xlu0 %1838 }
 0x8c2   : > { %6497 = vst [vmem:[#allocation79_spill] sm:$0xff] %v5104_v41  ;;  %6498 = vst [vmem:[#allocation80_spill] sm:$0xff] %v5106_v40  ;;  %vm1856_vm14 = vcmp.eq.f32.partialorder %v4974_v47, %v5104_v41  ;;  %vm1859_vm15 = vcmp.eq.f32.partialorder %v4971_v56, %v5106_v40 }
 0x8c3   : > { %v5113_v5 = vsel %vm1856_vm14, inf, %v4812_v23  ;;  %v5116_v29 = vsel %vm1859_vm15, inf, %v4825_v0 }
 0x8c4   : > { %v1908_v13 = vsel %vm1717_vm5, %v5113_v5, inf  ;;  %v1917_v31 = vsel %vm1717_vm5, %v5116_v29, inf }
 0x8c5   : > { %v5122_v17 = vpop.xlane.xlu1 %1835  ;;  %1909 = vmin.xlane.f32.xlu1 %v1908_v13  ;;  %1918 = vmin.xlane.f32.xlu0 %v1917_v31  ;;  %v5124_v41 = vpop.xlane.xlu0 %1844 }
 0x8c6   : > { %6499 = vst [vmem:[#allocation81_spill] sm:$0xff] %v5122_v17  ;;  %6500 = vst [vmem:[#allocation82_spill] sm:$0xff] %v5124_v41  ;;  %vm1858_vm0 = vcmp.eq.f32.partialorder %v4988_v21, %v5122_v17  ;;  %vm1861_vm6 = vcmp.eq.f32.partialorder %v4985_v45, %v5124_v41 }
 0x8c7   : > { %v5131_v23 = vsel %vm1858_vm0, inf, %v4822_v59  ;;  %v5134_v0 = vsel %vm1861_vm6, inf, %v4835_v1 }
 0x8c8   : > { %v1914_v40 = vsel %vm1717_vm5, %v5131_v23, inf  ;;  %v1923_v13 = vsel %vm1717_vm5, %v5134_v0, inf }
 0x8c9   : > { %v5140_v31 = vpop.xlane.xlu1 %1841  ;;  %1915 = vmin.xlane.f32.xlu1 %v1914_v40  ;;  %1924 = vmin.xlane.f32.xlu0 %v1923_v13 }
 0x8ca   : > { %6501 = vst [vmem:[#allocation83_spill] sm:$0xff] %v5140_v31  ;;  %vm1860_vm7 = vcmp.eq.f32.partialorder %v4999_v58, %v5140_v31 }
 0x8cb   : > { %v5145_v41 = vsel %vm1860_vm7, inf, %v4832_v3 }
 0x8cc   : > { %v1920_v59 = vsel %vm1717_vm5, %v5145_v41, inf }
 0x8cd   : > { %1921 = vmin.xlane.f32.xlu1 %v1920_v59 }
 0x926   : > { %v5149_v1 = vpop.xlane.xlu1 %1879 }
 0x927   : > { %vm1926_vm8 = vcmp.eq.f32.partialorder %v5010_v12, %v5149_v1 }
 0x928   : > { %v1942_v17 = vsel %vm1926_vm8, %v4864_v28, 1e+09 }
 0x929   : > { %v1958_v40 = vsel %vm1717_vm5, %v1942_v17, inf }
 0x92a   : > { %1959 = vmin.xlane.f32.xlu1 %v1958_v40  ;;  %v5155_v13 = vpop.xlane.xlu1 %1885  ;;  %v5157_v31 = vpop.xlane.xlu0 %1882 }
 0x92b   : > { %vm1928_vm9 = vcmp.eq.f32.partialorder %v5026_v39, %v5155_v13  ;;  %vm1927_vm10 = vcmp.eq.f32.partialorder %v5023_v19, %v5157_v31 }
 0x92c   : > { %v1944_v3 = vsel %vm1928_vm9, %v4875_v18, 1e+09  ;;  %v1943_v59 = vsel %vm1927_vm10, %v4878_v42, 1e+09 }
 0x92d   : > { %v1964_v44 = vsel %vm1717_vm5, %v1944_v3, inf  ;;  %v1961_v32 = vsel %vm1717_vm5, %v1943_v59, inf }
 0x92e   : > { %1965 = vmin.xlane.f32.xlu1 %v1964_v44  ;;  %v5167_v17 = vpop.xlane.xlu1 %1891  ;;  %1962 = vmin.xlane.f32.xlu0 %v1961_v32  ;;  %v5169_v40 = vpop.xlane.xlu0 %1888 }
 0x92f   : > { %vm1930_vm12 = vcmp.eq.f32.partialorder %v5041_v46, %v5167_v17  ;;  %vm1929_vm13 = vcmp.eq.f32.partialorder %v5044_v7, %v5169_v40 }
 0x930   : > { %v1946_v50 = vsel %vm1930_vm12, %v4896_v35, 1e+09  ;;  %v1945_v16 = vsel %vm1929_vm13, %v4893_v9, 1e+09 }
 0x931   : > { %v1970_v3 = vsel %vm1717_vm5, %v1946_v50, inf  ;;  %v1967_v59 = vsel %vm1717_vm5, %v1945_v16, inf }
 0x932   : > { %1971 = vmin.xlane.f32.xlu1 %v1970_v3  ;;  %1968 = vmin.xlane.f32.xlu0 %v1967_v59  ;;  %v5179_v44 = vpop.xlane.xlu0 %1894 }
 0x933   : > { %vm1931_vm14 = vcmp.eq.f32.partialorder %v5055_v60, %v5179_v44 }
 0x934   : > { %v1947_v32 = vsel %vm1931_vm14, %v4911_v51, 1e+09 }
 0x935   : > { %v1973_v57 = vsel %vm1717_vm5, %v1947_v32, inf }
 0x936   : > { %1974 = vmin.xlane.f32.xlu0 %v1973_v57 }
 0x946   : > { %v5185_v27 = vpop.xlane.xlu0 %1900 }
 0x947   : > { %vm1933_vm15 = vcmp.eq.f32.partialorder %v5064_v2, %v5185_v27 }
 0x948   : > { %v1949_v50 = vsel %vm1933_vm15, %v4936_v33, 1e+09 }
 0x949   : > { %v1979_v16 = vsel %vm1717_vm5, %v1949_v50, inf }
 0x94a   : > { %v5191_v3 = vpop.xlane.xlu1 %1897  ;;  %1980 = vmin.xlane.f32.xlu0 %v1979_v16  ;;  %v5193_v59 = vpop.xlane.xlu0 %1906 }
 0x94b   : > { %vm1932_vm0 = vcmp.eq.f32.partialorder %v5077_v38, %v5191_v3  ;;  %vm1935_vm6 = vcmp.eq.f32.partialorder %v5080_v62, %v5193_v59 }
 0x94c   : > { %v1948_v57 = vsel %vm1932_vm0, %v4946_v48, 1e+09  ;;  %v1951_v32 = vsel %vm1935_vm6, %v4943_v37, 1e+09 }
 0x94d   : > { %v1976_v24 = vsel %vm1717_vm5, %v1948_v57, inf  ;;  %v1985_v22 = vsel %vm1717_vm5, %v1951_v32, inf }
 0x94e   : > { %1977 = vmin.xlane.f32.xlu1 %v1976_v24  ;;  %v5203_v50 = vpop.xlane.xlu1 %1903  ;;  %1986 = vmin.xlane.f32.xlu0 %v1985_v22  ;;  %v5205_v16 = vpop.xlane.xlu0 %1912 }
 0x94f   : > { %6502 = vst [vmem:[#allocation84_spill] sm:$0xff] %v5203_v50  ;;  %6503 = vst [vmem:[#allocation85_spill] sm:$0xff] %v5205_v16  ;;  %vm1934_vm7 = vcmp.eq.f32.partialorder %v5095_v55, %v5203_v50  ;;  %vm1937_vm8 = vcmp.eq.f32.partialorder %v5098_v52, %v5205_v16 }
 0x950   : > { %v1950_v26 = vsel %vm1934_vm7, %v4960_v49, 1e+09  ;;  %v1953_v10 = vsel %vm1937_vm8, %v4957_v15, 1e+09 }
 0x951   : > { %v1982_v57 = vsel %vm1717_vm5, %v1950_v26, inf  ;;  %v1991_v32 = vsel %vm1717_vm5, %v1953_v10, inf }
 0x952   : > { %1983 = vmin.xlane.f32.xlu1 %v1982_v57  ;;  %v5215_v24 = vpop.xlane.xlu1 %1909  ;;  %1992 = vmin.xlane.f32.xlu0 %v1991_v32  ;;  %v5217_v22 = vpop.xlane.xlu0 %1918 }
 0x953   : > { %6504 = vst [vmem:[#allocation86_spill] sm:$0xff] %v5215_v24  ;;  %6505 = vst [vmem:[#allocation87_spill] sm:$0xff] %v5217_v22  ;;  %vm1936_vm9 = vcmp.eq.f32.partialorder %v5113_v5, %v5215_v24  ;;  %vm1939_vm10 = vcmp.eq.f32.partialorder %v5116_v29, %v5217_v22 }
 0x954   : > { %v1952_v6 = vsel %vm1936_vm9, %v4974_v47, 1e+09  ;;  %v1955_v14 = vsel %vm1939_vm10, %v4971_v56, 1e+09 }
 0x955   : > { %v1988_v26 = vsel %vm1717_vm5, %v1952_v6, inf  ;;  %v1997_v10 = vsel %vm1717_vm5, %v1955_v14, inf }
 0x956   : > { %1989 = vmin.xlane.f32.xlu1 %v1988_v26  ;;  %v5227_v57 = vpop.xlane.xlu1 %1915  ;;  %1998 = vmin.xlane.f32.xlu0 %v1997_v10  ;;  %v5229_v32 = vpop.xlane.xlu0 %1924 }
 0x957   : > { %6506 = vst [vmem:[#allocation88_spill] sm:$0xff] %v5227_v57  ;;  %6507 = vst [vmem:[#allocation89_spill] sm:$0xff] %v5229_v32  ;;  %vm1938_vm12 = vcmp.eq.f32.partialorder %v5131_v23, %v5227_v57  ;;  %vm1941_vm13 = vcmp.eq.f32.partialorder %v5134_v0, %v5229_v32 }
 0x958   : > { %v1954_v4 = vsel %vm1938_vm12, %v4988_v21, 1e+09  ;;  %v1957_v22 = vsel %vm1941_vm13, %v4985_v45, 1e+09 }
 0x959   : > { %v1994_v6 = vsel %vm1717_vm5, %v1954_v4, inf  ;;  %v2003_v14 = vsel %vm1717_vm5, %v1957_v22, inf }
 0x95a   : > { %1995 = vmin.xlane.f32.xlu1 %v1994_v6  ;;  %v5239_v26 = vpop.xlane.xlu1 %1921  ;;  %2004 = vmin.xlane.f32.xlu0 %v2003_v14 }
 0x95b   : > { %6508 = vst [vmem:[#allocation90_spill] sm:$0xff] %v5239_v26  ;;  %vm1940_vm14 = vcmp.eq.f32.partialorder %v5145_v41, %v5239_v26 }
 0x95c   : > { %v1956_v10 = vsel %vm1940_vm14, %v4999_v58, 1e+09 }
 0x95d   : > { %v2000_v57 = vsel %vm1717_vm5, %v1956_v10, inf }
 0x95e   : > { %2001 = vmin.xlane.f32.xlu1 %v2000_v57 }
 0x9b7   : > { %v5245_v32 = vpop.xlane.xlu1 %1959 }
 0x9b8   : > { %6509 = vst [vmem:[#allocation91_spill] sm:$0xff] %v5245_v32  ;;  %vm2006_vm15 = vcmp.eq.f32.partialorder %v4864_v28, %v5245_v32 }
 0x9b9   : > { %v5250_v4 = vsel %vm2006_vm15, inf, %v5010_v12 }
 0x9ba   : > { %v2038_v22 = vsel %vm1717_vm5, %v5250_v4, inf }
 0x9bb   : > { %2039 = vmin.xlane.f32.xlu1 %v2038_v22  ;;  %v5254_v6 = vpop.xlane.xlu1 %1965  ;;  %v5256_v14 = vpop.xlane.xlu0 %1962 }
 0x9bc   : > { %6510 = vst [vmem:[#allocation92_spill] sm:$0xff] %v5254_v6  ;;  %6511 = vst [vmem:[#allocation93_spill] sm:$0xff] %v5256_v14  ;;  %vm2008_vm0 = vcmp.eq.f32.partialorder %v4875_v18, %v5254_v6  ;;  %vm2007_vm6 = vcmp.eq.f32.partialorder %v4878_v42, %v5256_v14 }
 0x9bd   : > { %v5263_v57 = vsel %vm2008_vm0, inf, %v5026_v39  ;;  %v5266_v12 = vsel %vm2007_vm6, inf, %v5023_v19 }
 0x9be   : > { %v2044_v10 = vsel %vm1717_vm5, %v5263_v57, inf  ;;  %v2041_v22 = vsel %vm1717_vm5, %v5266_v12, inf }
 0x9bf   : > { %2045 = vmin.xlane.f32.xlu1 %v2044_v10  ;;  %v5272_v26 = vpop.xlane.xlu1 %1971  ;;  %2042 = vmin.xlane.f32.xlu0 %v2041_v22  ;;  %v5274_v6 = vpop.xlane.xlu0 %1968 }
 0x9c0   : > { %6512 = vst [vmem:[#allocation94_spill] sm:$0xff] %v5272_v26  ;;  %6513 = vst [vmem:[#allocation95_spill] sm:$0xff] %v5274_v6  ;;  %vm2010_vm7 = vcmp.eq.f32.partialorder %v4896_v35, %v5272_v26  ;;  %vm2009_vm8 = vcmp.eq.f32.partialorder %v4893_v9, %v5274_v6 }
 0x9c1   : > { %v5281_v19 = vsel %vm2010_vm7, inf, %v5041_v46  ;;  %v5284_v39 = vsel %vm2009_vm8, inf, %v5044_v7 }
 0x9c2   : > { %v2050_v10 = vsel %vm1717_vm5, %v5281_v19, inf  ;;  %v2047_v22 = vsel %vm1717_vm5, %v5284_v39, inf }
 0x9c3   : > { %2051 = vmin.xlane.f32.xlu1 %v2050_v10  ;;  %2048 = vmin.xlane.f32.xlu0 %v2047_v22  ;;  %v5290_v14 = vpop.xlane.xlu0 %1974 }
 0x9c4   : > { %6514 = vst [vmem:[#allocation96_spill] sm:$0xff] %v5290_v14  ;;  %vm2011_vm9 = vcmp.eq.f32.partialorder %v4911_v51, %v5290_v14 }
 0x9c5   : > { %v5295_v6 = vsel %vm2011_vm9, inf, %v5055_v60 }
 0x9c6   : > { %v2053_v46 = vsel %vm1717_vm5, %v5295_v6, inf }
 0x9c7   : > { %2054 = vmin.xlane.f32.xlu0 %v2053_v46 }
 0x9d7   : > { %v5299_v7 = vpop.xlane.xlu0 %1980 }
 0x9d8   : > { %6515 = vst [vmem:[#allocation97_spill] sm:$0xff] %v5299_v7  ;;  %vm2013_vm10 = vcmp.eq.f32.partialorder %v4936_v33, %v5299_v7 }
 0x9d9   : > { %v5304_v10 = vsel %vm2013_vm10, inf, %v5064_v2 }
 0x9da   : > { %v2059_v22 = vsel %vm1717_vm5, %v5304_v10, inf }
 0x9db   : > { %v5308_v26 = vpop.xlane.xlu1 %1977  ;;  %2060 = vmin.xlane.f32.xlu0 %v2059_v22  ;;  %v5310_v60 = vpop.xlane.xlu0 %1986 }
 0x9dc   : > { %6516 = vst [vmem:[#allocation98_spill] sm:$0xff] %v5308_v26  ;;  %6517 = vst [vmem:[#allocation99_spill] sm:$0xff] %v5310_v60  ;;  %vm2012_vm12 = vcmp.eq.f32.partialorder %v4946_v48, %v5308_v26  ;;  %vm2015_vm13 = vcmp.eq.f32.partialorder %v4943_v37, %v5310_v60 }
 0x9dd   : > { %v5317_v46 = vsel %vm2012_vm12, inf, %v5077_v38  ;;  %v5320_v2 = vsel %vm2015_vm13, inf, %v5080_v62 }
 0x9de   : > { %v2056_v7 = vsel %vm1717_vm5, %v5317_v46, inf  ;;  %v2065_v22 = vsel %vm1717_vm5, %v5320_v2, inf }
 0x9df   : > { %2057 = vmin.xlane.f32.xlu1 %v2056_v7  ;;  %v5326_v14 = vpop.xlane.xlu1 %1983  ;;  %2066 = vmin.xlane.f32.xlu0 %v2065_v22  ;;  %v5328_v26 = vpop.xlane.xlu0 %1992 }
 0x9e0   : > { %6518 = vst [vmem:[#allocation100_spill] sm:$0xff] %v5326_v14  ;;  %6519 = vst [vmem:[#allocation101_spill] sm:$0xff] %v5328_v26  ;;  %vm2014_vm14 = vcmp.eq.f32.partialorder %v4960_v49, %v5326_v14  ;;  %vm2017_vm15 = vcmp.eq.f32.partialorder %v4957_v15, %v5328_v26 }
 0x9e1   : > { %v5335_v38 = vsel %vm2014_vm14, inf, %v5095_v55  ;;  %v5338_v62 = vsel %vm2017_vm15, inf, %v5098_v52 }
 0x9e2   : > { %v2062_v7 = vsel %vm1717_vm5, %v5335_v38, inf  ;;  %v2071_v22 = vsel %vm1717_vm5, %v5338_v62, inf }
 0x9e3   : > { %2063 = vmin.xlane.f32.xlu1 %v2062_v7  ;;  %v5344_v60 = vpop.xlane.xlu1 %1989  ;;  %2072 = vmin.xlane.f32.xlu0 %v2071_v22  ;;  %v5346_v14 = vpop.xlane.xlu0 %1998 }
 0x9e4   : > { %6520 = vst [vmem:[#allocation102_spill] sm:$0xff] %v5344_v60  ;;  %6521 = vst [vmem:[#allocation103_spill] sm:$0xff] %v5346_v14  ;;  %vm2016_vm0 = vcmp.eq.f32.partialorder %v4974_v47, %v5344_v60  ;;  %vm2019_vm6 = vcmp.eq.f32.partialorder %v4971_v56, %v5346_v14 }
 0x9e5   : > { %v5353_v55 = vsel %vm2016_vm0, inf, %v5113_v5  ;;  %v5356_v52 = vsel %vm2019_vm6, inf, %v5116_v29 }
 0x9e6   : > { %v2068_v7 = vsel %vm1717_vm5, %v5353_v55, inf  ;;  %v2077_v22 = vsel %vm1717_vm5, %v5356_v52, inf }
 0x9e7   : > { %2069 = vmin.xlane.f32.xlu1 %v2068_v7  ;;  %v5362_v26 = vpop.xlane.xlu1 %1995  ;;  %2078 = vmin.xlane.f32.xlu0 %v2077_v22  ;;  %v5364_v60 = vpop.xlane.xlu0 %2004 }
 0x9e8   : > { %6522 = vst [vmem:[#allocation104_spill] sm:$0xff] %v5362_v26  ;;  %6523 = vst [vmem:[#allocation105_spill] sm:$0xff] %v5364_v60  ;;  %vm2018_vm7 = vcmp.eq.f32.partialorder %v4988_v21, %v5362_v26  ;;  %vm2021_vm8 = vcmp.eq.f32.partialorder %v4985_v45, %v5364_v60 }
 0x9e9   : > { %v5371_v5 = vsel %vm2021_vm8, inf, %v5134_v0  ;;  %v5374_v29 = vsel %vm2018_vm7, inf, %v5131_v23 }
 0x9ea   : > { %v2074_v7 = vsel %vm1717_vm5, %v5374_v29, inf  ;;  %v2083_v22 = vsel %vm1717_vm5, %v5371_v5, inf }
 0x9eb   : > { %2075 = vmin.xlane.f32.xlu1 %v2074_v7  ;;  %v5380_v14 = vpop.xlane.xlu1 %2001  ;;  %2084 = vmin.xlane.f32.xlu0 %v2083_v22 }
 0x9ec   : > { %6524 = vst [vmem:[#allocation106_spill] sm:$0xff] %v5380_v14  ;;  %vm2020_vm9 = vcmp.eq.f32.partialorder %v4999_v58, %v5380_v14 }
 0x9ed   : > { %v5385_v60 = vsel %vm2020_vm9, inf, %v5145_v41 }
 0x9ee   : > { %v2080_v23 = vsel %vm1717_vm5, %v5385_v60, inf }
 0x9ef   : > { %2081 = vmin.xlane.f32.xlu1 %v2080_v23 }
 0xa48   : > { %v5389_v0 = vpop.xlane.xlu1 %2039 }
 0xa49   : > { %vm2086_vm10 = vcmp.eq.f32.partialorder %v5250_v4, %v5389_v0 }
 0xa4a   : > { %v2102_v7 = vsel %vm2086_vm10, %v4864_v28, 1e+09 }
 0xa4b   : > { %v2118_v26 = vsel %vm1717_vm5, %v2102_v7, inf }
 0xa4c   : > { %2119 = vmin.xlane.f32.xlu1 %v2118_v26  ;;  %v5395_v22 = vpop.xlane.xlu1 %2045  ;;  %v5397_v14 = vpop.xlane.xlu0 %2042 }
 0xa4d   : > { %vm2088_vm12 = vcmp.eq.f32.partialorder %v5263_v57, %v5395_v22  ;;  %vm2087_vm13 = vcmp.eq.f32.partialorder %v5266_v12, %v5397_v14 }
 0xa4e   : > { %v2104_v41 = vsel %vm2088_vm12, %v4875_v18, 1e+09  ;;  %v2103_v23 = vsel %vm2087_vm13, %v4878_v42, 1e+09 }
 0xa4f   : > { %v2124_v32 = vsel %vm1717_vm5, %v2104_v41, inf  ;;  %v2121_v54 = vsel %vm1717_vm5, %v2103_v23, inf }
 0xa50   : > { %2125 = vmin.xlane.f32.xlu1 %v2124_v32  ;;  %v5407_v26 = vpop.xlane.xlu1 %2051  ;;  %2122 = vmin.xlane.f32.xlu0 %v2121_v54  ;;  %v5409_v7 = vpop.xlane.xlu0 %2048 }
 0xa51   : > { %vm2090_vm14 = vcmp.eq.f32.partialorder %v5281_v19, %v5407_v26  ;;  %vm2089_vm15 = vcmp.eq.f32.partialorder %v5284_v39, %v5409_v7 }
 0xa52   : > { %v2106_v24 = vsel %vm2090_vm14, %v4896_v35, 1e+09  ;;  %v2105_v43 = vsel %vm2089_vm15, %v4893_v9, 1e+09 }
 0xa53   : > { %v2130_v41 = vsel %vm1717_vm5, %v2106_v24, inf  ;;  %v2127_v23 = vsel %vm1717_vm5, %v2105_v43, inf }
 0xa54   : > { %2131 = vmin.xlane.f32.xlu1 %v2130_v41  ;;  %2128 = vmin.xlane.f32.xlu0 %v2127_v23  ;;  %v5419_v32 = vpop.xlane.xlu0 %2054 }
 0xa55   : > { %vm2091_vm0 = vcmp.eq.f32.partialorder %v5295_v6, %v5419_v32 }
 0xa56   : > { %v2107_v54 = vsel %vm2091_vm0, %v4911_v51, 1e+09 }
 0xa57   : > { %v2133_v16 = vsel %vm1717_vm5, %v2107_v54, inf }
 0xa58   : > { %2134 = vmin.xlane.f32.xlu0 %v2133_v16 }
 0xa68   : > { %v5425_v20 = vpop.xlane.xlu0 %2060 }
 0xa69   : > { %vm2093_vm6 = vcmp.eq.f32.partialorder %v5304_v10, %v5425_v20 }
 0xa6a   : > { %v2109_v24 = vsel %vm2093_vm6, %v4936_v33, 1e+09 }
 0xa6b   : > { %v2139_v43 = vsel %vm1717_vm5, %v2109_v24, inf }
 0xa6c   : > { %v5431_v41 = vpop.xlane.xlu1 %2057  ;;  %2140 = vmin.xlane.f32.xlu0 %v2139_v43  ;;  %v5433_v23 = vpop.xlane.xlu0 %2066 }
 0xa6d   : > { %6525 = vst [vmem:[#allocation107_spill] sm:$0xff] %v5431_v41  ;;  %6526 = vst [vmem:[#allocation108_spill] sm:$0xff] %v5433_v23  ;;  %vm2092_vm7 = vcmp.eq.f32.partialorder %v5317_v46, %v5431_v41  ;;  %vm2095_vm8 = vcmp.eq.f32.partialorder %v5320_v2, %v5433_v23 }
 0xa6e   : > { %v2108_v16 = vsel %vm2092_vm7, %v4946_v48, 1e+09  ;;  %v2111_v54 = vsel %vm2095_vm8, %v4943_v37, 1e+09 }
 0xa6f   : > { %v2136_v50 = vsel %vm1717_vm5, %v2108_v16, inf  ;;  %v2145_v30 = vsel %vm1717_vm5, %v2111_v54, inf }
 0xa70   : > { %2137 = vmin.xlane.f32.xlu1 %v2136_v50  ;;  %v5443_v24 = vpop.xlane.xlu1 %2063  ;;  %2146 = vmin.xlane.f32.xlu0 %v2145_v30  ;;  %v5445_v43 = vpop.xlane.xlu0 %2072 }
 0xa71   : > { %6527 = vst [vmem:[#allocation109_spill] sm:$0xff] %v5443_v24  ;;  %6528 = vst [vmem:[#allocation110_spill] sm:$0xff] %v5445_v43  ;;  %vm2094_vm9 = vcmp.eq.f32.partialorder %v5335_v38, %v5443_v24  ;;  %vm2097_vm10 = vcmp.eq.f32.partialorder %v5338_v62, %v5445_v43 }
 0xa72   : > { %v2110_v23 = vsel %vm2094_vm9, %v4960_v49, 1e+09  ;;  %v2113_v41 = vsel %vm2097_vm10, %v4957_v15, 1e+09 }
 0xa73   : > { %v2142_v16 = vsel %vm1717_vm5, %v2110_v23, inf  ;;  %v2151_v54 = vsel %vm1717_vm5, %v2113_v41, inf }
 0xa74   : > { %2143 = vmin.xlane.f32.xlu1 %v2142_v16  ;;  %v5455_v50 = vpop.xlane.xlu1 %2069  ;;  %2152 = vmin.xlane.f32.xlu0 %v2151_v54  ;;  %v5457_v30 = vpop.xlane.xlu0 %2078 }
 0xa75   : > { %6529 = vst [vmem:[#allocation111_spill] sm:$0xff] %v5455_v50  ;;  %6530 = vst [vmem:[#allocation112_spill] sm:$0xff] %v5457_v30  ;;  %vm2096_vm12 = vcmp.eq.f32.partialorder %v5353_v55, %v5455_v50  ;;  %vm2099_vm13 = vcmp.eq.f32.partialorder %v5356_v52, %v5457_v30 }
 0xa76   : > { %v2112_v43 = vsel %vm2096_vm12, %v4974_v47, 1e+09  ;;  %v2115_v24 = vsel %vm2099_vm13, %v4971_v56, 1e+09 }
 0xa77   : > { %v2148_v23 = vsel %vm1717_vm5, %v2112_v43, inf  ;;  %v2157_v41 = vsel %vm1717_vm5, %v2115_v24, inf }
 0xa78   : > { %2149 = vmin.xlane.f32.xlu1 %v2148_v23  ;;  %v5467_v16 = vpop.xlane.xlu1 %2075  ;;  %2158 = vmin.xlane.f32.xlu0 %v2157_v41  ;;  %v5469_v54 = vpop.xlane.xlu0 %2084 }
 0xa79   : > { %6531 = vst [vmem:[#allocation113_spill] sm:$0xff] %v5467_v16  ;;  %6532 = vst [vmem:[#allocation114_spill] sm:$0xff] %v5469_v54  ;;  %vm2098_vm14 = vcmp.eq.f32.partialorder %v5374_v29, %v5467_v16  ;;  %vm2101_vm15 = vcmp.eq.f32.partialorder %v5371_v5, %v5469_v54 }
 0xa7a   : > { %v2114_v30 = vsel %vm2098_vm14, %v4988_v21, 1e+09  ;;  %v2117_v50 = vsel %vm2101_vm15, %v4985_v45, 1e+09 }
 0xa7b   : > { %v2154_v43 = vsel %vm1717_vm5, %v2114_v30, inf  ;;  %v2163_v24 = vsel %vm1717_vm5, %v2117_v50, inf }
 0xa7c   : > { %2155 = vmin.xlane.f32.xlu1 %v2154_v43  ;;  %v5479_v23 = vpop.xlane.xlu1 %2081  ;;  %2164 = vmin.xlane.f32.xlu0 %v2163_v24 }
 0xa7d   : > { %6533 = vst [vmem:[#allocation115_spill] sm:$0xff] %v5479_v23  ;;  %vm2100_vm0 = vcmp.eq.f32.partialorder %v5385_v60, %v5479_v23 }
 0xa7e   : > { %v2116_v41 = vsel %vm2100_vm0, %v4999_v58, 1e+09 }
 0xa7f   : > { %v2160_v16 = vsel %vm1717_vm5, %v2116_v41, inf }
 0xa80   : > { %2161 = vmin.xlane.f32.xlu1 %v2160_v16 }
 0xad9   : > { %v5485_v54 = vpop.xlane.xlu1 %2119 }
 0xada   : > { %vm2166_vm6 = vcmp.eq.f32.partialorder %v4864_v28, %v5485_v54 }
 0xadb   : > { %v5490_v30 = vsel %vm2166_vm6, inf, %v5250_v4 }
 0xadc   : > { %v2198_v50 = vsel %vm1717_vm5, %v5490_v30, inf }
 0xadd   : > { %2199 = vmin.xlane.f32.xlu1 %v2198_v50  ;;  %v5494_v43 = vpop.xlane.xlu1 %2125  ;;  %v5496_v24 = vpop.xlane.xlu0 %2122 }
 0xade   : > { %6534 = vst [vmem:[#allocation116_spill] sm:$0xff] %v5494_v43  ;;  %6535 = vst [vmem:[#allocation117_spill] sm:$0xff] %v5496_v24  ;;  %vm2168_vm7 = vcmp.eq.f32.partialorder %v4875_v18, %v5494_v43  ;;  %vm2167_vm8 = vcmp.eq.f32.partialorder %v4878_v42, %v5496_v24 }
 0xadf   : > { %v5503_v16 = vsel %vm2168_vm7, inf, %v5263_v57  ;;  %v5506_v4 = vsel %vm2167_vm8, inf, %v5266_v12 }
 0xae0   : > { %v2204_v41 = vsel %vm1717_vm5, %v5503_v16, inf  ;;  %v2201_v50 = vsel %vm1717_vm5, %v5506_v4, inf }
 0xae1   : > { %2205 = vmin.xlane.f32.xlu1 %v2204_v41  ;;  %v5512_v23 = vpop.xlane.xlu1 %2131  ;;  %2202 = vmin.xlane.f32.xlu0 %v2201_v50  ;;  %v5514_v43 = vpop.xlane.xlu0 %2128 }
 0xae2   : > { %6536 = vst [vmem:[#allocation118_spill] sm:$0xff] %v5512_v23  ;;  %6537 = vst [vmem:[#allocation119_spill] sm:$0xff] %v5514_v43  ;;  %vm2170_vm9 = vcmp.eq.f32.partialorder %v4896_v35, %v5512_v23  ;;  %vm2169_vm10 = vcmp.eq.f32.partialorder %v4893_v9, %v5514_v43 }
 0xae3   : > { %v5521_v57 = vsel %vm2170_vm9, inf, %v5281_v19  ;;  %v5524_v12 = vsel %vm2169_vm10, inf, %v5284_v39 }
 0xae4   : > { %v2210_v41 = vsel %vm1717_vm5, %v5521_v57, inf  ;;  %v2207_v50 = vsel %vm1717_vm5, %v5524_v12, inf }
 0xae5   : > { %2211 = vmin.xlane.f32.xlu1 %v2210_v41  ;;  %2208 = vmin.xlane.f32.xlu0 %v2207_v50  ;;  %v5530_v24 = vpop.xlane.xlu0 %2134 }
 0xae6   : > { %6538 = vst [vmem:[#allocation120_spill] sm:$0xff] %v5530_v24  ;;  %vm2171_vm12 = vcmp.eq.f32.partialorder %v4911_v51, %v5530_v24 }
 0xae7   : > { %v5535_v43 = vsel %vm2171_vm12, inf, %v5295_v6 }
 0xae8   : > { %v2213_v19 = vsel %vm1717_vm5, %v5535_v43, inf }
 0xae9   : > { %2214 = vmin.xlane.f32.xlu0 %v2213_v19 }
 0xaf9   : > { %v5539_v39 = vpop.xlane.xlu0 %2140 }
 0xafa   : > { %6539 = vst [vmem:[#allocation121_spill] sm:$0xff] %v5539_v39  ;;  %vm2173_vm13 = vcmp.eq.f32.partialorder %v4936_v33, %v5539_v39 }
 0xafb   : > { %v5544_v41 = vsel %vm2173_vm13, inf, %v5304_v10 }
 0xafc   : > { %v2219_v50 = vsel %vm1717_vm5, %v5544_v41, inf }
 0xafd   : > { %v5548_v23 = vpop.xlane.xlu1 %2137  ;;  %2220 = vmin.xlane.f32.xlu0 %v2219_v50  ;;  %v5550_v6 = vpop.xlane.xlu0 %2146 }
 0xafe   : > { %6540 = vst [vmem:[#allocation122_spill] sm:$0xff] %v5548_v23  ;;  %6541 = vst [vmem:[#allocation123_spill] sm:$0xff] %v5550_v6  ;;  %vm2172_vm14 = vcmp.eq.f32.partialorder %v4946_v48, %v5548_v23  ;;  %vm2175_vm15 = vcmp.eq.f32.partialorder %v4943_v37, %v5550_v6 }
 0xaff   : > { %v5557_v19 = vsel %vm2172_vm14, inf, %v5317_v46  ;;  %v5560_v10 = vsel %vm2175_vm15, inf, %v5320_v2 }
 0xb00   : > { %v2216_v39 = vsel %vm1717_vm5, %v5557_v19, inf  ;;  %v2225_v50 = vsel %vm1717_vm5, %v5560_v10, inf }
 0xb01   : > { %2217 = vmin.xlane.f32.xlu1 %v2216_v39  ;;  %v5566_v24 = vpop.xlane.xlu1 %2143  ;;  %2226 = vmin.xlane.f32.xlu0 %v2225_v50  ;;  %v5568_v23 = vpop.xlane.xlu0 %2152 }
 0xb02   : > { %6542 = vst [vmem:[#allocation124_spill] sm:$0xff] %v5566_v24  ;;  %6543 = vst [vmem:[#allocation125_spill] sm:$0xff] %v5568_v23  ;;  %vm2174_vm0 = vcmp.eq.f32.partialorder %v4960_v49, %v5566_v24  ;;  %vm2177_vm6 = vcmp.eq.f32.partialorder %v4957_v15, %v5568_v23 }
 0xb03   : > { %v5575_v46 = vsel %vm2174_vm0, inf, %v5335_v38  ;;  %v5578_v2 = vsel %vm2177_vm6, inf, %v5338_v62 }
 0xb04   : > { %v2222_v39 = vsel %vm1717_vm5, %v5575_v46, inf  ;;  %v2231_v50 = vsel %vm1717_vm5, %v5578_v2, inf }
 0xb05   : > { %2223 = vmin.xlane.f32.xlu1 %v2222_v39  ;;  %v5584_v6 = vpop.xlane.xlu1 %2149  ;;  %2232 = vmin.xlane.f32.xlu0 %v2231_v50  ;;  %v5586_v24 = vpop.xlane.xlu0 %2158 }
 0xb06   : > { %6544 = vst [vmem:[#allocation126_spill] sm:$0xff] %v5584_v6  ;;  %6545 = vst [vmem:[#allocation127_spill] sm:$0xff] %v5586_v24  ;;  %vm2176_vm7 = vcmp.eq.f32.partialorder %v4974_v47, %v5584_v6  ;;  %vm2179_vm8 = vcmp.eq.f32.partialorder %v4971_v56, %v5586_v24 }
 0xb07   : > { %v5593_v38 = vsel %vm2176_vm7, inf, %v5353_v55  ;;  %v5596_v62 = vsel %vm2179_vm8, inf, %v5356_v52 }
 0xb08   : > { %v2228_v39 = vsel %vm1717_vm5, %v5593_v38, inf  ;;  %v2237_v50 = vsel %vm1717_vm5, %v5596_v62, inf }
 0xb09   : > { %2229 = vmin.xlane.f32.xlu1 %v2228_v39  ;;  %v5602_v23 = vpop.xlane.xlu1 %2155  ;;  %2238 = vmin.xlane.f32.xlu0 %v2237_v50  ;;  %v5604_v6 = vpop.xlane.xlu0 %2164 }
 0xb0a   : > { %6546 = vst [vmem:[#allocation128_spill] sm:$0xff] %v5602_v23  ;;  %6547 = vst [vmem:[#allocation129_spill] sm:$0xff] %v5604_v6  ;;  %vm2178_vm9 = vcmp.eq.f32.partialorder %v4988_v21, %v5602_v23  ;;  %vm2181_vm10 = vcmp.eq.f32.partialorder %v4985_v45, %v5604_v6 }
 0xb0b   : > { %v5611_v55 = vsel %vm2178_vm9, inf, %v5374_v29  ;;  %v5614_v52 = vsel %vm2181_vm10, inf, %v5371_v5  ;;  %v2486_v29 = vsel %vm1351_vm2, %v4861_v63, %v5149_v1 }
 0xb0c   : > { %v2234_v39 = vsel %vm1717_vm5, %v5611_v55, inf  ;;  %v2243_v50 = vsel %vm1717_vm5, %v5614_v52, inf }
 0xb0d   : > { %2235 = vmin.xlane.f32.xlu1 %v2234_v39  ;;  %v5620_v24 = vpop.xlane.xlu1 %2161  ;;  %2244 = vmin.xlane.f32.xlu0 %v2243_v50  ;;  %v2502_v39 = vsel %vm1368_vm3, %v2486_v29, %v5389_v0 }
 0xb0e   : > { %6548 = vst [vmem:[#allocation130_spill] sm:$0xff] %v5620_v24  ;;  %vm2180_vm12 = vcmp.eq.f32.partialorder %v4999_v58, %v5620_v24  ;;  %v2488_v24 = vsel %vm1351_vm2, %v4872_v34, %v5155_v13  ;;  %v2490_v13 = vsel %vm1351_vm2, %v4888_v36, %v5167_v17 }
 0xb0f   : > { %v5625_v6 = vsel %vm2180_vm12, inf, %v5385_v60  ;;  %v2504_v1 = vsel %vm1368_vm3, %v2488_v24, %v5395_v22 }
 0xb10   : > { %v2240_v5 = vsel %vm1717_vm5, %v5625_v6, inf }
 0xb11   : > { %2241 = vmin.xlane.f32.xlu1 %v2240_v5  ;;  %v2487_v5 = vsel %vm1351_vm2, %v4870_v25, %v5157_v31 }
 0xb12   : > { %v2503_v0 = vsel %vm1368_vm3, %v2487_v5, %v5397_v14  ;;  %v2489_v14 = vsel %vm1351_vm2, %v4890_v11, %v5169_v40 }
 0xb13   : > { %v2505_v5 = vsel %vm1368_vm3, %v2489_v14, %v5409_v7 }
 0xb6a   : > { %v2200_v23 = vpop.xlane.xlu1 %2199 }
 0xb6b   : > { %vm2246_vm13 = vcmp.eq.f32.partialorder %v5490_v30, %v2200_v23  ;;  %v5636_v50 = vsel %vm1385_vm4, %v2502_v39, %v2200_v23 }
 0xb6c   : > { %v2262_v60 = vsel %vm2246_vm13, %v4864_v28, 1e+09 }
 0xb6d   : > { %v2278_v63 = vsel %vm1717_vm5, %v2262_v60, inf  ;;  %v2506_v60 = vsel %vm1368_vm3, %v2490_v13, %v5407_v26  ;;  %v2491_v26 = vsel %vm1351_vm2, %v4908_v8, %v5179_v44  ;;  %v2493_v8 = vsel %vm1351_vm2, %v4919_v53, %v5185_v27  ;;  %v6550_v27 = vld [vmem:[#allocation107_spill] sm:$0xff] }
 0xb6e   : > { %2279 = vmin.xlane.f32.xlu1 %v2278_v63  ;;  %v2206_v23 = vpop.xlane.xlu1 %2205  ;;  %v2203_v29 = vpop.xlane.xlu0 %2202  ;;  %v2509_v44 = vsel %vm1368_vm3, %v2493_v8, %v5425_v20 }
 0xb6f   : > { %vm2248_vm14 = vcmp.eq.f32.partialorder %v5503_v16, %v2206_v23  ;;  %v5652_v39 = vsel %vm1385_vm4, %v2504_v1, %v2206_v23  ;;  %vm2247_vm15 = vcmp.eq.f32.partialorder %v5506_v4, %v2203_v29  ;;  %v5656_v25 = vsel %vm1385_vm4, %v2503_v0, %v2203_v29 }
 0xb70   : > { %v2264_v34 = vsel %vm2248_vm14, %v4875_v18, 1e+09  ;;  %v2263_v31 = vsel %vm2247_vm15, %v4878_v42, 1e+09  ;;  %v2507_v23 = vsel %vm1368_vm3, %v2491_v26, %v5419_v32 }
 0xb71   : > { %v2284_v22 = vsel %vm1717_vm5, %v2264_v34, inf  ;;  %v2281_v24 = vsel %vm1717_vm5, %v2263_v31, inf }
 0xb72   : > { %2285 = vmin.xlane.f32.xlu1 %v2284_v22  ;;  %v2212_v63 = vpop.xlane.xlu1 %2211  ;;  %2282 = vmin.xlane.f32.xlu0 %v2281_v24  ;;  %v2209_v1 = vpop.xlane.xlu0 %2208  ;;  %v2492_v24 = vsel %vm1351_vm2, %v4906_v61, %v5191_v3 }
 0xb73   : > { %vm2250_vm0 = vcmp.eq.f32.partialorder %v5521_v57, %v2212_v63  ;;  %v5674_v36 = vsel %vm1385_vm4, %v2506_v60, %v2212_v63  ;;  %vm2249_vm6 = vcmp.eq.f32.partialorder %v5524_v12, %v2209_v1  ;;  %v5678_v11 = vsel %vm1385_vm4, %v2505_v5, %v2209_v1  ;;  %v6549_v60 = vld [vmem:[#allocation62_spill] sm:$0xff]  ;;  %v6551_v63 = vld [vmem:[#allocation108_spill] sm:$0xff] }
 0xb74   : > { %v2266_v17 = vsel %vm2250_vm0, %v4896_v35, 1e+09  ;;  %v2265_v40 = vsel %vm2249_vm6, %v4893_v9, 1e+09  ;;  %v2495_v5 = vsel %vm1351_vm2, %v6549_v60, %v5193_v59  ;;  %v2508_v20 = vsel %vm1368_vm3, %v2492_v24, %v6550_v27  ;;  %v6557_v24 = vld [vmem:[#allocation110_spill] sm:$0xff] }
 0xb75   : > { %v2290_v7 = vsel %vm1717_vm5, %v2266_v17, inf  ;;  %v2287_v0 = vsel %vm1717_vm5, %v2265_v40, inf  ;;  %v2511_v1 = vsel %vm1368_vm3, %v2495_v5, %v6551_v63 }
 0xb76   : > { %2291 = vmin.xlane.f32.xlu1 %v2290_v7  ;;  %2288 = vmin.xlane.f32.xlu0 %v2287_v0  ;;  %v2215_v29 = vpop.xlane.xlu0 %2214  ;;  %v6552_v7 = vld [vmem:[#allocation84_spill] sm:$0xff] }
 0xb77   : > { %vm2251_vm7 = vcmp.eq.f32.partialorder %v5535_v43, %v2215_v29  ;;  %v5691_v34 = vsel %vm1385_vm4, %v2507_v23, %v2215_v29  ;;  %v6553_v0 = vld [vmem:[#allocation60_spill] sm:$0xff]  ;;  %v6554_v29 = vld [vmem:[#allocation85_spill] sm:$0xff] }
 0xb78   : > { %v2267_v31 = vsel %vm2251_vm7, %v4911_v51, 1e+09  ;;  %v2494_v23 = vsel %vm1351_vm2, %v6553_v0, %v6552_v7  ;;  %v6561_v7 = vld [vmem:[#allocation66_spill] sm:$0xff] }
 0xb79   : > { %v2293_v13 = vsel %vm1717_vm5, %v2267_v31, inf  ;;  %v6555_v31 = vld [vmem:[#allocation64_spill] sm:$0xff] }
 0xb7a   : > { %2294 = vmin.xlane.f32.xlu0 %v2293_v13  ;;  %v2497_v13 = vsel %vm1351_vm2, %v6555_v31, %v6554_v29  ;;  %v6562_v31 = vld [vmem:[#allocation111_spill] sm:$0xff] }
 0xb7b   : > { %v2513_v60 = vsel %vm1368_vm3, %v2497_v13, %v6557_v24 }
 0xb8a   : > { %v2221_v32 = vpop.xlane.xlu0 %2220 }
 0xb8b   : > { %vm2253_vm8 = vcmp.eq.f32.partialorder %v5544_v41, %v2221_v32  ;;  %v5702_v14 = vsel %vm1385_vm4, %v2509_v44, %v2221_v32  ;;  %v6556_v32 = vld [vmem:[#allocation109_spill] sm:$0xff] }
 0xb8c   : > { %v2269_v22 = vsel %vm2253_vm8, %v4936_v33, 1e+09 }
 0xb8d   : > { %v2299_v53 = vsel %vm1717_vm5, %v2269_v22, inf  ;;  %v2510_v22 = vsel %vm1368_vm3, %v2494_v23, %v6556_v32 }
 0xb8e   : > { %v2218_v17 = vpop.xlane.xlu1 %2217  ;;  %2300 = vmin.xlane.f32.xlu0 %v2299_v53  ;;  %v2227_v40 = vpop.xlane.xlu0 %2226 }
 0xb8f   : > { %vm2252_vm9 = vcmp.eq.f32.partialorder %v5557_v19, %v2218_v17  ;;  %v5718_v26 = vsel %vm1385_vm4, %v2508_v20, %v2218_v17  ;;  %vm2255_vm10 = vcmp.eq.f32.partialorder %v5560_v10, %v2227_v40  ;;  %v5722_v61 = vsel %vm1385_vm4, %v2511_v1, %v2227_v40  ;;  %v6558_v17 = vld [vmem:[#allocation86_spill] sm:$0xff]  ;;  %v6559_v40 = vld [vmem:[#allocation61_spill] sm:$0xff] }
 0xb90   : > { %v2268_v3 = vsel %vm2252_vm9, %v4946_v48, 1e+09  ;;  %v2271_v59 = vsel %vm2255_vm10, %v4943_v37, 1e+09 }
 0xb91   : > { %v2296_v8 = vsel %vm1717_vm5, %v2268_v3, inf  ;;  %v2305_v44 = vsel %vm1717_vm5, %v2271_v59, inf  ;;  %v2496_v3 = vsel %vm1351_vm2, %v6559_v40, %v6558_v17  ;;  %v6560_v59 = vld [vmem:[#allocation87_spill] sm:$0xff] }
 0xb92   : > { %2297 = vmin.xlane.f32.xlu1 %v2296_v8  ;;  %v2224_v5 = vpop.xlane.xlu1 %2223  ;;  %2306 = vmin.xlane.f32.xlu0 %v2305_v44  ;;  %v2233_v53 = vpop.xlane.xlu0 %2232  ;;  %v2499_v0 = vsel %vm1351_vm2, %v6561_v7, %v6560_v59  ;;  %v2512_v13 = vsel %vm1368_vm3, %v2496_v3, %v6562_v31  ;;  %v6563_v8 = vld [vmem:[#allocation112_spill] sm:$0xff]  ;;  %v6566_v59 = vld [vmem:[#allocation113_spill] sm:$0xff] }
 0xb93   : > { %vm2254_vm12 = vcmp.eq.f32.partialorder %v5575_v46, %v2224_v5  ;;  %v5740_v27 = vsel %vm1385_vm4, %v2510_v22, %v2224_v5  ;;  %vm2257_vm13 = vcmp.eq.f32.partialorder %v5578_v2, %v2233_v53  ;;  %v5744_v20 = vsel %vm1385_vm4, %v2513_v60, %v2233_v53 }
 0xb94   : > { %v2270_v63 = vsel %vm2254_vm12, %v4960_v49, 1e+09  ;;  %v2273_v1 = vsel %vm2257_vm13, %v4957_v15, 1e+09  ;;  %v2515_v44 = vsel %vm1368_vm3, %v2499_v0, %v6563_v8 }
 0xb95   : > { %v2302_v23 = vsel %vm1717_vm5, %v2270_v63, inf  ;;  %v2311_v29 = vsel %vm1717_vm5, %v2273_v1, inf  ;;  %v6564_v63 = vld [vmem:[#allocation88_spill] sm:$0xff]  ;;  %v6565_v1 = vld [vmem:[#allocation63_spill] sm:$0xff] }
 0xb96   : > { %2303 = vmin.xlane.f32.xlu1 %v2302_v23  ;;  %v2230_v32 = vpop.xlane.xlu1 %2229  ;;  %2312 = vmin.xlane.f32.xlu0 %v2311_v29  ;;  %v2239_v22 = vpop.xlane.xlu0 %2238  ;;  %v2498_v17 = vsel %vm1351_vm2, %v6565_v1, %v6564_v63  ;;  %v6568_v63 = vld [vmem:[#allocation68_spill] sm:$0xff] }
 0xb97   : > { %vm2256_vm14 = vcmp.eq.f32.partialorder %v5593_v38, %v2230_v32  ;;  %v5762_v24 = vsel %vm1385_vm4, %v2512_v13, %v2230_v32  ;;  %vm2259_vm15 = vcmp.eq.f32.partialorder %v5596_v62, %v2239_v22  ;;  %v5766_v60 = vsel %vm1385_vm4, %v2515_v44, %v2239_v22 }
 0xb98   : > { %v2272_v5 = vsel %vm2256_vm14, %v4974_v47, 1e+09  ;;  %v2275_v53 = vsel %vm2259_vm15, %v4971_v56, 1e+09  ;;  %v2514_v7 = vsel %vm1368_vm3, %v2498_v17, %v6566_v59 }
 0xb99   : > { %v2308_v40 = vsel %vm1717_vm5, %v2272_v5, inf  ;;  %v2317_v3 = vsel %vm1717_vm5, %v2275_v53, inf  ;;  %v6567_v53 = vld [vmem:[#allocation91_spill] sm:$0xff] }
 0xb9a   : > { %2309 = vmin.xlane.f32.xlu1 %v2308_v40  ;;  %v2236_v0 = vpop.xlane.xlu1 %2235  ;;  %2318 = vmin.xlane.f32.xlu0 %v2317_v3  ;;  %v5777_v23 = vpop.xlane.xlu0 %2244  ;;  %v2566_v1 = vsel %vm1351_vm2, %v6568_v63, %v6567_v53  ;;  %v6574_v53 = vld [vmem:[#allocation117_spill] sm:$0xff] }
 0xb9b   : > { %vm2258_vm0 = vcmp.eq.f32.partialorder %v5611_v55, %v2236_v0  ;;  %v5781_v29 = vsel %vm1385_vm4, %v2514_v7, %v2236_v0  ;;  %vm2261_vm6 = vcmp.eq.f32.partialorder %v5614_v52, %v5777_v23  ;;  %v2582_v17 = vsel %vm1368_vm3, %v2566_v1, %v5485_v54  ;;  %v6569_v7 = vld [vmem:[#allocation92_spill] sm:$0xff]  ;;  %v6570_v0 = vld [vmem:[#allocation70_spill] sm:$0xff] }
 0xb9c   : > { %v2274_v31 = vsel %vm2258_vm0, %v4988_v21, 1e+09  ;;  %v2277_v13 = vsel %vm2261_vm6, %v4985_v45, 1e+09 }
 0xb9d   : > { %v2314_v8 = vsel %vm1717_vm5, %v2274_v31, inf  ;;  %v2323_v44 = vsel %vm1717_vm5, %v2277_v13, inf  ;;  %v2568_v31 = vsel %vm1351_vm2, %v6570_v0, %v6569_v7  ;;  %v6571_v13 = vld [vmem:[#allocation93_spill] sm:$0xff] }
 0xb9e   : > { %2315 = vmin.xlane.f32.xlu1 %v2314_v8  ;;  %v5789_v32 = vpop.xlane.xlu1 %2241  ;;  %2324 = vmin.xlane.f32.xlu0 %v2323_v44  ;;  %v6572_v8 = vld [vmem:[#allocation69_spill] sm:$0xff] }
 0xb9f   : > { %vm2260_vm7 = vcmp.eq.f32.partialorder %v5625_v6, %v5789_v32  ;;  %v2567_v44 = vsel %vm1351_vm2, %v6572_v8, %v6571_v13  ;;  %v6577_v13 = vld [vmem:[#allocation71_spill] sm:$0xff] }
 0xba0   : > { %v2276_v22 = vsel %vm2260_vm7, %v4999_v58, 1e+09  ;;  %v2583_v63 = vsel %vm1368_vm3, %v2567_v44, %v6574_v53  ;;  %v6578_v44 = vld [vmem:[#allocation95_spill] sm:$0xff] }
 0xba1   : > { %v2320_v5 = vsel %vm1717_vm5, %v2276_v22, inf  ;;  %v6573_v22 = vld [vmem:[#allocation116_spill] sm:$0xff] }
 0xba2   : > { %2321 = vmin.xlane.f32.xlu1 %v2320_v5  ;;  %v2584_v5 = vsel %vm1368_vm3, %v2568_v31, %v6573_v22  ;;  %v6576_v31 = vld [vmem:[#allocation94_spill] sm:$0xff] }
 0xba3   : > { %v2570_v8 = vsel %vm1351_vm2, %v6577_v13, %v6576_v31 }
 0xbfb   : > { %v2280_v40 = vpop.xlane.xlu1 %2279 }
 0xbfc   : > { %vm2326_vm8 = vcmp.eq.f32.partialorder %v4864_v28, %v2280_v40  ;;  %v5802_v3 = vsel %vm1385_vm4, %v2582_v17, %v2280_v40 }
 0xbfd   : > { %v5805_v59 = vsel %vm2326_vm8, inf, %v5490_v30 }
 0xbfe   : > { %v2358_v54 = vsel %vm1717_vm5, %v5805_v59, inf }
 0xbff   : > { %2359 = vmin.xlane.f32.xlu1 %v2358_v54  ;;  %v2286_v30 = vpop.xlane.xlu1 %2285  ;;  %v2283_v1 = vpop.xlane.xlu0 %2282  ;;  %v6579_v54 = vld [vmem:[#allocation72_spill] sm:$0xff] }
 0xc00   : > { %vm2328_vm9 = vcmp.eq.f32.partialorder %v4875_v18, %v2286_v30  ;;  %vm2327_vm10 = vcmp.eq.f32.partialorder %v4878_v42, %v2283_v1  ;;  %v5822_v17 = vsel %vm1385_vm4, %v2584_v5, %v2286_v30  ;;  %v5825_v40 = vsel %vm1385_vm4, %v2583_v63, %v2283_v1  ;;  %v6580_v63 = vld [vmem:[#allocation118_spill] sm:$0xff]  ;;  %v6581_v30 = vld [vmem:[#allocation119_spill] sm:$0xff] }
 0xc01   : > { %6575 = vst [vmem:[#allocation62_spill] sm:$0xff] %v5825_v40  ;;  %v5828_v7 = vsel %vm2328_vm9, inf, %v5503_v16  ;;  %v5831_v0 = vsel %vm2327_vm10, inf, %v5506_v4  ;;  %v2569_v22 = vsel %vm1351_vm2, %v6579_v54, %v6578_v44  ;;  %v2586_v16 = vsel %vm1368_vm3, %v2570_v8, %v6580_v63  ;;  %v6597_v40 = vld [vmem:[#allocation123_spill] sm:$0xff] }
 0xc02   : > { %v2364_v5 = vsel %vm1717_vm5, %v5828_v7, inf  ;;  %v2361_v53 = vsel %vm1717_vm5, %v5831_v0, inf  ;;  %v2585_v4 = vsel %vm1368_vm3, %v2569_v22, %v6581_v30  ;;  %v6584_v22 = vld [vmem:[#allocation96_spill] sm:$0xff] }
 0xc03   : > { %2365 = vmin.xlane.f32.xlu1 %v2364_v5  ;;  %v2292_v1 = vpop.xlane.xlu1 %2291  ;;  %2362 = vmin.xlane.f32.xlu0 %v2361_v53  ;;  %v2289_v31 = vpop.xlane.xlu0 %2288  ;;  %v6585_v5 = vld [vmem:[#allocation73_spill] sm:$0xff]  ;;  %v6586_v30 = vld [vmem:[#allocation120_spill] sm:$0xff] }
 0xc04   : > { %vm2330_vm12 = vcmp.eq.f32.partialorder %v4896_v35, %v2292_v1  ;;  %vm2329_vm13 = vcmp.eq.f32.partialorder %v4893_v9, %v2289_v31  ;;  %v5850_v13 = vsel %vm1385_vm4, %v2586_v16, %v2292_v1  ;;  %v5853_v44 = vsel %vm1385_vm4, %v2585_v4, %v2289_v31 }
 0xc05   : > { %6582 = vst [vmem:[#allocation107_spill] sm:$0xff] %v5850_v13  ;;  %6583 = vst [vmem:[#allocation108_spill] sm:$0xff] %v5853_v44  ;;  %v5856_v54 = vsel %vm2330_vm12, inf, %v5521_v57  ;;  %v5859_v8 = vsel %vm2329_vm13, inf, %v5524_v12  ;;  %v2571_v53 = vsel %vm1351_vm2, %v6585_v5, %v6584_v22  ;;  %v6588_v22 = vld [vmem:[#allocation97_spill] sm:$0xff]  ;;  %v6589_v5 = vld [vmem:[#allocation74_spill] sm:$0xff] }
 0xc06   : > { %v2370_v63 = vsel %vm1717_vm5, %v5856_v54, inf  ;;  %v2367_v16 = vsel %vm1717_vm5, %v5859_v8, inf  ;;  %v2587_v4 = vsel %vm1368_vm3, %v2571_v53, %v6586_v30  ;;  %v2573_v44 = vsel %vm1351_vm2, %v6589_v5, %v6588_v22  ;;  %v6590_v53 = vld [vmem:[#allocation121_spill] sm:$0xff]  ;;  %v6595_v13 = vld [vmem:[#allocation76_spill] sm:$0xff]  ;;  %v6596_v5 = vld [vmem:[#allocation122_spill] sm:$0xff] }
 0xc07   : > { %2371 = vmin.xlane.f32.xlu1 %v2370_v63  ;;  %2368 = vmin.xlane.f32.xlu0 %v2367_v16  ;;  %v2295_v57 = vpop.xlane.xlu0 %2294  ;;  %v2589_v63 = vsel %vm1368_vm3, %v2573_v44, %v6590_v53 }
 0xc08   : > { %vm2331_vm14 = vcmp.eq.f32.partialorder %v4911_v51, %v2295_v57  ;;  %v5872_v12 = vsel %vm1385_vm4, %v2587_v4, %v2295_v57  ;;  %v6592_v4 = vld [vmem:[#allocation98_spill] sm:$0xff]  ;;  %v6593_v57 = vld [vmem:[#allocation75_spill] sm:$0xff] }
 0xc09   : > { %6587 = vst [vmem:[#allocation84_spill] sm:$0xff] %v5872_v12  ;;  %v5875_v1 = vsel %vm2331_vm14, inf, %v5535_v43  ;;  %v6594_v12 = vld [vmem:[#allocation99_spill] sm:$0xff] }
 0xc0a   : > { %v2373_v31 = vsel %vm1717_vm5, %v5875_v1, inf  ;;  %v2575_v22 = vsel %vm1351_vm2, %v6595_v13, %v6594_v12 }
 0xc0b   : > { %2374 = vmin.xlane.f32.xlu0 %v2373_v31  ;;  %v2572_v31 = vsel %vm1351_vm2, %v6593_v57, %v6592_v4 }
 0xc0c   : > { %v2588_v53 = vsel %vm1368_vm3, %v2572_v31, %v6596_v5  ;;  %v6601_v31 = vld [vmem:[#allocation77_spill] sm:$0xff]  ;;  %v6603_v5 = vld [vmem:[#allocation78_spill] sm:$0xff] }
 0xc1b   : > { %v2301_v16 = vpop.xlane.xlu0 %2300 }
 0xc1c   : > { %vm2333_vm15 = vcmp.eq.f32.partialorder %v4936_v33, %v2301_v16  ;;  %v5886_v30 = vsel %vm1385_vm4, %v2589_v63, %v2301_v16  ;;  %v2591_v63 = vsel %vm1368_vm3, %v2575_v22, %v6597_v40  ;;  %v6600_v40 = vld [vmem:[#allocation100_spill] sm:$0xff] }
 0xc1d   : > { %6591 = vst [vmem:[#allocation60_spill] sm:$0xff] %v5886_v30  ;;  %v5889_v43 = vsel %vm2333_vm15, inf, %v5544_v41  ;;  %v2574_v22 = vsel %vm1351_vm2, %v6601_v31, %v6600_v40 }
 0xc1e   : > { %v2379_v44 = vsel %vm1717_vm5, %v5889_v43, inf }
 0xc1f   : > { %v2298_v16 = vpop.xlane.xlu1 %2297  ;;  %2380 = vmin.xlane.f32.xlu0 %v2379_v44  ;;  %v2307_v41 = vpop.xlane.xlu0 %2306  ;;  %v6602_v44 = vld [vmem:[#allocation101_spill] sm:$0xff] }
 0xc20   : > { %vm2332_vm0 = vcmp.eq.f32.partialorder %v4946_v48, %v2298_v16  ;;  %vm2335_vm6 = vcmp.eq.f32.partialorder %v4943_v37, %v2307_v41  ;;  %v5906_v4 = vsel %vm1385_vm4, %v2588_v53, %v2298_v16  ;;  %v5909_v13 = vsel %vm1385_vm4, %v2591_v63, %v2307_v41  ;;  %v6604_v16 = vld [vmem:[#allocation124_spill] sm:$0xff]  ;;  %v6605_v41 = vld [vmem:[#allocation125_spill] sm:$0xff] }
 0xc21   : > { %6598 = vst [vmem:[#allocation85_spill] sm:$0xff] %v5906_v4  ;;  %6599 = vst [vmem:[#allocation64_spill] sm:$0xff] %v5909_v13  ;;  %v5912_v12 = vsel %vm2332_vm0, inf, %v5557_v19  ;;  %v5915_v57 = vsel %vm2335_vm6, inf, %v5560_v10  ;;  %v2577_v30 = vsel %vm1351_vm2, %v6603_v5, %v6602_v44  ;;  %v2590_v19 = vsel %vm1368_vm3, %v2574_v22, %v6604_v16  ;;  %v6609_v16 = vld [vmem:[#allocation103_spill] sm:$0xff] }
 0xc22   : > { %v2376_v53 = vsel %vm1717_vm5, %v5912_v12, inf  ;;  %v2385_v63 = vsel %vm1717_vm5, %v5915_v57, inf  ;;  %v2593_v10 = vsel %vm1368_vm3, %v2577_v30, %v6605_v41  ;;  %v6607_v30 = vld [vmem:[#allocation102_spill] sm:$0xff]  ;;  %v6610_v41 = vld [vmem:[#allocation80_spill] sm:$0xff] }
 0xc23   : > { %2377 = vmin.xlane.f32.xlu1 %v2376_v53  ;;  %v2304_v13 = vpop.xlane.xlu1 %2303  ;;  %2386 = vmin.xlane.f32.xlu0 %v2385_v63  ;;  %v2313_v40 = vpop.xlane.xlu0 %2312  ;;  %v6608_v53 = vld [vmem:[#allocation79_spill] sm:$0xff]  ;;  %v2579_v4 = vsel %vm1351_vm2, %v6610_v41, %v6609_v16 }
 0xc24   : > { %vm2334_vm7 = vcmp.eq.f32.partialorder %v4960_v49, %v2304_v13  ;;  %vm2337_vm8 = vcmp.eq.f32.partialorder %v4957_v15, %v2313_v40  ;;  %v5934_v31 = vsel %vm1385_vm4, %v2590_v19, %v2304_v13  ;;  %v5937_v44 = vsel %vm1385_vm4, %v2593_v10, %v2313_v40  ;;  %v6611_v10 = vld [vmem:[#allocation126_spill] sm:$0xff]  ;;  %v6612_v40 = vld [vmem:[#allocation127_spill] sm:$0xff] }
 0xc25   : > { %6606 = vst [vmem:[#allocation109_spill] sm:$0xff] %v5937_v44  ;;  %v5940_v5 = vsel %vm2334_vm7, inf, %v5575_v46  ;;  %v5943_v22 = vsel %vm2337_vm8, inf, %v5578_v2  ;;  %v2576_v63 = vsel %vm1351_vm2, %v6608_v53, %v6607_v30  ;;  %v2595_v2 = vsel %vm1368_vm3, %v2579_v4, %v6612_v40  ;;  %v6613_v4 = vld [vmem:[#allocation104_spill] sm:$0xff] }
 0xc26   : > { %v2382_v13 = vsel %vm1717_vm5, %v5940_v5, inf  ;;  %v2391_v19 = vsel %vm1717_vm5, %v5943_v22, inf  ;;  %v2592_v46 = vsel %vm1368_vm3, %v2576_v63, %v6611_v10 }
 0xc27   : > { %2383 = vmin.xlane.f32.xlu1 %v2382_v13  ;;  %v2310_v44 = vpop.xlane.xlu1 %2309  ;;  %2392 = vmin.xlane.f32.xlu0 %v2391_v19  ;;  %v2319_v30 = vpop.xlane.xlu0 %2318  ;;  %v6614_v13 = vld [vmem:[#allocation81_spill] sm:$0xff] }
 0xc28   : > { %vm2336_vm9 = vcmp.eq.f32.partialorder %v4974_v47, %v2310_v44  ;;  %vm2339_vm10 = vcmp.eq.f32.partialorder %v4971_v56, %v2319_v30  ;;  %v5962_v53 = vsel %vm1385_vm4, %v2592_v46, %v2310_v44  ;;  %v5965_v16 = vsel %vm1385_vm4, %v2595_v2, %v2319_v30  ;;  %v6615_v46 = vld [vmem:[#allocation128_spill] sm:$0xff] }
 0xc29   : > { %v5968_v41 = vsel %vm2336_vm9, inf, %v5593_v38  ;;  %v5971_v63 = vsel %vm2339_vm10, inf, %v5596_v62  ;;  %v2578_v19 = vsel %vm1351_vm2, %v6614_v13, %v6613_v4 }
 0xc2a   : > { %v2388_v10 = vsel %vm1717_vm5, %v5968_v41, inf  ;;  %v2397_v44 = vsel %vm1717_vm5, %v5971_v63, inf  ;;  %v2594_v40 = vsel %vm1368_vm3, %v2578_v19, %v6615_v46 }
 0xc2b   : > { %2389 = vmin.xlane.f32.xlu1 %v2388_v10  ;;  %v2316_v2 = vpop.xlane.xlu1 %2315  ;;  %2398 = vmin.xlane.f32.xlu0 %v2397_v44  ;;  %v5982_v38 = vpop.xlane.xlu0 %2324 }
 0xc2c   : > { %vm2338_vm12 = vcmp.eq.f32.partialorder %v4988_v21, %v2316_v2  ;;  %vm2341_vm13 = vcmp.eq.f32.partialorder %v4985_v45, %v5982_v38  ;;  %v5988_v62 = vsel %vm1385_vm4, %v2594_v40, %v2316_v2 }
 0xc2d   : > { %v5991_v30 = vsel %vm2338_vm12, inf, %v5611_v55  ;;  %v5994_v4 = vsel %vm2341_vm13, inf, %v5614_v52 }
 0xc2e   : > { %v2394_v13 = vsel %vm1717_vm5, %v5991_v30, inf  ;;  %v2403_v19 = vsel %vm1717_vm5, %v5994_v4, inf }
 0xc2f   : > { %2395 = vmin.xlane.f32.xlu1 %v2394_v13  ;;  %v6000_v10 = vpop.xlane.xlu1 %2321  ;;  %2404 = vmin.xlane.f32.xlu0 %v2403_v19 }
 0xc30   : > { %vm2340_vm14 = vcmp.eq.f32.partialorder %v4999_v58, %v6000_v10 }
 0xc31   : > { %v6005_v44 = vsel %vm2340_vm14, inf, %v5625_v6 }
 0xc32   : > { %v2400_v55 = vsel %vm1717_vm5, %v6005_v44, inf }
 0xc33   : > { %2401 = vmin.xlane.f32.xlu1 %v2400_v55 }
 0xc8c   : > { %v2360_v52 = vpop.xlane.xlu1 %2359 }
 0xc8d   : > { %vm2406_vm15 = vcmp.eq.f32.partialorder %v5805_v59, %v2360_v52  ;;  %v2534_v46 = vsel %vm1402_vm11, %v5636_v50, %v2360_v52 }
 0xc8e   : > { %2550 = vst.msk [vmem:[#allocation2] sm:$0xff] %vm1604_vm1, %v2534_v46  ;;  %v2422_v40 = vsel %vm2406_vm15, %v4864_v28, 1e+09 }
 0xc8f   : > { %v2438_v2 = vsel %vm1717_vm5, %v2422_v40, inf }
 0xc90   : > { %2439 = vmin.xlane.f32.xlu1 %v2438_v2  ;;  %v2366_v13 = vpop.xlane.xlu1 %2365  ;;  %v2363_v6 = vpop.xlane.xlu0 %2362 }
 0xc91   : > { %vm2408_vm0 = vcmp.eq.f32.partialorder %v5828_v7, %v2366_v13  ;;  %v2536_v19 = vsel %vm1402_vm11, %v5652_v39, %v2366_v13  ;;  %vm2407_vm6 = vcmp.eq.f32.partialorder %v5831_v0, %v2363_v6  ;;  %v2535_v59 = vsel %vm1402_vm11, %v5656_v25, %v2363_v6 }
 0xc92   : > { %2552 = vst.msk [vmem:[#allocation2 + $0x10] sm:$0xff] %vm1604_vm1, %v2536_v19  ;;  %2551 = vst.msk [vmem:[#allocation2 + $0x8] sm:$0xff] %vm1604_vm1, %v2535_v59  ;;  %v2424_v28 = vsel %vm2408_vm0, %v4875_v18, 1e+09  ;;  %v2423_v50 = vsel %vm2407_vm6, %v4878_v42, 1e+09 }
 0xc93   : > { %v2444_v55 = vsel %vm1717_vm5, %v2424_v28, inf  ;;  %v2441_v7 = vsel %vm1717_vm5, %v2423_v50, inf }
 0xc94   : > { %2445 = vmin.xlane.f32.xlu1 %v2444_v55  ;;  %v2372_v52 = vpop.xlane.xlu1 %2371  ;;  %2442 = vmin.xlane.f32.xlu0 %v2441_v7  ;;  %v2369_v39 = vpop.xlane.xlu0 %2368  ;;  %v6618_v7 = vld [vmem:[#allocation114_spill] sm:$0xff] }
 0xc95   : > { %vm2410_vm7 = vcmp.eq.f32.partialorder %v5856_v54, %v2372_v52  ;;  %v2538_v25 = vsel %vm1402_vm11, %v5674_v36, %v2372_v52  ;;  %vm2409_vm8 = vcmp.eq.f32.partialorder %v5859_v8, %v2369_v39  ;;  %v2537_v18 = vsel %vm1402_vm11, %v5678_v11, %v2369_v39 }
 0xc96   : > { %2554 = vst.msk [vmem:[#allocation2 + $0x20] sm:$0xff] %vm1604_vm1, %v2538_v25  ;;  %2553 = vst.msk [vmem:[#allocation2 + $0x18] sm:$0xff] %vm1604_vm1, %v2537_v18  ;;  %v2426_v42 = vsel %vm2410_vm7, %v4896_v35, 1e+09  ;;  %v2425_v0 = vsel %vm2409_vm8, %v4893_v9, 1e+09 }
 0xc97   : > { %v2450_v46 = vsel %vm1717_vm5, %v2426_v42, inf  ;;  %v2447_v54 = vsel %vm1717_vm5, %v2425_v0, inf  ;;  %v6619_v18 = vld [vmem:[#allocation90_spill] sm:$0xff]  ;;  %v6620_v42 = vld [vmem:[#allocation65_spill] sm:$0xff] }
 0xc98   : > { %2451 = vmin.xlane.f32.xlu1 %v2450_v46  ;;  %2448 = vmin.xlane.f32.xlu0 %v2447_v54  ;;  %v2375_v36 = vpop.xlane.xlu0 %2374  ;;  %v2500_v0 = vsel %vm1351_vm2, %v6620_v42, %v6619_v18  ;;  %v6635_v18 = vld [vmem:[#allocation130_spill] sm:$0xff] }
 0xc99   : > { %vm2411_vm9 = vcmp.eq.f32.partialorder %v5875_v1, %v2375_v36  ;;  %v2539_v11 = vsel %vm1402_vm11, %v5691_v34, %v2375_v36 }
 0xc9a   : > { %2555 = vst.msk [vmem:[#allocation2 + $0x28] sm:$0xff] %vm1604_vm1, %v2539_v11  ;;  %v2427_v8 = vsel %vm2411_vm9, %v4911_v51, 1e+09 }
 0xc9b   : > { %v2453_v35 = vsel %vm1717_vm5, %v2427_v8, inf }
 0xc9c   : > { %2454 = vmin.xlane.f32.xlu0 %v2453_v35 }
 0xcac   : > { %v2381_v9 = vpop.xlane.xlu0 %2380 }
 0xcad   : > { %vm2413_vm10 = vcmp.eq.f32.partialorder %v5889_v43, %v2381_v9  ;;  %v2541_v40 = vsel %vm1402_vm11, %v5702_v14, %v2381_v9 }
 0xcae   : > { %2557 = vst.msk [vmem:[#allocation2 + $0x38] sm:$0xff] %vm1604_vm1, %v2541_v40  ;;  %v2429_v1 = vsel %vm2413_vm10, %v4936_v33, 1e+09 }
 0xcaf   : > { %v2459_v2 = vsel %vm1717_vm5, %v2429_v1, inf  ;;  %v6622_v1 = vld [vmem:[#allocation62_spill] sm:$0xff] }
 0xcb0   : > { %v2378_v34 = vpop.xlane.xlu1 %2377  ;;  %2460 = vmin.xlane.f32.xlu0 %v2459_v2  ;;  %v2387_v13 = vpop.xlane.xlu0 %2386 }
 0xcb1   : > { %vm2412_vm12 = vcmp.eq.f32.partialorder %v5912_v12, %v2378_v34  ;;  %v2540_v51 = vsel %vm1402_vm11, %v5718_v26, %v2378_v34  ;;  %vm2415_vm13 = vcmp.eq.f32.partialorder %v5915_v57, %v2387_v13  ;;  %v2543_v43 = vsel %vm1402_vm11, %v5722_v61, %v2387_v13  ;;  %v6623_v13 = vld [vmem:[#allocation107_spill] sm:$0xff] }
 0xcb2   : > { %2556 = vst.msk [vmem:[#allocation2 + $0x30] sm:$0xff] %vm1604_vm1, %v2540_v51  ;;  %2559 = vst.msk [vmem:[#allocation2 + $0x48] sm:$0xff] %vm1604_vm1, %v2543_v43  ;;  %v2428_v33 = vsel %vm2412_vm12, %v4946_v48, 1e+09  ;;  %v2431_v14 = vsel %vm2415_vm13, %v4943_v37, 1e+09 }
 0xcb3   : > { %v2456_v6 = vsel %vm1717_vm5, %v2428_v33, inf  ;;  %v2465_v12 = vsel %vm1717_vm5, %v2431_v14, inf  ;;  %v6625_v33 = vld [vmem:[#allocation84_spill] sm:$0xff] }
 0xcb4   : > { %2457 = vmin.xlane.f32.xlu1 %v2456_v6  ;;  %v2384_v19 = vpop.xlane.xlu1 %2383  ;;  %2466 = vmin.xlane.f32.xlu0 %v2465_v12  ;;  %v2393_v26 = vpop.xlane.xlu0 %2392  ;;  %v6626_v12 = vld [vmem:[#allocation60_spill] sm:$0xff] }
 0xcb5   : > { %vm2414_vm14 = vcmp.eq.f32.partialorder %v5940_v5, %v2384_v19  ;;  %v2542_v61 = vsel %vm1402_vm11, %v5740_v27, %v2384_v19  ;;  %vm2417_vm15 = vcmp.eq.f32.partialorder %v5943_v22, %v2393_v26  ;;  %v2545_v48 = vsel %vm1402_vm11, %v5744_v20, %v2393_v26  ;;  %v6616_v22 = vld [vmem:[#allocation89_spill] sm:$0xff] }
 0xcb6   : > { %2558 = vst.msk [vmem:[#allocation2 + $0x40] sm:$0xff] %vm1604_vm1, %v2542_v61  ;;  %2561 = vst.msk [vmem:[#allocation2 + $0x58] sm:$0xff] %vm1604_vm1, %v2545_v48  ;;  %v2430_v37 = vsel %vm2414_vm14, %v4960_v49, 1e+09  ;;  %v2433_v57 = vsel %vm2417_vm15, %v4957_v15, 1e+09 }
 0xcb7   : > { %v2462_v59 = vsel %vm1717_vm5, %v2430_v37, inf  ;;  %v2471_v5 = vsel %vm1717_vm5, %v2433_v57, inf  ;;  %v6617_v15 = vld [vmem:[#allocation67_spill] sm:$0xff]  ;;  %v6627_v48 = vld [vmem:[#allocation85_spill] sm:$0xff]  ;;  %v6628_v57 = vld [vmem:[#allocation64_spill] sm:$0xff] }
 0xcb8   : > { %2463 = vmin.xlane.f32.xlu1 %v2462_v59  ;;  %v2390_v28 = vpop.xlane.xlu1 %2389  ;;  %2472 = vmin.xlane.f32.xlu0 %v2471_v5  ;;  %v2399_v27 = vpop.xlane.xlu0 %2398  ;;  %v2501_v50 = vsel %vm1351_vm2, %v6617_v15, %v6616_v22 }
 0xcb9   : > { %vm2416_vm0 = vcmp.eq.f32.partialorder %v5968_v41, %v2390_v28  ;;  %v2544_v20 = vsel %vm1402_vm11, %v5762_v24, %v2390_v28  ;;  %vm2419_vm6 = vcmp.eq.f32.partialorder %v5971_v63, %v2399_v27  ;;  %v2547_v49 = vsel %vm1402_vm11, %v5766_v60, %v2399_v27 }
 0xcba   : > { %2560 = vst.msk [vmem:[#allocation2 + $0x50] sm:$0xff] %vm1604_vm1, %v2544_v20  ;;  %2563 = vst.msk [vmem:[#allocation2 + $0x68] sm:$0xff] %vm1604_vm1, %v2547_v49  ;;  %v2432_v55 = vsel %vm2416_vm0, %v4974_v47, 1e+09  ;;  %v2435_v41 = vsel %vm2419_vm6, %v4971_v56, 1e+09  ;;  %v2517_v24 = vsel %vm1368_vm3, %v2501_v50, %v6618_v7 }
 0xcbb   : > { %v2468_v63 = vsel %vm1717_vm5, %v2432_v55, inf  ;;  %v2477_v52 = vsel %vm1717_vm5, %v2435_v41, inf  ;;  %v2533_v60 = vsel %vm1385_vm4, %v2517_v24, %v5777_v23  ;;  %v6629_v20 = vld [vmem:[#allocation109_spill] sm:$0xff]  ;;  %v6631_v7 = vld [vmem:[#allocation82_spill] sm:$0xff] }
 0xcbc   : > { %2469 = vmin.xlane.f32.xlu1 %v2468_v63  ;;  %v2396_v39 = vpop.xlane.xlu1 %2395  ;;  %2478 = vmin.xlane.f32.xlu0 %v2477_v52  ;;  %v2405_v25 = vpop.xlane.xlu0 %2404  ;;  %v6630_v41 = vld [vmem:[#allocation105_spill] sm:$0xff] }
 0xcbd   : > { %vm2418_vm7 = vcmp.eq.f32.partialorder %v5991_v30, %v2396_v39  ;;  %v2546_v47 = vsel %vm1402_vm11, %v5781_v29, %v2396_v39  ;;  %vm2421_vm8 = vcmp.eq.f32.partialorder %v5994_v4, %v2405_v25  ;;  %v2549_v56 = vsel %vm1402_vm11, %v2533_v60, %v2405_v25  ;;  %v6621_v30 = vld [vmem:[#allocation115_spill] sm:$0xff]  ;;  %v6633_v25 = vld [vmem:[#allocation106_spill] sm:$0xff] }
 0xcbe   : > { %2562 = vst.msk [vmem:[#allocation2 + $0x60] sm:$0xff] %vm1604_vm1, %v2546_v47  ;;  %2565 = vst.msk [vmem:[#allocation2 + $0x78] sm:$0xff] %vm1604_vm1, %v2549_v56  ;;  %v2434_v23 = vsel %vm2418_vm7, %v4988_v21, 1e+09  ;;  %v2437_v46 = vsel %vm2421_vm8, %v4985_v45, 1e+09  ;;  %v2516_v54 = vsel %vm1368_vm3, %v2500_v0, %v6621_v30  ;;  %v2581_v24 = vsel %vm1351_vm2, %v6631_v7, %v6630_v41 }
 0xcbf   : > { %v2474_v29 = vsel %vm1717_vm5, %v2434_v23, inf  ;;  %v2483_v4 = vsel %vm1717_vm5, %v2437_v46, inf  ;;  %v2532_v36 = vsel %vm1385_vm4, %v2516_v54, %v5789_v32  ;;  %v6634_v47 = vld [vmem:[#allocation83_spill] sm:$0xff] }
 0xcc0   : > { %2475 = vmin.xlane.f32.xlu1 %v2474_v29  ;;  %v2402_v11 = vpop.xlane.xlu1 %2401  ;;  %2484 = vmin.xlane.f32.xlu0 %v2483_v4  ;;  %v2580_v56 = vsel %vm1351_vm2, %v6634_v47, %v6633_v25 }
 0xcc1   : > { %vm2420_vm9 = vcmp.eq.f32.partialorder %v6005_v44, %v2402_v11  ;;  %v2548_v8 = vsel %vm1402_vm11, %v2532_v36, %v2402_v11  ;;  %v2596_v42 = vsel %vm1368_vm3, %v2580_v56, %v6635_v18 }
 0xcc2   : > { %2564 = vst.msk [vmem:[#allocation2 + $0x70] sm:$0xff] %vm1604_vm1, %v2548_v8  ;;  %v2436_v45 = vsel %vm2420_vm9, %v4999_v58, 1e+09 }
 0xcc3   : > { %v2480_v21 = vsel %vm1717_vm5, %v2436_v45, inf }
 0xcc4   : > { %2481 = vmin.xlane.f32.xlu1 %v2480_v21 }
 0xd1d   : > { %v2440_v35 = vpop.xlane.xlu1 %2439 }
 0xd1e   : > { %v2614_v9 = vsel %vm1402_vm11, %v5802_v3, %v2440_v35  ;;  %v6624_v3 = vld [vmem:[#allocation108_spill] sm:$0xff] }
 0xd1f   : > { %2630 = vst.msk [vmem:[#allocation3] sm:$0xff] %vm1604_vm1, %v2614_v9 }
 0xd21   : > { %v2446_v32 = vpop.xlane.xlu1 %2445  ;;  %v2443_v40 = vpop.xlane.xlu0 %2442 }
 0xd22   : > { %v2616_v44 = vsel %vm1402_vm11, %v5822_v17, %v2446_v32  ;;  %v2615_v2 = vsel %vm1402_vm11, %v6622_v1, %v2443_v40 }
 0xd23   : > { %2632 = vst.msk [vmem:[#allocation3 + $0x10] sm:$0xff] %vm1604_vm1, %v2616_v44  ;;  %2631 = vst.msk [vmem:[#allocation3 + $0x8] sm:$0xff] %vm1604_vm1, %v2615_v2 }
 0xd25   : > { %v2452_v58 = vpop.xlane.xlu1 %2451  ;;  %v2449_v34 = vpop.xlane.xlu0 %2448 }
 0xd26   : > { %v2618_v51 = vsel %vm1402_vm11, %v6623_v13, %v2452_v58  ;;  %v2617_v43 = vsel %vm1402_vm11, %v6624_v3, %v2449_v34 }
 0xd27   : > { %2634 = vst.msk [vmem:[#allocation3 + $0x20] sm:$0xff] %vm1604_vm1, %v2618_v51  ;;  %2633 = vst.msk [vmem:[#allocation3 + $0x18] sm:$0xff] %vm1604_vm1, %v2617_v43 }
 0xd29   : > { %v2455_v17 = vpop.xlane.xlu0 %2454 }
 0xd2a   : > { %v2619_v14 = vsel %vm1402_vm11, %v6625_v33, %v2455_v17 }
 0xd2b   : > { %2635 = vst.msk [vmem:[#allocation3 + $0x28] sm:$0xff] %vm1604_vm1, %v2619_v14 }
 0xd3d   : > { %v2461_v6 = vpop.xlane.xlu0 %2460 }
 0xd3e   : > { %v2621_v19 = vsel %vm1402_vm11, %v6626_v12, %v2461_v6 }
 0xd3f   : > { %2637 = vst.msk [vmem:[#allocation3 + $0x38] sm:$0xff] %vm1604_vm1, %v2621_v19 }
 0xd41   : > { %v2458_v26 = vpop.xlane.xlu1 %2457  ;;  %v2467_v61 = vpop.xlane.xlu0 %2466 }
 0xd42   : > { %v2620_v37 = vsel %vm1402_vm11, %v6627_v48, %v2458_v26  ;;  %v2623_v59 = vsel %vm1402_vm11, %v6628_v57, %v2467_v61 }
 0xd43   : > { %2636 = vst.msk [vmem:[#allocation3 + $0x30] sm:$0xff] %vm1604_vm1, %v2620_v37  ;;  %2639 = vst.msk [vmem:[#allocation3 + $0x48] sm:$0xff] %vm1604_vm1, %v2623_v59 }
 0xd45   : > { %v2464_v5 = vpop.xlane.xlu1 %2463  ;;  %v2473_v28 = vpop.xlane.xlu0 %2472 }
 0xd46   : > { %v2622_v27 = vsel %vm1402_vm11, %v5934_v31, %v2464_v5  ;;  %v2625_v49 = vsel %vm1402_vm11, %v6629_v20, %v2473_v28  ;;  %v6632_v31 = vld [vmem:[#allocation129_spill] sm:$0xff] }
 0xd47   : > { %2638 = vst.msk [vmem:[#allocation3 + $0x40] sm:$0xff] %vm1604_vm1, %v2622_v27  ;;  %2641 = vst.msk [vmem:[#allocation3 + $0x58] sm:$0xff] %vm1604_vm1, %v2625_v49  ;;  %v2597_v63 = vsel %vm1368_vm3, %v2581_v24, %v6632_v31 }
 0xd48   : > { %v2613_v60 = vsel %vm1385_vm4, %v2597_v63, %v5982_v38  ;;  %v2612_v38 = vsel %vm1385_vm4, %v2596_v42, %v6000_v10 }
 0xd49   : > { %v2470_v22 = vpop.xlane.xlu1 %2469  ;;  %v2479_v15 = vpop.xlane.xlu0 %2478 }
 0xd4a   : > { %v2624_v50 = vsel %vm1402_vm11, %v5962_v53, %v2470_v22  ;;  %v2627_v55 = vsel %vm1402_vm11, %v5965_v16, %v2479_v15 }
 0xd4b   : > { %2640 = vst.msk [vmem:[#allocation3 + $0x50] sm:$0xff] %vm1604_vm1, %v2624_v50  ;;  %2643 = vst.msk [vmem:[#allocation3 + $0x68] sm:$0xff] %vm1604_vm1, %v2627_v55 }
 0xd4d   : > { %v2476_v52 = vpop.xlane.xlu1 %2475  ;;  %v2485_v39 = vpop.xlane.xlu0 %2484 }
 0xd4e   : > { %v2626_v53 = vsel %vm1402_vm11, %v5988_v62, %v2476_v52  ;;  %v2629_v16 = vsel %vm1402_vm11, %v2613_v60, %v2485_v39 }
 0xd4f   : > { %2642 = vst.msk [vmem:[#allocation3 + $0x60] sm:$0xff] %vm1604_vm1, %v2626_v53  ;;  %2645 = vst.msk [vmem:[#allocation3 + $0x78] sm:$0xff] %vm1604_vm1, %v2629_v16 }
 0xd51   : > { %v2482_v0 = vpop.xlane.xlu1 %2481 }
 0xd52   : > { %v2628_v23 = vsel %vm1402_vm11, %v2612_v38, %v2482_v0 }
 0xd53   : > { %2644 = vst.msk [vmem:[#allocation3 + $0x70] sm:$0xff] %vm1604_vm1, %v2628_v23 }
 0xd54 PF: > { %p2900_p12 = scmp.ne.s32.totalorder %s3177_s15, 1 }
 0xd55   : > { %v2650_v62 = vld [vmem:[#allocation3] sm:$0xff] (!%p2900_p12)  ;;  %v2651_v46 = vld [vmem:[#allocation3 + $0x8] sm:$0xff] (!%p2900_p12)  ;;  %v2652_v30 = vld [vmem:[#allocation3 + $0x10] sm:$0xff] (!%p2900_p12)  ;;  %vm2682_vm2 = vcmask (!%p2900_p12), 39936  }
 0xd56   : > { %2649 = sbr.rel (%p2900_p12) target bundleno = 3426 (0xd62), region = 48  ;;  %v3055_v54 = vtrunc.f32 (!%p2900_p12), %v2650_v62  ;;  %v3057_v29 = vtrunc.f32 (!%p2900_p12), %v2651_v46  ;;  %v3059_v4 = vtrunc.f32 (!%p2900_p12), %v2652_v30  ;;  %v2653_v36 = vld [vmem:[#allocation3 + $0x18] sm:$0xff] (!%p2900_p12)  ;;  %v2654_v11 = vld [vmem:[#allocation3 + $0x20] sm:$0xff] (!%p2900_p12)  ;;  %v2655_v8 = vld [vmem:[#allocation3 + $0x28] sm:$0xff] (!%p2900_p12) }
 0xd57   : > { %v3061_v10 = vtrunc.f32 (!%p2900_p12), %v2653_v36  ;;  %v3063_v45 = vtrunc.f32 (!%p2900_p12), %v2654_v11  ;;  %v3065_v21 = vtrunc.f32 (!%p2900_p12), %v2655_v8  ;;  %v2656_v35 = vld [vmem:[#allocation3 + $0x30] sm:$0xff] (!%p2900_p12)  ;;  %v2657_v9 = vld [vmem:[#allocation3 + $0x38] sm:$0xff] (!%p2900_p12)  ;;  %v2658_v32 = vld [vmem:[#allocation3 + $0x40] sm:$0xff] (!%p2900_p12) }
 0xd58   : > { %v3056_v40 = vcvt.f32.s32 (!%p2900_p12), %v3055_v54  ;;  %v3058_v44 = vcvt.f32.s32 (!%p2900_p12), %v3057_v29  ;;  %v3060_v1 = vcvt.f32.s32 (!%p2900_p12), %v3059_v4  ;;  %v3067_v2 = vtrunc.f32 (!%p2900_p12), %v2656_v35  ;;  %v2659_v58 = vld [vmem:[#allocation3 + $0x48] sm:$0xff] (!%p2900_p12)  ;;  %v2660_v34 = vld [vmem:[#allocation3 + $0x50] sm:$0xff] (!%p2900_p12)  ;;  %v2661_v13 = vld [vmem:[#allocation3 + $0x58] sm:$0xff] (!%p2900_p12) }
 0xd59   : > { %v3062_v51 = vcvt.f32.s32 (!%p2900_p12), %v3061_v10  ;;  %v3064_v3 = vcvt.f32.s32 (!%p2900_p12), %v3063_v45  ;;  %v3066_v43 = vcvt.f32.s32 (!%p2900_p12), %v3065_v21  ;;  %v3069_v17 = vtrunc.f32 (!%p2900_p12), %v2657_v9  ;;  %v2662_v33 = vld [vmem:[#allocation3 + $0x60] sm:$0xff] (!%p2900_p12)  ;;  %v2663_v14 = vld [vmem:[#allocation3 + $0x68] sm:$0xff] (!%p2900_p12)  ;;  %v2665_v48 = vld [vmem:[#allocation3 + $0x78] sm:$0xff] (!%p2900_p12) }
 0xd5a   : > { %v2664_v6 = vld [vmem:[#allocation3 + $0x70] sm:$0xff] (!%p2900_p12)  ;;  %2683 = vst.msk [vmem:[%s3312_s14] sm:$0xff] (!%p2900_p12), %vm2682_vm2, %v3056_v40  ;;  %2684 = vst.msk [vmem:[%s3312_s14 + $0x8] sm:$0xff] (!%p2900_p12), %vm2682_vm2, %v3058_v44  ;;  %v3068_v12 = vcvt.f32.s32 (!%p2900_p12), %v3067_v2  ;;  %v3071_v19 = vtrunc.f32 (!%p2900_p12), %v2658_v32  ;;  %v3073_v26 = vtrunc.f32 (!%p2900_p12), %v2659_v58  ;;  %v3075_v61 = vtrunc.f32 (!%p2900_p12), %v2660_v34 }
 0xd5b   : > { %2685 = vst.msk [vmem:[%s3312_s14 + $0x10] sm:$0xff] (!%p2900_p12), %vm2682_vm2, %v3060_v1  ;;  %2686 = vst.msk [vmem:[%s3312_s14 + $0x18] sm:$0xff] (!%p2900_p12), %vm2682_vm2, %v3062_v51  ;;  %v3070_v37 = vcvt.f32.s32 (!%p2900_p12), %v3069_v17  ;;  %v3077_v57 = vtrunc.f32 (!%p2900_p12), %v2661_v13  ;;  %v3079_v59 = vtrunc.f32 (!%p2900_p12), %v2662_v33  ;;  %v3081_v5 = vtrunc.f32 (!%p2900_p12), %v2663_v14 }
 0xd5c   : > { %2687 = vst.msk [vmem:[%s3312_s14 + $0x20] sm:$0xff] (!%p2900_p12), %vm2682_vm2, %v3064_v3  ;;  %2688 = vst.msk [vmem:[%s3312_s14 + $0x28] sm:$0xff] (!%p2900_p12), %vm2682_vm2, %v3066_v43  ;;  %v3072_v28 = vcvt.f32.s32 (!%p2900_p12), %v3071_v19  ;;  %v3074_v27 = vcvt.f32.s32 (!%p2900_p12), %v3073_v26  ;;  %v3076_v20 = vcvt.f32.s32 (!%p2900_p12), %v3075_v61  ;;  %v3083_v49 = vtrunc.f32 (!%p2900_p12), %v2664_v6 }
 0xd5d   : > { %2689 = vst.msk [vmem:[%s3312_s14 + $0x30] sm:$0xff] %vm2682_vm2, %v3068_v12  ;;  %2690 = vst.msk [vmem:[%s3312_s14 + $0x38] sm:$0xff] %vm2682_vm2, %v3070_v37  ;;  %v3078_v22 = vcvt.f32.s32 %v3077_v57  ;;  %v3080_v15 = vcvt.f32.s32 %v3079_v59  ;;  %v3082_v50 = vcvt.f32.s32 %v3081_v5  ;;  %v3085_v55 = vtrunc.f32 %v2665_v48 }
 0xd5e   : > { %2691 = vst.msk [vmem:[%s3312_s14 + $0x40] sm:$0xff] %vm2682_vm2, %v3072_v28  ;;  %2692 = vst.msk [vmem:[%s3312_s14 + $0x48] sm:$0xff] %vm2682_vm2, %v3074_v27  ;;  %v3084_v41 = vcvt.f32.s32 %v3083_v49 }
 0xd5f   : > { %2693 = vst.msk [vmem:[%s3312_s14 + $0x50] sm:$0xff] %vm2682_vm2, %v3076_v20  ;;  %2694 = vst.msk [vmem:[%s3312_s14 + $0x58] sm:$0xff] %vm2682_vm2, %v3078_v22  ;;  %v3086_v7 = vcvt.f32.s32 %v3085_v55 }
 0xd60   : > { %2695 = vst.msk [vmem:[%s3312_s14 + $0x60] sm:$0xff] %vm2682_vm2, %v3080_v15  ;;  %2696 = vst.msk [vmem:[%s3312_s14 + $0x68] sm:$0xff] %vm2682_vm2, %v3082_v50 }
 0xd61   : > { %2697 = vst.msk [vmem:[%s3312_s14 + $0x70] sm:$0xff] %vm2682_vm2, %v3084_v41  ;;  %2698 = vst.msk [vmem:[%s3312_s14 + $0x78] sm:$0xff] %vm2682_vm2, %v3086_v7 }
 0xd62 PF: > { %s14_s21 = sadd.s32 1, %s3201_s21   ;;  %s6636_s15 = smov %s3189_s18 }
 0xd63   : > { %p11_p13 = scmp.ge.s32.totalorder %s14_s21, 10   ;;  %s6637_s16 = smov %s3193_s19 }
 0xd64   : > { %s6638_s17 = smov %s3197_s20  ;;  %s6639_s18 = smov %s6643_s22 }
 0xd65   : > { %s6640_s19 = smov %s6647_s23  ;;  %s6641_s20 = smov %s6651_s24 }
 0xd66   :  { %13 = sbr.rel (!%p11_p13) target bundleno = 4 (0x4), region = 87 }

</bundles_post_ra>
